<compile_context>
chip_gen: v7x
topology: tpu7x:2x2x1
jax: 0.10.0
libtpu: 0.0.40
codegen_flags: <defaults>
</compile_context>

<pallas_src>
import jax
import jax.numpy as jnp
from jax import lax
from jax.experimental import pallas as pl
from jax.experimental.pallas import tpu as pltpu

EPS = 1e-05


def _bn_kernel(x_ref, params_ref, out_ref):
    # x_ref: (tc, L) f32; params_ref: (tc, 2) f32 (col 0 = gamma, col 1 = beta);
    # out_ref: (tc, L) f32.  The block always covers the full L axis.
    x = x_ref[...]
    inv_l = jnp.float32(1.0 / x.shape[1])

    # Per-channel (per-row) mean over the full reduction axis.
    mean = jnp.sum(x, axis=1, keepdims=True) * inv_l          # (tc, 1)
    xc = x - mean                                             # centered (in vregs)
    var = jnp.sum(xc * xc, axis=1, keepdims=True) * inv_l     # biased variance, stable

    gamma = params_ref[:, 0:1]                                # (tc, 1)
    beta = params_ref[:, 1:2]                                 # (tc, 1)
    scale = gamma * lax.rsqrt(var + EPS)                      # (tc, 1)

    # Single FMA per vreg; scale broadcasts along lanes.
    out_ref[...] = xc * scale + beta


def _default_tile_c(c):
    """Pick channel tile per TPU generation: 1 tile per TensorCore."""
    kind = ""
    try:
        kind = jax.devices()[0].device_kind.lower()
    except Exception:
        pass
    # v7x has 2 TensorCores per chip -> split channels 1:1 across cores.
    if "v7" in kind and c % 2 == 0 and (c // 2) % 8 == 0:
        return c // 2
    # v5e / v6e: single TensorCore -> one grid step, no per-step overhead.
    return c


def batchnorm2d_pallas(x_nchw, gamma, beta, *, tile_c=None):
    """x_nchw: (N, C, H, W) float32; gamma, beta: (C,) float32."""
    n, c, h, w = x_nchw.shape
    l = n * h * w

    # Transpose-free path for N == 1 (the module's case): NCHW is contiguous as (C, H*W).
    if n == 1:
        x2d = x_nchw.reshape(c, l)
    else:
        x2d = jnp.transpose(x_nchw, (1, 0, 2, 3)).reshape(c, l)

    tc = tile_c if tile_c is not None else _default_tile_c(c)
    tc = min(tc, c)
    assert c % tc == 0 and (tc % 8 == 0 or tc == c), \
        "channel tile must divide C and be a multiple of 8 (or equal C)"
    # The kernel computes statistics over the whole row; L must never be tiled.
    # (Block shape below always uses the full l, so inv_l inside the kernel is correct.)

    # Concatenate gamma/beta -> one small (c, 2) param array, one DMA per grid step.
    params = jnp.stack([gamma, beta], axis=1).astype(x2d.dtype)   # (c, 2)

    out2d = pl.pallas_call(
        _bn_kernel,
        out_shape=jax.ShapeDtypeStruct((c, l), x2d.dtype),
        grid=(c // tc,),
        in_specs=[
            pl.BlockSpec((tc, l), lambda i: (i, 0)),
            pl.BlockSpec((tc, 2), lambda i: (i, 0)),
        ],
        out_specs=pl.BlockSpec((tc, l), lambda i: (i, 0)),
        compiler_params=pltpu.CompilerParams(
            # Channel tiles are fully independent; on dual-TC chips this shards
            # the (2,)-grid 1:1 across cores.  Harmless for grid=(1,).
            dimension_semantics=("parallel",),
        ),
    )(x2d, params)

    if n == 1:
        return out2d.reshape(1, c, h, w)
    return jnp.transpose(out2d.reshape(c, n, h, w), (1, 0, 2, 3))


def _reference_bn(x_nchw, gamma, beta):
    mean = jnp.mean(x_nchw, axis=(0, 2, 3), keepdims=True)
    var = jnp.mean((x_nchw - mean) ** 2, axis=(0, 2, 3), keepdims=True)
    g = gamma.reshape(1, -1, 1, 1)
    b = beta.reshape(1, -1, 1, 1)
    return (x_nchw - mean) / jnp.sqrt(var + EPS) * g + b


if __name__ == "__main__":
    key = jax.random.PRNGKey(0)
    # Shape implied by the module: (1, 512, 14, 14); channels fixed at 512 by BatchNorm2d(512).
    x = jax.random.normal(key, (1, 512, 14, 14), dtype=jnp.float32)

    # Deterministic parameter init, matching PyTorch's BatchNorm2d defaults.
    gamma = jnp.ones((512,), dtype=jnp.float32)
    beta = jnp.zeros((512,), dtype=jnp.float32)

    out = batchnorm2d_pallas(x, gamma, beta)
    out = jax.block_until_ready(out)

    ref = _reference_bn(x, gamma, beta)
    assert out.shape == (1, 512, 14, 14)
    assert jnp.allclose(out, ref, atol=1e-4, rtol=1e-4)

    print("KERNEL_OK")
</pallas_src>

<mosaic_0001>
module attributes {stable_mosaic.version = 11 : i64} {
  func.func @_bn_kernel(%arg0: i32, %arg1: memref<512x196xf32, #tpu.memory_space<vmem>>, %arg2: memref<512x2xf32, #tpu.memory_space<vmem>>, %arg3: memref<512x196xf32, #tpu.memory_space<vmem>>) attributes {dimension_semantics = [#tpu.dimension_semantics<parallel>], iteration_bounds = array<i64: 1>, scalar_prefetch = 0 : i64, scratch_operands = 0 : i64, tpu.core_type = #tpu.core_type<tc>, window_params = [{transform_indices = @transform_0, window_bounds = array<i64: 512, 196>}, {transform_indices = @transform_1, window_bounds = array<i64: 512, 2>}, {transform_indices = @transform_2, window_bounds = array<i64: 512, 196>}]} {
    %c0 = arith.constant 0 : index
    %c0_0 = arith.constant 0 : index
    %0 = vector.load %arg1[%c0, %c0_0] : memref<512x196xf32, #tpu.memory_space<vmem>>, vector<512x196xf32>
    %cst = arith.constant dense<0.000000e+00> : vector<512xf32>
    %1 = vector.multi_reduction <add>, %0, %cst [1] : vector<512x196xf32> to vector<512xf32>
    %2 = vector.shape_cast %1 : vector<512xf32> to vector<512x1xf32>
    %cst_1 = arith.constant 0.00510204071 : f32
    %3 = vector.broadcast %cst_1 : f32 to vector<512x1xf32>
    %4 = arith.mulf %2, %3 : vector<512x1xf32>
    %5 = vector.broadcast %4 : vector<512x1xf32> to vector<512x196xf32>
    %6 = arith.subf %0, %5 : vector<512x196xf32>
    %7 = arith.mulf %6, %6 : vector<512x196xf32>
    %cst_2 = arith.constant dense<0.000000e+00> : vector<512xf32>
    %8 = vector.multi_reduction <add>, %7, %cst_2 [1] : vector<512x196xf32> to vector<512xf32>
    %9 = vector.shape_cast %8 : vector<512xf32> to vector<512x1xf32>
    %cst_3 = arith.constant 0.00510204071 : f32
    %10 = vector.broadcast %cst_3 : f32 to vector<512x1xf32>
    %11 = arith.mulf %9, %10 : vector<512x1xf32>
    %c0_4 = arith.constant 0 : index
    %c0_5 = arith.constant 0 : index
    %12 = vector.load %arg2[%c0_4, %c0_5] : memref<512x2xf32, #tpu.memory_space<vmem>>, vector<512x1xf32>
    %c0_6 = arith.constant 0 : index
    %c1 = arith.constant 1 : index
    %13 = vector.load %arg2[%c0_6, %c1] : memref<512x2xf32, #tpu.memory_space<vmem>>, vector<512x1xf32>
    %cst_7 = arith.constant 9.99999974E-6 : f32
    %14 = vector.broadcast %cst_7 : f32 to vector<512x1xf32>
    %15 = arith.addf %11, %14 : vector<512x1xf32>
    %16 = math.rsqrt %15 : vector<512x1xf32>
    %17 = arith.mulf %12, %16 : vector<512x1xf32>
    %18 = vector.broadcast %17 : vector<512x1xf32> to vector<512x196xf32>
    %19 = arith.mulf %6, %18 : vector<512x196xf32>
    %20 = vector.broadcast %13 : vector<512x1xf32> to vector<512x196xf32>
    %21 = arith.addf %19, %20 : vector<512x196xf32>
    %c0_8 = arith.constant 0 : index
    %c0_9 = arith.constant 0 : index
    %22 = vector.load %arg3[%c0_8, %c0_9] : memref<512x196xf32, #tpu.memory_space<vmem>>, vector<512x196xf32>
    tpu.vector_store %arg3[%c0_8, %c0_9], %21 {strides = array<i32>} : memref<512x196xf32, #tpu.memory_space<vmem>>, vector<512x196xf32>,
    return
  }
  func.func @transform_0(%arg0: i32) -> (i32, i32) {
    %c0_i32 = arith.constant 0 : i32
    %c0_i32_0 = arith.constant 0 : i32
    return %arg0, %c0_i32 : i32, i32
  }
  func.func @transform_1(%arg0: i32) -> (i32, i32) {
    %c0_i32 = arith.constant 0 : i32
    %c0_i32_0 = arith.constant 0 : i32
    return %arg0, %c0_i32 : i32, i32
  }
  func.func @transform_2(%arg0: i32) -> (i32, i32) {
    %c0_i32 = arith.constant 0 : i32
    %c0_i32_0 = arith.constant 0 : i32
    return %arg0, %c0_i32 : i32, i32
  }
}

</mosaic_0001>

<bundles_post_ra>
// kernel: tpu_custom_call.1
= control target key start
LH: loop header
LB: loop body
LE: loop exit
PB: predicated region body
PF: predicated region fallthrough
CT: control target
= control target key end

     0   :  { %vm139_vm0 = vcmask 556032   ;;  %s5287_s0 = inlined_call_operand.vmem [shape: f32[512,196], index: 0, kind: input, shape index: {}]   ;;  %s5288_s1 = inlined_call_operand.vmem [shape: f32[512,2], index: 1, kind: input, shape index: {}]   ;;  %s5289_s2 = inlined_call_operand.vmem [shape: f32[512,196], index: 2, kind: output, shape index: {}]  }
   0x1   :  { %v2507_v0 = vld [vmem:[%s5287_s0] sm:$0xff]  ;;  %v2512_v1 = vld [vmem:[%s5287_s0 + $0x8] sm:$0xff]  ;;  %v2529_v5 = vld [vmem:[%s5287_s0 + $0x10] sm:$0xff] }
   0x2   :  { %v2517_v2 = vld [vmem:[%s5287_s0 + $0x20] sm:$0xff]  ;;  %v140_v3 = vsel %vm139_vm0, %v2512_v1, 0.0  ;;  %v2524_v4 = vld [vmem:[%s5287_s0 + $0x28] sm:$0xff]  ;;  %v2534_v6 = vld [vmem:[%s5287_s0 + $0x18] sm:$0xff] }
   0x3   :  { %v141_v7 = vadd.f32 %v140_v3, %v2507_v0  ;;  %v148_v8 = vsel %vm139_vm0, %v2524_v4, 0.0  ;;  %v144_v9 = vsel %vm139_vm0, %v2534_v6, 0.0  ;;  %v2544_v10 = vld [vmem:[%s5287_s0 + $0x30] sm:$0xff]  ;;  %v2549_v11 = vld [vmem:[%s5287_s0 + $0x38] sm:$0xff]  ;;  %v2562_v15 = vld [vmem:[%s5287_s0 + $0x48] sm:$0xff] }
   0x4   :  { %v149_v12 = vadd.f32 %v148_v8, %v2517_v2  ;;  %v152_v13 = vsel %vm139_vm0, %v2549_v11, 0.0  ;;  %v2557_v14 = vld [vmem:[%s5287_s0 + $0x58] sm:$0xff]  ;;  %v145_v16 = vadd.f32 %v144_v9, %v2529_v5  ;;  %v2569_v18 = vld [vmem:[%s5287_s0 + $0x40] sm:$0xff]  ;;  %v156_v19 = vsel %vm139_vm0, %v2562_v15, 0.0  ;;  %v2576_v20 = vld [vmem:[%s5287_s0 + $0x50] sm:$0xff] }
   0x5   :  { %142 = vadd.xlane.f32.xlu0 %v141_v7  ;;  %v153_v17 = vadd.f32 %v152_v13, %v2544_v10  ;;  %v160_v21 = vsel %vm139_vm0, %v2557_v14, 0.0  ;;  %v2583_v22 = vld [vmem:[%s5287_s0 + $0x68] sm:$0xff]  ;;  %v2588_v23 = vld [vmem:[%s5287_s0 + $0x78] sm:$0xff]  ;;  %v157_v24 = vadd.f32 %v156_v19, %v2569_v18  ;;  %v2595_v26 = vld [vmem:[%s5287_s0 + $0x60] sm:$0xff] }
   0x6   :  { %150 = vadd.xlane.f32.xlu1 %v149_v12  ;;  %v161_v25 = vadd.f32 %v160_v21, %v2576_v20  ;;  %v164_v27 = vsel %vm139_vm0, %v2583_v22, 0.0  ;;  %v2602_v28 = vld [vmem:[%s5287_s0 + $0x70] sm:$0xff]  ;;  %v168_v29 = vsel %vm139_vm0, %v2588_v23, 0.0  ;;  %v2609_v30 = vld [vmem:[%s5287_s0 + $0x88] sm:$0xff]  ;;  %v2614_v31 = vld [vmem:[%s5287_s0 + $0x98] sm:$0xff] }
   0x7   :  { %v165_v32 = vadd.f32 %v164_v27, %v2595_v26  ;;  %v169_v33 = vadd.f32 %v168_v29, %v2602_v28  ;;  %v2621_v34 = vld [vmem:[%s5287_s0 + $0x80] sm:$0xff]  ;;  %v172_v35 = vsel %vm139_vm0, %v2609_v30, 0.0  ;;  %v2628_v36 = vld [vmem:[%s5287_s0 + $0x90] sm:$0xff]  ;;  %v176_v37 = vsel %vm139_vm0, %v2614_v31, 0.0  ;;  %v2635_v38 = vld [vmem:[%s5287_s0 + $0xa8] sm:$0xff] }
   0x8   :  { %v2640_v39 = vld [vmem:[%s5287_s0 + $0xb8] sm:$0xff]  ;;  %v173_v40 = vadd.f32 %v172_v35, %v2621_v34  ;;  %v177_v41 = vadd.f32 %v176_v37, %v2628_v36  ;;  %v2647_v42 = vld [vmem:[%s5287_s0 + $0xa0] sm:$0xff]  ;;  %v180_v43 = vsel %vm139_vm0, %v2635_v38, 0.0  ;;  %v2654_v44 = vld [vmem:[%s5287_s0 + $0xb0] sm:$0xff] }
   0x9   :  { %146 = vadd.xlane.f32.xlu0 %v145_v16  ;;  %v184_v45 = vsel %vm139_vm0, %v2640_v39, 0.0  ;;  %v2661_v46 = vld [vmem:[%s5287_s0 + $0xc8] sm:$0xff]  ;;  %v2666_v47 = vld [vmem:[%s5287_s0 + $0xd8] sm:$0xff]  ;;  %v181_v48 = vadd.f32 %v180_v43, %v2647_v42  ;;  %v2673_v50 = vld [vmem:[%s5287_s0 + $0xc0] sm:$0xff] }
   0xa   :  { %154 = vadd.xlane.f32.xlu1 %v153_v17  ;;  %v185_v49 = vadd.f32 %v184_v45, %v2654_v44  ;;  %v188_v51 = vsel %vm139_vm0, %v2661_v46, 0.0  ;;  %v2680_v52 = vld [vmem:[%s5287_s0 + $0xd0] sm:$0xff]  ;;  %v192_v53 = vsel %vm139_vm0, %v2666_v47, 0.0  ;;  %v2687_v54 = vld [vmem:[%s5287_s0 + $0xe8] sm:$0xff]  ;;  %v2692_v55 = vld [vmem:[%s5287_s0 + $0xf8] sm:$0xff] }
   0xb   :  { %v189_v56 = vadd.f32 %v188_v51, %v2673_v50  ;;  %v193_v57 = vadd.f32 %v192_v53, %v2680_v52  ;;  %v2699_v58 = vld [vmem:[%s5287_s0 + $0xe0] sm:$0xff]  ;;  %v196_v59 = vsel %vm139_vm0, %v2687_v54, 0.0  ;;  %v2706_v60 = vld [vmem:[%s5287_s0 + $0xf0] sm:$0xff]  ;;  %v200_v61 = vsel %vm139_vm0, %v2692_v55, 0.0  ;;  %v2713_v62 = vld [vmem:[%s5287_s0 + $0x108] sm:$0xff] }
   0xc   :  { %v2718_v63 = vld [vmem:[%s5287_s0 + $0x118] sm:$0xff]  ;;  %v197_v3 = vadd.f32 %v196_v59, %v2699_v58  ;;  %v201_v7 = vadd.f32 %v200_v61, %v2706_v60  ;;  %v2725_v8 = vld [vmem:[%s5287_s0 + $0x100] sm:$0xff]  ;;  %v204_v9 = vsel %vm139_vm0, %v2713_v62, 0.0  ;;  %v2732_v12 = vld [vmem:[%s5287_s0 + $0x110] sm:$0xff] }
   0xd   :  { %158 = vadd.xlane.f32.xlu0 %v157_v24  ;;  %v208_v13 = vsel %vm139_vm0, %v2718_v63, 0.0  ;;  %v2739_v16 = vld [vmem:[%s5287_s0 + $0x128] sm:$0xff]  ;;  %v2744_v17 = vld [vmem:[%s5287_s0 + $0x138] sm:$0xff]  ;;  %v205_v19 = vadd.f32 %v204_v9, %v2725_v8  ;;  %v2751_v24 = vld [vmem:[%s5287_s0 + $0x120] sm:$0xff] }
   0xe   :  { %162 = vadd.xlane.f32.xlu1 %v161_v25  ;;  %v209_v21 = vadd.f32 %v208_v13, %v2732_v12  ;;  %v212_v25 = vsel %vm139_vm0, %v2739_v16, 0.0  ;;  %v2758_v27 = vld [vmem:[%s5287_s0 + $0x130] sm:$0xff]  ;;  %v216_v29 = vsel %vm139_vm0, %v2744_v17, 0.0 }
   0xf   :  { %v213_v35 = vadd.f32 %v212_v25, %v2751_v24  ;;  %v217_v37 = vadd.f32 %v216_v29, %v2758_v27  ;;  %v2784_v43 = vld [vmem:[%s5287_s0 + $0x150] sm:$0xff] }
  0x10   :  { %v2810_v59 = vld [vmem:[%s5287_s0 + $0x170] sm:$0xff] }
  0x11   :  { %166 = vadd.xlane.f32.xlu0 %v165_v32  ;;  %v2765_v32 = vld [vmem:[%s5287_s0 + $0x148] sm:$0xff]  ;;  %v2836_v25 = vld [vmem:[%s5287_s0 + $0x190] sm:$0xff] }
  0x12   :  { %170 = vadd.xlane.f32.xlu1 %v169_v33  ;;  %v2770_v33 = vld [vmem:[%s5287_s0 + $0x158] sm:$0xff]  ;;  %5491 = vst [vmem:[#allocation5_spill] sm:$0xff] %v2836_v25 }
  0x13   :  { %v224_v45 = vsel %vm139_vm0, %v2770_v33, 0.0 }
  0x14   :  { %v225_v53 = vadd.f32 %v224_v45, %v2784_v43 }
  0x15   :  { %174 = vadd.xlane.f32.xlu0 %v173_v40  ;;  %v2777_v40 = vld [vmem:[%s5287_s0 + $0x140] sm:$0xff] }
  0x16   :  { %178 = vadd.xlane.f32.xlu1 %v177_v41  ;;  %v220_v41 = vsel %vm139_vm0, %v2765_v32, 0.0 }
  0x17   :  { %v221_v51 = vadd.f32 %v220_v41, %v2777_v40 }
  0x19   :  { %182 = vadd.xlane.f32.xlu0 %v181_v48  ;;  %v2791_v48 = vld [vmem:[%s5287_s0 + $0x168] sm:$0xff] }
  0x1a   :  { %186 = vadd.xlane.f32.xlu1 %v185_v49  ;;  %v2796_v49 = vld [vmem:[%s5287_s0 + $0x178] sm:$0xff] }
  0x1b   :  { %v232_v61 = vsel %vm139_vm0, %v2796_v49, 0.0 }
  0x1c   :  { %v233_v13 = vadd.f32 %v232_v61, %v2810_v59 }
  0x1d   :  { %190 = vadd.xlane.f32.xlu0 %v189_v56  ;;  %v2803_v56 = vld [vmem:[%s5287_s0 + $0x160] sm:$0xff] }
  0x1e   :  { %194 = vadd.xlane.f32.xlu1 %v193_v57  ;;  %v228_v57 = vsel %vm139_vm0, %v2791_v48, 0.0 }
  0x1f   :  { %v229_v9 = vadd.f32 %v228_v57, %v2803_v56  ;;  %v2862_v57 = vld [vmem:[%s5287_s0 + $0x1b0] sm:$0xff] }
  0x20   :  { %5495 = vst [vmem:[#allocation9_spill] sm:$0xff] %v2862_v57 }
  0x21   :  { %198 = vadd.xlane.f32.xlu0 %v197_v3  ;;  %v2817_v3 = vld [vmem:[%s5287_s0 + $0x188] sm:$0xff] }
  0x22   :  { %202 = vadd.xlane.f32.xlu1 %v201_v7  ;;  %5488 = vst [vmem:[#allocation2_spill] sm:$0xff] %v2817_v3  ;;  %v2822_v7 = vld [vmem:[%s5287_s0 + $0x198] sm:$0xff] }
  0x23   :  { %5489 = vst [vmem:[#allocation3_spill] sm:$0xff] %v2822_v7  ;;  %v240_v29 = vsel %vm139_vm0, %v2822_v7, 0.0  ;;  %v2888_v7 = vld [vmem:[%s5287_s0 + $0x1d0] sm:$0xff] }
  0x24   :  { %v241_v45 = vadd.f32 %v240_v29, %v2836_v25  ;;  %5499 = vst [vmem:[#allocation13_spill] sm:$0xff] %v2888_v7 }
  0x25   :  { %206 = vadd.xlane.f32.xlu0 %v205_v19  ;;  %v2829_v19 = vld [vmem:[%s5287_s0 + $0x180] sm:$0xff] }
  0x26   :  { %210 = vadd.xlane.f32.xlu1 %v209_v21  ;;  %5490 = vst [vmem:[#allocation4_spill] sm:$0xff] %v2829_v19  ;;  %v236_v21 = vsel %vm139_vm0, %v2817_v3, 0.0  ;;  %v116_v3 = vld [vmem:[%s5287_s0 + $0x348] sm:$0xff] }
  0x27   :  { %v237_v41 = vadd.f32 %v236_v21, %v2829_v19 }
  0x29   :  { %214 = vadd.xlane.f32.xlu0 %v213_v35  ;;  %v2843_v35 = vld [vmem:[%s5287_s0 + $0x1a8] sm:$0xff] }
  0x2a   :  { %218 = vadd.xlane.f32.xlu1 %v217_v37  ;;  %5492 = vst [vmem:[#allocation6_spill] sm:$0xff] %v2843_v35  ;;  %v2848_v37 = vld [vmem:[%s5287_s0 + $0x1b8] sm:$0xff] }
  0x2b   :  { %5493 = vst [vmem:[#allocation7_spill] sm:$0xff] %v2848_v37  ;;  %v248_v61 = vsel %vm139_vm0, %v2848_v37, 0.0  ;;  %v2881_v37 = vld [vmem:[%s5287_s0 + $0x1c0] sm:$0xff] }
  0x2c   :  { %v249_v29 = vadd.f32 %v248_v61, %v2862_v57  ;;  %5498 = vst [vmem:[#allocation12_spill] sm:$0xff] %v2881_v37 }
  0x2d   :  { %222 = vadd.xlane.f32.xlu0 %v221_v51  ;;  %v2855_v51 = vld [vmem:[%s5287_s0 + $0x1a0] sm:$0xff] }
  0x2e   :  { %226 = vadd.xlane.f32.xlu1 %v225_v53  ;;  %5494 = vst [vmem:[#allocation8_spill] sm:$0xff] %v2855_v51  ;;  %v244_v53 = vsel %vm139_vm0, %v2843_v35, 0.0 }
  0x2f   :  { %v245_v21 = vadd.f32 %v244_v53, %v2855_v51  ;;  %v2900_v53 = vld [vmem:[%s5287_s0 + $0x1f8] sm:$0xff]  ;;  %v2914_v51 = vld [vmem:[%s5287_s0 + $0x1f0] sm:$0xff] }
  0x30   :  { %5501 = vst [vmem:[#allocation15_spill] sm:$0xff] %v2900_v53  ;;  %5503 = vst [vmem:[#allocation17_spill] sm:$0xff] %v2914_v51 }
  0x31   :  { %230 = vadd.xlane.f32.xlu0 %v229_v9  ;;  %v2869_v9 = vld [vmem:[%s5287_s0 + $0x1c8] sm:$0xff] }
  0x32   :  { %234 = vadd.xlane.f32.xlu1 %v233_v13  ;;  %5496 = vst [vmem:[#allocation10_spill] sm:$0xff] %v2869_v9  ;;  %v2874_v13 = vld [vmem:[%s5287_s0 + $0x1d8] sm:$0xff]  ;;  %v252_v35 = vsel %vm139_vm0, %v2869_v9, 0.0 }
  0x33   :  { %5497 = vst [vmem:[#allocation11_spill] sm:$0xff] %v2874_v13  ;;  %v253_v61 = vadd.f32 %v252_v35, %v2881_v37  ;;  %v2921_v35 = vld [vmem:[%s5287_s0 + $0x208] sm:$0xff]  ;;  %v2940_v37 = vld [vmem:[%s5287_s0 + $0x210] sm:$0xff] }
  0x34   :  { %5504 = vst [vmem:[#allocation18_spill] sm:$0xff] %v2921_v35  ;;  %5507 = vst [vmem:[#allocation21_spill] sm:$0xff] %v2940_v37 }
  0x35   :  { %238 = vadd.xlane.f32.xlu0 %v237_v41  ;;  %v256_v41 = vsel %vm139_vm0, %v2874_v13, 0.0  ;;  %v2907_v13 = vld [vmem:[%s5287_s0 + $0x1e0] sm:$0xff] }
  0x36   :  { %242 = vadd.xlane.f32.xlu1 %v241_v45  ;;  %v2895_v45 = vld [vmem:[%s5287_s0 + $0x1e8] sm:$0xff]  ;;  %v257_v9 = vadd.f32 %v256_v41, %v2888_v7  ;;  %5502 = vst [vmem:[#allocation16_spill] sm:$0xff] %v2907_v13  ;;  %v268_v7 = vsel %vm139_vm0, %v2921_v35, 0.0 }
  0x37   :  { %5500 = vst [vmem:[#allocation14_spill] sm:$0xff] %v2895_v45  ;;  %v260_v57 = vsel %vm139_vm0, %v2895_v45, 0.0 }
  0x38   :  { %v261_v41 = vadd.f32 %v260_v57, %v2907_v13  ;;  %v2947_v57 = vld [vmem:[%s5287_s0 + $0x228] sm:$0xff]  ;;  %v2966_v13 = vld [vmem:[%s5287_s0 + $0x230] sm:$0xff] }
  0x39   :  { %246 = vadd.xlane.f32.xlu0 %v245_v21  ;;  %v264_v21 = vsel %vm139_vm0, %v2900_v53, 0.0  ;;  %v2933_v53 = vld [vmem:[%s5287_s0 + $0x200] sm:$0xff]  ;;  %5508 = vst [vmem:[#allocation22_spill] sm:$0xff] %v2947_v57  ;;  %5511 = vst [vmem:[#allocation25_spill] sm:$0xff] %v2966_v13 }
  0x3a   :  { %250 = vadd.xlane.f32.xlu1 %v249_v29  ;;  %v2926_v29 = vld [vmem:[%s5287_s0 + $0x218] sm:$0xff]  ;;  %v265_v45 = vadd.f32 %v264_v21, %v2914_v51  ;;  %5506 = vst [vmem:[#allocation20_spill] sm:$0xff] %v2933_v53  ;;  %v269_v21 = vadd.f32 %v268_v7, %v2933_v53  ;;  %v276_v51 = vsel %vm139_vm0, %v2947_v57, 0.0  ;;  %v2973_v7 = vld [vmem:[%s5287_s0 + $0x248] sm:$0xff]  ;;  %v2992_v53 = vld [vmem:[%s5287_s0 + $0x250] sm:$0xff] }
  0x3b   :  { %5505 = vst [vmem:[#allocation19_spill] sm:$0xff] %v2926_v29  ;;  %5512 = vst [vmem:[#allocation26_spill] sm:$0xff] %v2973_v7 }
  0x3c   :  { %5515 = vst [vmem:[#allocation29_spill] sm:$0xff] %v2992_v53 }
  0x3d   :  { %254 = vadd.xlane.f32.xlu0 %v253_v61  ;;  %v272_v61 = vsel %vm139_vm0, %v2926_v29, 0.0  ;;  %v2959_v29 = vld [vmem:[%s5287_s0 + $0x220] sm:$0xff] }
  0x3e   :  { %258 = vadd.xlane.f32.xlu1 %v257_v9  ;;  %v2952_v9 = vld [vmem:[%s5287_s0 + $0x238] sm:$0xff]  ;;  %v273_v35 = vadd.f32 %v272_v61, %v2940_v37  ;;  %5510 = vst [vmem:[#allocation24_spill] sm:$0xff] %v2959_v29  ;;  %v277_v61 = vadd.f32 %v276_v51, %v2959_v29  ;;  %v284_v37 = vsel %vm139_vm0, %v2973_v7, 0.0  ;;  %v2999_v51 = vld [vmem:[%s5287_s0 + $0x268] sm:$0xff]  ;;  %v3018_v29 = vld [vmem:[%s5287_s0 + $0x270] sm:$0xff] }
  0x3f   :  { %5509 = vst [vmem:[#allocation23_spill] sm:$0xff] %v2952_v9  ;;  %5516 = vst [vmem:[#allocation30_spill] sm:$0xff] %v2999_v51 }
  0x40   :  { %5519 = vst [vmem:[#allocation33_spill] sm:$0xff] %v3018_v29 }
  0x41   :  { %262 = vadd.xlane.f32.xlu0 %v261_v41  ;;  %v280_v41 = vsel %vm139_vm0, %v2952_v9, 0.0  ;;  %v2985_v9 = vld [vmem:[%s5287_s0 + $0x240] sm:$0xff] }
  0x42   :  { %266 = vadd.xlane.f32.xlu1 %v265_v45  ;;  %v2978_v45 = vld [vmem:[%s5287_s0 + $0x258] sm:$0xff]  ;;  %v281_v57 = vadd.f32 %v280_v41, %v2966_v13  ;;  %5514 = vst [vmem:[#allocation28_spill] sm:$0xff] %v2985_v9  ;;  %v285_v41 = vadd.f32 %v284_v37, %v2985_v9  ;;  %v292_v13 = vsel %vm139_vm0, %v2999_v51, 0.0  ;;  %v3025_v37 = vld [vmem:[%s5287_s0 + $0x288] sm:$0xff]  ;;  %v3044_v9 = vld [vmem:[%s5287_s0 + $0x290] sm:$0xff] }
  0x43   :  { %5513 = vst [vmem:[#allocation27_spill] sm:$0xff] %v2978_v45  ;;  %5520 = vst [vmem:[#allocation34_spill] sm:$0xff] %v3025_v37 }
  0x44   :  { %5523 = vst [vmem:[#allocation37_spill] sm:$0xff] %v3044_v9 }
  0x45   :  { %270 = vadd.xlane.f32.xlu0 %v269_v21  ;;  %v288_v21 = vsel %vm139_vm0, %v2978_v45, 0.0  ;;  %v3011_v45 = vld [vmem:[%s5287_s0 + $0x260] sm:$0xff] }
  0x46   :  { %274 = vadd.xlane.f32.xlu1 %v273_v35  ;;  %v3004_v35 = vld [vmem:[%s5287_s0 + $0x278] sm:$0xff]  ;;  %v289_v7 = vadd.f32 %v288_v21, %v2992_v53  ;;  %5518 = vst [vmem:[#allocation32_spill] sm:$0xff] %v3011_v45  ;;  %v293_v21 = vadd.f32 %v292_v13, %v3011_v45  ;;  %v300_v53 = vsel %vm139_vm0, %v3025_v37, 0.0  ;;  %v3051_v13 = vld [vmem:[%s5287_s0 + $0x2a8] sm:$0xff]  ;;  %v3070_v45 = vld [vmem:[%s5287_s0 + $0x2b0] sm:$0xff] }
  0x47   :  { %5517 = vst [vmem:[#allocation31_spill] sm:$0xff] %v3004_v35  ;;  %5524 = vst [vmem:[#allocation38_spill] sm:$0xff] %v3051_v13 }
  0x48   :  { %5527 = vst [vmem:[#allocation41_spill] sm:$0xff] %v3070_v45 }
  0x49   :  { %278 = vadd.xlane.f32.xlu0 %v277_v61  ;;  %v296_v61 = vsel %vm139_vm0, %v3004_v35, 0.0  ;;  %v3037_v35 = vld [vmem:[%s5287_s0 + $0x280] sm:$0xff] }
  0x4a   :  { %282 = vadd.xlane.f32.xlu1 %v281_v57  ;;  %v3030_v57 = vld [vmem:[%s5287_s0 + $0x298] sm:$0xff]  ;;  %v297_v51 = vadd.f32 %v296_v61, %v3018_v29  ;;  %5522 = vst [vmem:[#allocation36_spill] sm:$0xff] %v3037_v35  ;;  %v301_v61 = vadd.f32 %v300_v53, %v3037_v35  ;;  %v308_v29 = vsel %vm139_vm0, %v3051_v13, 0.0  ;;  %v3077_v53 = vld [vmem:[%s5287_s0 + $0x2c8] sm:$0xff]  ;;  %v3096_v35 = vld [vmem:[%s5287_s0 + $0x2d0] sm:$0xff] }
  0x4b   :  { %5521 = vst [vmem:[#allocation35_spill] sm:$0xff] %v3030_v57  ;;  %5528 = vst [vmem:[#allocation42_spill] sm:$0xff] %v3077_v53 }
  0x4c   :  { %5531 = vst [vmem:[#allocation45_spill] sm:$0xff] %v3096_v35 }
  0x4d   :  { %286 = vadd.xlane.f32.xlu0 %v285_v41  ;;  %v304_v41 = vsel %vm139_vm0, %v3030_v57, 0.0  ;;  %v3063_v57 = vld [vmem:[%s5287_s0 + $0x2a0] sm:$0xff] }
  0x4e   :  { %290 = vadd.xlane.f32.xlu1 %v289_v7  ;;  %v3056_v7 = vld [vmem:[%s5287_s0 + $0x2b8] sm:$0xff]  ;;  %v305_v37 = vadd.f32 %v304_v41, %v3044_v9  ;;  %5526 = vst [vmem:[#allocation40_spill] sm:$0xff] %v3063_v57  ;;  %v309_v41 = vadd.f32 %v308_v29, %v3063_v57  ;;  %v316_v9 = vsel %vm139_vm0, %v3077_v53, 0.0  ;;  %v3103_v29 = vld [vmem:[%s5287_s0 + $0x2e8] sm:$0xff]  ;;  %v3120_v57 = vld [vmem:[%s5287_s0 + $0x2f0] sm:$0xff] }
  0x4f   :  { %5525 = vst [vmem:[#allocation39_spill] sm:$0xff] %v3056_v7  ;;  %5532 = vst [vmem:[#allocation46_spill] sm:$0xff] %v3103_v29 }
  0x50   :  { %5534 = vst [vmem:[#allocation48_spill] sm:$0xff] %v3120_v57 }
  0x51   :  { %294 = vadd.xlane.f32.xlu0 %v293_v21  ;;  %v312_v21 = vsel %vm139_vm0, %v3056_v7, 0.0  ;;  %v3089_v7 = vld [vmem:[%s5287_s0 + $0x2c0] sm:$0xff] }
  0x52   :  { %298 = vadd.xlane.f32.xlu1 %v297_v51  ;;  %v3082_v51 = vld [vmem:[%s5287_s0 + $0x2d8] sm:$0xff]  ;;  %v313_v13 = vadd.f32 %v312_v21, %v3070_v45  ;;  %5530 = vst [vmem:[#allocation44_spill] sm:$0xff] %v3089_v7  ;;  %v317_v21 = vadd.f32 %v316_v9, %v3089_v7  ;;  %v3113_v45 = vld [vmem:[%s5287_s0 + $0x2e0] sm:$0xff]  ;;  %v108_v9 = vld [vmem:[%s5287_s0 + $0x308] sm:$0xff] }
  0x53   :  { %5529 = vst [vmem:[#allocation43_spill] sm:$0xff] %v3082_v51  ;;  %5533 = vst [vmem:[#allocation47_spill] sm:$0xff] %v3113_v45  ;;  %v109_v7 = vld [vmem:[%s5287_s0 + $0x310] sm:$0xff] }
  0x55   :  { %302 = vadd.xlane.f32.xlu0 %v301_v61  ;;  %v320_v61 = vsel %vm139_vm0, %v3082_v51, 0.0  ;;  %v324_v51 = vsel %vm139_vm0, %v3103_v29, 0.0 }
  0x56   :  { %306 = vadd.xlane.f32.xlu1 %v305_v37  ;;  %v106_v37 = vld [vmem:[%s5287_s0 + $0x2f8] sm:$0xff]  ;;  %v321_v53 = vadd.f32 %v320_v61, %v3096_v35  ;;  %v325_v61 = vadd.f32 %v324_v51, %v3113_v45  ;;  %v107_v35 = vld [vmem:[%s5287_s0 + $0x300] sm:$0xff] }
  0x59   :  { %310 = vadd.xlane.f32.xlu0 %v309_v41  ;;  %v328_v41 = vsel %vm139_vm0, %v106_v37, 0.0  ;;  %v332_v37 = vsel %vm139_vm0, %v108_v9, 0.0  ;;  %v111_v9 = vld [vmem:[%s5287_s0 + $0x320] sm:$0xff] }
  0x5a   :  { %314 = vadd.xlane.f32.xlu1 %v313_v13  ;;  %v110_v13 = vld [vmem:[%s5287_s0 + $0x318] sm:$0xff]  ;;  %v329_v29 = vadd.f32 %v328_v41, %v3120_v57  ;;  %v333_v51 = vadd.f32 %v332_v37, %v107_v35  ;;  %v117_v37 = vld [vmem:[%s5287_s0 + $0x350] sm:$0xff] }
  0x5b   :  { %v336_v25 = vsel %vm139_vm0, %v110_v13, 0.0  ;;  %v113_v13 = vld [vmem:[%s5287_s0 + $0x330] sm:$0xff] }
  0x5c   :  { %v337_v41 = vadd.f32 %v336_v25, %v109_v7  ;;  %v118_v25 = vld [vmem:[%s5287_s0 + $0x358] sm:$0xff] }
  0x5d   :  { %318 = vadd.xlane.f32.xlu0 %v317_v21  ;;  %v112_v21 = vld [vmem:[%s5287_s0 + $0x328] sm:$0xff] }
  0x5e   :  { %322 = vadd.xlane.f32.xlu1 %v321_v53  ;;  %v114_v53 = vld [vmem:[%s5287_s0 + $0x338] sm:$0xff]  ;;  %v340_v57 = vsel %vm139_vm0, %v112_v21, 0.0  ;;  %v352_v21 = vsel %vm139_vm0, %v118_v25, 0.0  ;;  %v124_v25 = vld [vmem:[%s5287_s0 + $0x388] sm:$0xff] }
  0x5f   :  { %v344_v45 = vsel %vm139_vm0, %v114_v53, 0.0  ;;  %v341_v35 = vadd.f32 %v340_v57, %v111_v9  ;;  %v120_v53 = vld [vmem:[%s5287_s0 + $0x368] sm:$0xff]  ;;  %v121_v9 = vld [vmem:[%s5287_s0 + $0x370] sm:$0xff] }
  0x60   :  { %v345_v7 = vadd.f32 %v344_v45, %v113_v13  ;;  %v122_v45 = vld [vmem:[%s5287_s0 + $0x378] sm:$0xff] }
  0x61   :  { %326 = vadd.xlane.f32.xlu0 %v325_v61  ;;  %v348_v61 = vsel %vm139_vm0, %v116_v3, 0.0  ;;  %v119_v3 = vld [vmem:[%s5287_s0 + $0x360] sm:$0xff]  ;;  %v360_v13 = vsel %vm139_vm0, %v122_v45, 0.0  ;;  %v128_v45 = vld [vmem:[%s5287_s0 + $0x3a8] sm:$0xff] }
  0x62   :  { %330 = vadd.xlane.f32.xlu1 %v329_v29  ;;  %v115_v29 = vld [vmem:[%s5287_s0 + $0x340] sm:$0xff] }
  0x63   :  { %v349_v57 = vadd.f32 %v348_v61, %v115_v29  ;;  %v361_v29 = vadd.f32 %v360_v13, %v121_v9  ;;  %v123_v61 = vld [vmem:[%s5287_s0 + $0x380] sm:$0xff]  ;;  %v372_v9 = vsel %vm139_vm0, %v128_v45, 0.0  ;;  %v129_v13 = vld [vmem:[%s5287_s0 + $0x3b0] sm:$0xff] }
  0x65   :  { %334 = vadd.xlane.f32.xlu0 %v333_v51  ;;  %v353_v51 = vadd.f32 %v352_v21, %v117_v37  ;;  %v364_v37 = vsel %vm139_vm0, %v124_v25, 0.0  ;;  %v125_v21 = vld [vmem:[%s5287_s0 + $0x390] sm:$0xff] }
  0x66   :  { %338 = vadd.xlane.f32.xlu1 %v337_v41  ;;  %v356_v41 = vsel %vm139_vm0, %v120_v53, 0.0 }
  0x69   :  { %342 = vadd.xlane.f32.xlu0 %v341_v35  ;;  %v126_v35 = vld [vmem:[%s5287_s0 + $0x398] sm:$0xff] }
  0x6a   :  { %346 = vadd.xlane.f32.xlu1 %v345_v7  ;;  %v357_v7 = vadd.f32 %v356_v41, %v119_v3  ;;  %v368_v53 = vsel %vm139_vm0, %v126_v35, 0.0  ;;  %v127_v41 = vld [vmem:[%s5287_s0 + $0x3a0] sm:$0xff]  ;;  %v132_v35 = vld [vmem:[%s5287_s0 + $0x3c8] sm:$0xff] }
  0x6b   :  { %v369_v3 = vadd.f32 %v368_v53, %v125_v21  ;;  %v380_v21 = vsel %vm139_vm0, %v132_v35, 0.0  ;;  %v133_v53 = vld [vmem:[%s5287_s0 + $0x3d0] sm:$0xff] }
  0x6d   :  { %350 = vadd.xlane.f32.xlu0 %v349_v57  ;;  %v130_v57 = vld [vmem:[%s5287_s0 + $0x3b8] sm:$0xff] }
  0x6e   :  { %354 = vadd.xlane.f32.xlu1 %v353_v51  ;;  %v365_v51 = vadd.f32 %v364_v37, %v123_v61  ;;  %v376_v25 = vsel %vm139_vm0, %v130_v57, 0.0  ;;  %v131_v37 = vld [vmem:[%s5287_s0 + $0x3c0] sm:$0xff]  ;;  %v136_v57 = vld [vmem:[%s5287_s0 + $0x3e8] sm:$0xff] }
  0x6f   :  { %v377_v61 = vadd.f32 %v376_v25, %v129_v13  ;;  %v388_v13 = vsel %vm139_vm0, %v136_v57, 0.0  ;;  %v137_v25 = vld [vmem:[%s5287_s0 + $0x3f0] sm:$0xff] }
  0x71   :  { %358 = vadd.xlane.f32.xlu0 %v357_v7  ;;  %v134_v7 = vld [vmem:[%s5287_s0 + $0x3d8] sm:$0xff] }
  0x72   :  { %362 = vadd.xlane.f32.xlu1 %v361_v29  ;;  %v373_v29 = vadd.f32 %v372_v9, %v127_v41  ;;  %v384_v45 = vsel %vm139_vm0, %v134_v7, 0.0  ;;  %v135_v9 = vld [vmem:[%s5287_s0 + $0x3e0] sm:$0xff] }
  0x73   :  { %v385_v41 = vadd.f32 %v384_v45, %v133_v53  ;;  %v389_v7 = vadd.f32 %v388_v13, %v135_v9 }
  0x75   :  { %366 = vadd.xlane.f32.xlu0 %v365_v51  ;;  %v138_v51 = vld [vmem:[%s5287_s0 + $0x3f8] sm:$0xff] }
  0x76   :  { %370 = vadd.xlane.f32.xlu1 %v369_v3  ;;  %v381_v3 = vadd.f32 %v380_v21, %v131_v37  ;;  %v392_v35 = vsel %vm139_vm0, %v138_v51, 0.0 }
  0x77   :  { %v393_v19 = vadd.f32 %v392_v35, %v137_v25 }
  0x79   :  { %374 = vadd.xlane.f32.xlu0 %v373_v29 }
  0x7a   :  { %378 = vadd.xlane.f32.xlu1 %v377_v61 }
  0x7d   :  { %382 = vadd.xlane.f32.xlu0 %v381_v3 }
  0x7e   :  { %386 = vadd.xlane.f32.xlu1 %v385_v41 }
  0x81   :  { %390 = vadd.xlane.f32.xlu0 %v389_v7 }
  0x82   :  { %394 = vadd.xlane.f32.xlu1 %v393_v19 }
  0x92   :  { %v143_v29 = vpop.xlane.xlu0 %142 }
  0x93   :  { %v396_v61 = vmul.f32 0.0051020407, %v143_v29  ;;  %v151_v37 = vpop.xlane.xlu1 %150 }
  0x94   :  { %v398_v21 = vmul.f32 0.0051020407, %v151_v37 }
  0x95   :  { %v3238_v53 = vsub.f32 %v2507_v0, %v396_v61  ;;  %v3241_v45 = vsub.f32 %v2512_v1, %v396_v61 }
  0x96   :  { %v3244_v57 = vsub.f32 %v2517_v2, %v398_v21  ;;  %v3247_v51 = vsub.f32 %v2524_v4, %v398_v21  ;;  %v147_v3 = vpop.xlane.xlu0 %146 }
  0x97   :  { %5535 = vst [vmem:[#allocation49_spill] sm:$0xff] %v3238_v53  ;;  %5536 = vst [vmem:[#allocation50_spill] sm:$0xff] %v3241_v45  ;;  %v397_v41 = vmul.f32 0.0051020407, %v147_v3  ;;  %v155_v9 = vpop.xlane.xlu1 %154  ;;  %v588_v19 = vmul.f32 %v3238_v53, %v3238_v53  ;;  %v589_v13 = vmul.f32 %v3241_v45, %v3241_v45 }
  0x98   :  { %5537 = vst [vmem:[#allocation51_spill] sm:$0xff] %v3244_v57  ;;  %5538 = vst [vmem:[#allocation52_spill] sm:$0xff] %v3247_v51  ;;  %v399_v0 = vmul.f32 0.0051020407, %v155_v9  ;;  %v592_v1 = vmul.f32 %v3244_v57, %v3244_v57  ;;  %v593_v2 = vmul.f32 %v3247_v51, %v3247_v51 }
  0x99   :  { %v3258_v25 = vsub.f32 %v2529_v5, %v397_v41  ;;  %v3261_v4 = vsub.f32 %v2534_v6, %v397_v41  ;;  %v716_v35 = vsel %vm139_vm0, %v589_v13, 0.0 }
  0x9a   :  { %v3265_v7 = vsub.f32 %v2544_v10, %v399_v0  ;;  %v3268_v29 = vsub.f32 %v2549_v11, %v399_v0  ;;  %v717_v61 = vadd.f32 %v716_v35, %v588_v19  ;;  %v159_v37 = vpop.xlane.xlu0 %158  ;;  %v724_v21 = vsel %vm139_vm0, %v593_v2, 0.0 }
  0x9b   :  { %5539 = vst [vmem:[#allocation53_spill] sm:$0xff] %v3258_v25  ;;  %5540 = vst [vmem:[#allocation54_spill] sm:$0xff] %v3261_v4  ;;  %v163_v3 = vpop.xlane.xlu1 %162  ;;  %v590_v5 = vmul.f32 %v3258_v25, %v3258_v25  ;;  %v591_v6 = vmul.f32 %v3261_v4, %v3261_v4  ;;  %v400_v41 = vmul.f32 0.0051020407, %v159_v37  ;;  %v725_v13 = vadd.f32 %v724_v21, %v592_v1 }
  0x9c   :  { %5541 = vst [vmem:[#allocation55_spill] sm:$0xff] %v3265_v7  ;;  %5542 = vst [vmem:[#allocation56_spill] sm:$0xff] %v3268_v29  ;;  %718 = vadd.xlane.f32.xlu0 %v717_v61  ;;  %v401_v9 = vmul.f32 0.0051020407, %v163_v3  ;;  %v594_v10 = vmul.f32 %v3265_v7, %v3265_v7  ;;  %v595_v11 = vmul.f32 %v3268_v29, %v3268_v29 }
  0x9d   :  { %v720_v19 = vsel %vm139_vm0, %v591_v6, 0.0  ;;  %v3281_v0 = vsub.f32 %v2569_v18, %v400_v41  ;;  %v3284_v2 = vsub.f32 %v2562_v15, %v400_v41 }
  0x9e   :  { %v3287_v35 = vsub.f32 %v2576_v20, %v401_v9  ;;  %v3290_v61 = vsub.f32 %v2557_v14, %v401_v9  ;;  %v721_v1 = vadd.f32 %v720_v19, %v590_v5  ;;  %v728_v37 = vsel %vm139_vm0, %v595_v11, 0.0  ;;  %v167_v21 = vpop.xlane.xlu0 %166 }
  0x9f   :  { %5543 = vst [vmem:[#allocation57_spill] sm:$0xff] %v3281_v0  ;;  %5544 = vst [vmem:[#allocation58_spill] sm:$0xff] %v3284_v2  ;;  %v171_v3 = vpop.xlane.xlu1 %170  ;;  %v402_v29 = vmul.f32 0.0051020407, %v167_v21  ;;  %v596_v6 = vmul.f32 %v3281_v0, %v3281_v0  ;;  %v597_v18 = vmul.f32 %v3284_v2, %v3284_v2  ;;  %v729_v20 = vadd.f32 %v728_v37, %v594_v10 }
  0xa0   :  { %5545 = vst [vmem:[#allocation59_spill] sm:$0xff] %v3287_v35  ;;  %5546 = vst [vmem:[#allocation60_spill] sm:$0xff] %v3290_v61  ;;  %722 = vadd.xlane.f32.xlu1 %v721_v1  ;;  %v403_v15 = vmul.f32 0.0051020407, %v171_v3  ;;  %726 = vadd.xlane.f32.xlu0 %v725_v13  ;;  %v598_v14 = vmul.f32 %v3287_v35, %v3287_v35  ;;  %v599_v5 = vmul.f32 %v3290_v61, %v3290_v61 }
  0xa1   :  { %v3302_v41 = vsub.f32 %v2595_v26, %v402_v29  ;;  %v3305_v9 = vsub.f32 %v2583_v22, %v402_v29  ;;  %v732_v11 = vsel %vm139_vm0, %v597_v18, 0.0 }
  0xa2   :  { %v3309_v19 = vsub.f32 %v2602_v28, %v403_v15  ;;  %v3312_v13 = vsub.f32 %v2588_v23, %v403_v15  ;;  %v736_v10 = vsel %vm139_vm0, %v599_v5, 0.0  ;;  %v733_v1 = vadd.f32 %v732_v11, %v596_v6  ;;  %v175_v37 = vpop.xlane.xlu0 %174 }
  0xa3   :  { %5547 = vst [vmem:[#allocation61_spill] sm:$0xff] %v3302_v41  ;;  %5548 = vst [vmem:[#allocation62_spill] sm:$0xff] %v3305_v9  ;;  %v179_v21 = vpop.xlane.xlu1 %178  ;;  %v404_v3 = vmul.f32 0.0051020407, %v175_v37  ;;  %v600_v26 = vmul.f32 %v3302_v41, %v3302_v41  ;;  %v601_v22 = vmul.f32 %v3305_v9, %v3305_v9  ;;  %v737_v18 = vadd.f32 %v736_v10, %v598_v14 }
  0xa4   :  { %5549 = vst [vmem:[#allocation63_spill] sm:$0xff] %v3309_v19  ;;  %5550 = vst [vmem:[#allocation64_spill] sm:$0xff] %v3312_v13  ;;  %730 = vadd.xlane.f32.xlu1 %v729_v20  ;;  %v405_v29 = vmul.f32 0.0051020407, %v179_v21  ;;  %734 = vadd.xlane.f32.xlu0 %v733_v1  ;;  %v602_v23 = vmul.f32 %v3309_v19, %v3309_v19  ;;  %v603_v28 = vmul.f32 %v3312_v13, %v3312_v13 }
  0xa5   :  { %v3324_v6 = vsub.f32 %v2621_v34, %v404_v3  ;;  %v3327_v15 = vsub.f32 %v2609_v30, %v404_v3  ;;  %v740_v5 = vsel %vm139_vm0, %v601_v22, 0.0 }
  0xa6   :  { %v3331_v11 = vsub.f32 %v2628_v36, %v405_v29  ;;  %v3334_v20 = vsub.f32 %v2614_v31, %v405_v29  ;;  %v744_v14 = vsel %vm139_vm0, %v603_v28, 0.0  ;;  %v741_v10 = vadd.f32 %v740_v5, %v600_v26  ;;  %v183_v1 = vpop.xlane.xlu0 %182 }
  0xa7   :  { %5551 = vst [vmem:[#allocation65_spill] sm:$0xff] %v3324_v6  ;;  %5552 = vst [vmem:[#allocation66_spill] sm:$0xff] %v3327_v15  ;;  %v187_v37 = vpop.xlane.xlu1 %186  ;;  %v406_v21 = vmul.f32 0.0051020407, %v183_v1  ;;  %v604_v34 = vmul.f32 %v3324_v6, %v3324_v6  ;;  %v605_v30 = vmul.f32 %v3327_v15, %v3327_v15  ;;  %v745_v22 = vadd.f32 %v744_v14, %v602_v23 }
  0xa8   :  { %5553 = vst [vmem:[#allocation67_spill] sm:$0xff] %v3331_v11  ;;  %5554 = vst [vmem:[#allocation68_spill] sm:$0xff] %v3334_v20  ;;  %738 = vadd.xlane.f32.xlu1 %v737_v18  ;;  %v407_v3 = vmul.f32 0.0051020407, %v187_v37  ;;  %v606_v36 = vmul.f32 %v3331_v11, %v3331_v11  ;;  %v607_v31 = vmul.f32 %v3334_v20, %v3334_v20  ;;  %742 = vadd.xlane.f32.xlu0 %v741_v10 }
  0xa9   :  { %v3346_v26 = vsub.f32 %v2647_v42, %v406_v21  ;;  %v3349_v29 = vsub.f32 %v2635_v38, %v406_v21  ;;  %v748_v28 = vsel %vm139_vm0, %v605_v30, 0.0 }
  0xaa   :  { %v3353_v5 = vsub.f32 %v2654_v44, %v407_v3  ;;  %v3356_v18 = vsub.f32 %v2640_v39, %v407_v3  ;;  %v752_v23 = vsel %vm139_vm0, %v607_v31, 0.0  ;;  %v191_v14 = vpop.xlane.xlu0 %190  ;;  %v749_v1 = vadd.f32 %v748_v28, %v604_v34 }
  0xab   :  { %5555 = vst [vmem:[#allocation69_spill] sm:$0xff] %v3346_v26  ;;  %5556 = vst [vmem:[#allocation70_spill] sm:$0xff] %v3349_v29  ;;  %v195_v37 = vpop.xlane.xlu1 %194  ;;  %v408_v10 = vmul.f32 0.0051020407, %v191_v14  ;;  %v608_v42 = vmul.f32 %v3346_v26, %v3346_v26  ;;  %v609_v38 = vmul.f32 %v3349_v29, %v3349_v29  ;;  %v753_v30 = vadd.f32 %v752_v23, %v606_v36 }
  0xac   :  { %5557 = vst [vmem:[#allocation71_spill] sm:$0xff] %v3353_v5  ;;  %5558 = vst [vmem:[#allocation72_spill] sm:$0xff] %v3356_v18  ;;  %746 = vadd.xlane.f32.xlu1 %v745_v22  ;;  %v409_v21 = vmul.f32 0.0051020407, %v195_v37  ;;  %v610_v44 = vmul.f32 %v3353_v5, %v3353_v5  ;;  %v611_v39 = vmul.f32 %v3356_v18, %v3356_v18  ;;  %750 = vadd.xlane.f32.xlu0 %v749_v1 }
  0xad   :  { %v3368_v34 = vsub.f32 %v2673_v50, %v408_v10  ;;  %v3371_v3 = vsub.f32 %v2661_v46, %v408_v10  ;;  %v756_v31 = vsel %vm139_vm0, %v609_v38, 0.0 }
  0xae   :  { %v3375_v28 = vsub.f32 %v2680_v52, %v409_v21  ;;  %v3378_v22 = vsub.f32 %v2666_v47, %v409_v21  ;;  %v760_v36 = vsel %vm139_vm0, %v611_v39, 0.0  ;;  %v199_v23 = vpop.xlane.xlu0 %198  ;;  %v757_v14 = vadd.f32 %v756_v31, %v608_v42 }
  0xaf   :  { %5559 = vst [vmem:[#allocation73_spill] sm:$0xff] %v3368_v34  ;;  %5560 = vst [vmem:[#allocation74_spill] sm:$0xff] %v3371_v3  ;;  %v203_v37 = vpop.xlane.xlu1 %202  ;;  %v410_v1 = vmul.f32 0.0051020407, %v199_v23  ;;  %v612_v50 = vmul.f32 %v3368_v34, %v3368_v34  ;;  %v613_v46 = vmul.f32 %v3371_v3, %v3371_v3  ;;  %v761_v38 = vadd.f32 %v760_v36, %v610_v44 }
  0xb0   :  { %5561 = vst [vmem:[#allocation75_spill] sm:$0xff] %v3375_v28  ;;  %5562 = vst [vmem:[#allocation76_spill] sm:$0xff] %v3378_v22  ;;  %754 = vadd.xlane.f32.xlu1 %v753_v30  ;;  %v411_v10 = vmul.f32 0.0051020407, %v203_v37  ;;  %v614_v52 = vmul.f32 %v3375_v28, %v3375_v28  ;;  %v615_v47 = vmul.f32 %v3378_v22, %v3378_v22  ;;  %758 = vadd.xlane.f32.xlu0 %v757_v14 }
  0xb1   :  { %v3390_v42 = vsub.f32 %v2699_v58, %v410_v1  ;;  %v3393_v21 = vsub.f32 %v2687_v54, %v410_v1  ;;  %v764_v39 = vsel %vm139_vm0, %v613_v46, 0.0 }
  0xb2   :  { %v3397_v31 = vsub.f32 %v2706_v60, %v411_v10  ;;  %v3400_v30 = vsub.f32 %v2692_v55, %v411_v10  ;;  %v768_v44 = vsel %vm139_vm0, %v615_v47, 0.0  ;;  %v207_v36 = vpop.xlane.xlu0 %206  ;;  %v765_v23 = vadd.f32 %v764_v39, %v612_v50 }
  0xb3   :  { %5563 = vst [vmem:[#allocation77_spill] sm:$0xff] %v3390_v42  ;;  %5564 = vst [vmem:[#allocation78_spill] sm:$0xff] %v3393_v21  ;;  %v211_v37 = vpop.xlane.xlu1 %210  ;;  %v412_v14 = vmul.f32 0.0051020407, %v207_v36  ;;  %v616_v58 = vmul.f32 %v3390_v42, %v3390_v42  ;;  %v617_v54 = vmul.f32 %v3393_v21, %v3393_v21  ;;  %v769_v46 = vadd.f32 %v768_v44, %v614_v52 }
  0xb4   :  { %5565 = vst [vmem:[#allocation79_spill] sm:$0xff] %v3397_v31  ;;  %5566 = vst [vmem:[#allocation80_spill] sm:$0xff] %v3400_v30  ;;  %762 = vadd.xlane.f32.xlu1 %v761_v38  ;;  %v413_v1 = vmul.f32 0.0051020407, %v211_v37  ;;  %v618_v60 = vmul.f32 %v3397_v31, %v3397_v31  ;;  %v619_v55 = vmul.f32 %v3400_v30, %v3400_v30  ;;  %766 = vadd.xlane.f32.xlu0 %v765_v23 }
  0xb5   :  { %v3412_v50 = vsub.f32 %v2725_v8, %v412_v14  ;;  %v3415_v10 = vsub.f32 %v2713_v62, %v412_v14  ;;  %v772_v47 = vsel %vm139_vm0, %v617_v54, 0.0 }
  0xb6   :  { %v3419_v39 = vsub.f32 %v2732_v12, %v413_v1  ;;  %v3422_v38 = vsub.f32 %v2718_v63, %v413_v1  ;;  %v776_v52 = vsel %vm139_vm0, %v619_v55, 0.0  ;;  %v215_v44 = vpop.xlane.xlu0 %214  ;;  %v773_v36 = vadd.f32 %v772_v47, %v616_v58 }
  0xb7   :  { %5567 = vst [vmem:[#allocation81_spill] sm:$0xff] %v3412_v50  ;;  %5568 = vst [vmem:[#allocation82_spill] sm:$0xff] %v3415_v10  ;;  %v219_v37 = vpop.xlane.xlu1 %218  ;;  %v414_v23 = vmul.f32 0.0051020407, %v215_v44  ;;  %v620_v8 = vmul.f32 %v3412_v50, %v3412_v50  ;;  %v621_v62 = vmul.f32 %v3415_v10, %v3415_v10  ;;  %v777_v54 = vadd.f32 %v776_v52, %v618_v60 }
  0xb8   :  { %5569 = vst [vmem:[#allocation83_spill] sm:$0xff] %v3419_v39  ;;  %5570 = vst [vmem:[#allocation84_spill] sm:$0xff] %v3422_v38  ;;  %770 = vadd.xlane.f32.xlu1 %v769_v46  ;;  %v415_v14 = vmul.f32 0.0051020407, %v219_v37  ;;  %v622_v12 = vmul.f32 %v3419_v39, %v3419_v39  ;;  %v623_v63 = vmul.f32 %v3422_v38, %v3422_v38  ;;  %774 = vadd.xlane.f32.xlu0 %v773_v36  ;;  %v2487_v37 = vmov 0   ;;  %v5637_v38 = vld [vmem:[#allocation27_spill] sm:$0xff] }
  0xb9   :  { %v3434_v58 = vsub.f32 %v2751_v24, %v414_v23  ;;  %v3437_v1 = vsub.f32 %v2739_v16, %v414_v23  ;;  %v780_v55 = vsel %vm139_vm0, %v621_v62, 0.0  ;;  %2322 = vset.pattern.permute.xlu0 %v2487_v37  ;;  %2323 = vset.pattern.permute.xlu1 %v2487_v37 }
  0xba   :  { %v3441_v47 = vsub.f32 %v2758_v27, %v415_v14  ;;  %v3444_v46 = vsub.f32 %v2744_v17, %v415_v14  ;;  %v784_v60 = vsel %vm139_vm0, %v623_v63, 0.0  ;;  %v223_v52 = vpop.xlane.xlu0 %222  ;;  %v781_v44 = vadd.f32 %v780_v55, %v620_v8 }
  0xbb   :  { %5571 = vst [vmem:[#allocation85_spill] sm:$0xff] %v3434_v58  ;;  %5572 = vst [vmem:[#allocation86_spill] sm:$0xff] %v3437_v1  ;;  %v227_v24 = vpop.xlane.xlu1 %226  ;;  %v416_v36 = vmul.f32 0.0051020407, %v223_v52  ;;  %v624_v16 = vmul.f32 %v3434_v58, %v3434_v58  ;;  %v625_v23 = vmul.f32 %v3437_v1, %v3437_v1  ;;  %v785_v62 = vadd.f32 %v784_v60, %v622_v12 }
  0xbc   :  { %5573 = vst [vmem:[#allocation87_spill] sm:$0xff] %v3441_v47  ;;  %5574 = vst [vmem:[#allocation88_spill] sm:$0xff] %v3444_v46  ;;  %778 = vadd.xlane.f32.xlu1 %v777_v54  ;;  %v417_v27 = vmul.f32 0.0051020407, %v227_v24  ;;  %v626_v17 = vmul.f32 %v3441_v47, %v3441_v47  ;;  %v627_v8 = vmul.f32 %v3444_v46, %v3444_v46  ;;  %782 = vadd.xlane.f32.xlu0 %v781_v44  ;;  %v5595_v46 = vld [vmem:[#allocation9_spill] sm:$0xff] }
  0xbd   :  { %v3456_v14 = vsub.f32 %v2777_v40, %v416_v36  ;;  %v3459_v63 = vsub.f32 %v2765_v32, %v416_v36  ;;  %v788_v55 = vsel %vm139_vm0, %v625_v23, 0.0 }
  0xbe   :  { %v3463_v52 = vsub.f32 %v2784_v43, %v417_v27  ;;  %v3466_v54 = vsub.f32 %v2770_v33, %v417_v27  ;;  %v792_v12 = vsel %vm139_vm0, %v627_v8, 0.0  ;;  %v231_v60 = vpop.xlane.xlu0 %230  ;;  %v789_v37 = vadd.f32 %v788_v55, %v624_v16 }
  0xbf   :  { %5575 = vst [vmem:[#allocation89_spill] sm:$0xff] %v3456_v14  ;;  %5576 = vst [vmem:[#allocation90_spill] sm:$0xff] %v3459_v63  ;;  %v235_v24 = vpop.xlane.xlu1 %234  ;;  %v418_v44 = vmul.f32 0.0051020407, %v231_v60  ;;  %v628_v40 = vmul.f32 %v3456_v14, %v3456_v14  ;;  %v629_v32 = vmul.f32 %v3459_v63, %v3459_v63  ;;  %v793_v23 = vadd.f32 %v792_v12, %v626_v17 }
  0xc0   :  { %5577 = vst [vmem:[#allocation91_spill] sm:$0xff] %v3463_v52  ;;  %5578 = vst [vmem:[#allocation92_spill] sm:$0xff] %v3466_v54  ;;  %786 = vadd.xlane.f32.xlu1 %v785_v62  ;;  %v419_v36 = vmul.f32 0.0051020407, %v235_v24  ;;  %v630_v43 = vmul.f32 %v3463_v52, %v3463_v52  ;;  %v631_v33 = vmul.f32 %v3466_v54, %v3466_v54  ;;  %790 = vadd.xlane.f32.xlu0 %v789_v37  ;;  %v5587_v54 = vld [vmem:[#allocation5_spill] sm:$0xff] }
  0xc1   :  { %v3478_v16 = vsub.f32 %v2803_v56, %v418_v44  ;;  %v3481_v27 = vsub.f32 %v2791_v48, %v418_v44  ;;  %v796_v8 = vsel %vm139_vm0, %v629_v32, 0.0 }
  0xc2   :  { %v3485_v55 = vsub.f32 %v2810_v59, %v419_v36  ;;  %v3488_v62 = vsub.f32 %v2796_v49, %v419_v36  ;;  %v800_v17 = vsel %vm139_vm0, %v631_v33, 0.0  ;;  %v239_v12 = vpop.xlane.xlu0 %238  ;;  %v797_v60 = vadd.f32 %v796_v8, %v628_v40  ;;  %v5583_v36 = vld [vmem:[#allocation4_spill] sm:$0xff]  ;;  %v5585_v33 = vld [vmem:[#allocation2_spill] sm:$0xff] }
  0xc3   :  { %5579 = vst [vmem:[#allocation93_spill] sm:$0xff] %v3478_v16  ;;  %5580 = vst [vmem:[#allocation94_spill] sm:$0xff] %v3481_v27  ;;  %v243_v24 = vpop.xlane.xlu1 %242  ;;  %v420_v37 = vmul.f32 0.0051020407, %v239_v12  ;;  %v632_v56 = vmul.f32 %v3478_v16, %v3478_v16  ;;  %v633_v48 = vmul.f32 %v3481_v27, %v3481_v27  ;;  %v801_v32 = vadd.f32 %v800_v17, %v630_v43 }
  0xc4   :  { %5581 = vst [vmem:[#allocation95_spill] sm:$0xff] %v3485_v55  ;;  %5582 = vst [vmem:[#allocation96_spill] sm:$0xff] %v3488_v62  ;;  %794 = vadd.xlane.f32.xlu1 %v793_v23  ;;  %v421_v44 = vmul.f32 0.0051020407, %v243_v24  ;;  %v634_v59 = vmul.f32 %v3485_v55, %v3485_v55  ;;  %v635_v49 = vmul.f32 %v3488_v62, %v3488_v62  ;;  %798 = vadd.xlane.f32.xlu0 %v797_v60  ;;  %v5589_v23 = vld [vmem:[#allocation3_spill] sm:$0xff] }
  0xc5   :  { %v3500_v40 = vsub.f32 %v5583_v36, %v420_v37  ;;  %v3503_v8 = vsub.f32 %v5585_v33, %v420_v37  ;;  %v804_v12 = vsel %vm139_vm0, %v633_v48, 0.0 }
  0xc6   :  { %v3507_v52 = vsub.f32 %v5587_v54, %v421_v44  ;;  %v3510_v43 = vsub.f32 %v5589_v23, %v421_v44  ;;  %v808_v17 = vsel %vm139_vm0, %v635_v49, 0.0  ;;  %v247_v24 = vpop.xlane.xlu0 %246  ;;  %v805_v55 = vadd.f32 %v804_v12, %v632_v56  ;;  %v5591_v49 = vld [vmem:[#allocation8_spill] sm:$0xff]  ;;  %v5593_v12 = vld [vmem:[#allocation6_spill] sm:$0xff] }
  0xc7   :  { %5584 = vst [vmem:[#allocation4_spill] sm:$0xff] %v3500_v40  ;;  %5586 = vst [vmem:[#allocation2_spill] sm:$0xff] %v3503_v8  ;;  %v251_v62 = vpop.xlane.xlu1 %250  ;;  %v422_v60 = vmul.f32 0.0051020407, %v247_v24  ;;  %v636_v36 = vmul.f32 %v3500_v40, %v3500_v40  ;;  %v637_v37 = vmul.f32 %v3503_v8, %v3503_v8  ;;  %v809_v33 = vadd.f32 %v808_v17, %v634_v59 }
  0xc8   :  { %5588 = vst [vmem:[#allocation5_spill] sm:$0xff] %v3507_v52  ;;  %5590 = vst [vmem:[#allocation3_spill] sm:$0xff] %v3510_v43  ;;  %802 = vadd.xlane.f32.xlu1 %v801_v32  ;;  %v423_v48 = vmul.f32 0.0051020407, %v251_v62  ;;  %v638_v54 = vmul.f32 %v3507_v52, %v3507_v52  ;;  %v639_v44 = vmul.f32 %v3510_v43, %v3510_v43  ;;  %806 = vadd.xlane.f32.xlu0 %v805_v55  ;;  %v5597_v62 = vld [vmem:[#allocation7_spill] sm:$0xff] }
  0xc9   :  { %v3522_v56 = vsub.f32 %v5591_v49, %v422_v60  ;;  %v3525_v23 = vsub.f32 %v5593_v12, %v422_v60  ;;  %v812_v24 = vsel %vm139_vm0, %v637_v37, 0.0 }
  0xca   :  { %v3529_v47 = vsub.f32 %v5595_v46, %v423_v48  ;;  %v3532_v32 = vsub.f32 %v5597_v62, %v423_v48  ;;  %v816_v59 = vsel %vm139_vm0, %v639_v44, 0.0  ;;  %v255_v17 = vpop.xlane.xlu0 %254  ;;  %v813_v52 = vadd.f32 %v812_v24, %v636_v36  ;;  %v5599_v44 = vld [vmem:[#allocation12_spill] sm:$0xff]  ;;  %v5601_v24 = vld [vmem:[#allocation10_spill] sm:$0xff] }
  0xcb   :  { %5592 = vst [vmem:[#allocation8_spill] sm:$0xff] %v3522_v56  ;;  %5594 = vst [vmem:[#allocation6_spill] sm:$0xff] %v3525_v23  ;;  %v259_v43 = vpop.xlane.xlu1 %258  ;;  %v424_v55 = vmul.f32 0.0051020407, %v255_v17  ;;  %v640_v49 = vmul.f32 %v3522_v56, %v3522_v56  ;;  %v641_v60 = vmul.f32 %v3525_v23, %v3525_v23  ;;  %v817_v12 = vadd.f32 %v816_v59, %v638_v54  ;;  %v5603_v56 = vld [vmem:[#allocation13_spill] sm:$0xff] }
  0xcc   :  { %5596 = vst [vmem:[#allocation9_spill] sm:$0xff] %v3529_v47  ;;  %5598 = vst [vmem:[#allocation7_spill] sm:$0xff] %v3532_v32  ;;  %810 = vadd.xlane.f32.xlu1 %v809_v33  ;;  %v425_v37 = vmul.f32 0.0051020407, %v259_v43  ;;  %v642_v46 = vmul.f32 %v3529_v47, %v3529_v47  ;;  %v643_v48 = vmul.f32 %v3532_v32, %v3532_v32  ;;  %814 = vadd.xlane.f32.xlu0 %v813_v52  ;;  %v5605_v43 = vld [vmem:[#allocation11_spill] sm:$0xff] }
  0xcd   :  { %v3544_v36 = vsub.f32 %v5599_v44, %v424_v55  ;;  %v3547_v62 = vsub.f32 %v5601_v24, %v424_v55  ;;  %v820_v17 = vsel %vm139_vm0, %v641_v60, 0.0 }
  0xce   :  { %v3551_v23 = vsub.f32 %v5603_v56, %v425_v37  ;;  %v3554_v33 = vsub.f32 %v5605_v43, %v425_v37  ;;  %v824_v54 = vsel %vm139_vm0, %v643_v48, 0.0  ;;  %v263_v59 = vpop.xlane.xlu0 %262  ;;  %v821_v47 = vadd.f32 %v820_v17, %v640_v49  ;;  %v5607_v48 = vld [vmem:[#allocation16_spill] sm:$0xff]  ;;  %v5609_v17 = vld [vmem:[#allocation14_spill] sm:$0xff] }
  0xcf   :  { %5600 = vst [vmem:[#allocation12_spill] sm:$0xff] %v3544_v36  ;;  %5602 = vst [vmem:[#allocation10_spill] sm:$0xff] %v3547_v62  ;;  %v267_v32 = vpop.xlane.xlu1 %266  ;;  %v426_v52 = vmul.f32 0.0051020407, %v263_v59  ;;  %v644_v44 = vmul.f32 %v3544_v36, %v3544_v36  ;;  %v645_v55 = vmul.f32 %v3547_v62, %v3547_v62  ;;  %v825_v24 = vadd.f32 %v824_v54, %v642_v46  ;;  %v5611_v36 = vld [vmem:[#allocation17_spill] sm:$0xff] }
  0xd0   :  { %5604 = vst [vmem:[#allocation13_spill] sm:$0xff] %v3551_v23  ;;  %5606 = vst [vmem:[#allocation11_spill] sm:$0xff] %v3554_v33  ;;  %818 = vadd.xlane.f32.xlu1 %v817_v12  ;;  %v427_v60 = vmul.f32 0.0051020407, %v267_v32  ;;  %v646_v56 = vmul.f32 %v3551_v23, %v3551_v23  ;;  %v647_v37 = vmul.f32 %v3554_v33, %v3554_v33  ;;  %822 = vadd.xlane.f32.xlu0 %v821_v47  ;;  %v5613_v32 = vld [vmem:[#allocation15_spill] sm:$0xff] }
  0xd1   :  { %v3566_v49 = vsub.f32 %v5607_v48, %v426_v52  ;;  %v3569_v43 = vsub.f32 %v5609_v17, %v426_v52  ;;  %v828_v59 = vsel %vm139_vm0, %v645_v55, 0.0 }
  0xd2   :  { %v3573_v62 = vsub.f32 %v5611_v36, %v427_v60  ;;  %v3576_v12 = vsub.f32 %v5613_v32, %v427_v60  ;;  %v832_v46 = vsel %vm139_vm0, %v647_v37, 0.0  ;;  %v271_v54 = vpop.xlane.xlu0 %270  ;;  %v829_v23 = vadd.f32 %v828_v59, %v644_v44  ;;  %v5615_v37 = vld [vmem:[#allocation20_spill] sm:$0xff]  ;;  %v5617_v59 = vld [vmem:[#allocation18_spill] sm:$0xff] }
  0xd3   :  { %5608 = vst [vmem:[#allocation16_spill] sm:$0xff] %v3566_v49  ;;  %5610 = vst [vmem:[#allocation14_spill] sm:$0xff] %v3569_v43  ;;  %v275_v33 = vpop.xlane.xlu1 %274  ;;  %v428_v47 = vmul.f32 0.0051020407, %v271_v54  ;;  %v648_v48 = vmul.f32 %v3566_v49, %v3566_v49  ;;  %v649_v52 = vmul.f32 %v3569_v43, %v3569_v43  ;;  %v833_v17 = vadd.f32 %v832_v46, %v646_v56  ;;  %v5619_v49 = vld [vmem:[#allocation21_spill] sm:$0xff] }
  0xd4   :  { %5612 = vst [vmem:[#allocation17_spill] sm:$0xff] %v3573_v62  ;;  %5614 = vst [vmem:[#allocation15_spill] sm:$0xff] %v3576_v12  ;;  %826 = vadd.xlane.f32.xlu1 %v825_v24  ;;  %v429_v55 = vmul.f32 0.0051020407, %v275_v33  ;;  %v650_v36 = vmul.f32 %v3573_v62, %v3573_v62  ;;  %v651_v60 = vmul.f32 %v3576_v12, %v3576_v12  ;;  %830 = vadd.xlane.f32.xlu0 %v829_v23  ;;  %v5621_v33 = vld [vmem:[#allocation19_spill] sm:$0xff] }
  0xd5   :  { %v3588_v44 = vsub.f32 %v5615_v37, %v428_v47  ;;  %v3591_v32 = vsub.f32 %v5617_v59, %v428_v47  ;;  %v836_v54 = vsel %vm139_vm0, %v649_v52, 0.0 }
  0xd6   :  { %v3595_v43 = vsub.f32 %v5619_v49, %v429_v55  ;;  %v3598_v24 = vsub.f32 %v5621_v33, %v429_v55  ;;  %v840_v56 = vsel %vm139_vm0, %v651_v60, 0.0  ;;  %v279_v46 = vpop.xlane.xlu0 %278  ;;  %v837_v62 = vadd.f32 %v836_v54, %v648_v48  ;;  %v5623_v60 = vld [vmem:[#allocation24_spill] sm:$0xff]  ;;  %v5625_v54 = vld [vmem:[#allocation22_spill] sm:$0xff] }
  0xd7   :  { %5616 = vst [vmem:[#allocation20_spill] sm:$0xff] %v3588_v44  ;;  %5618 = vst [vmem:[#allocation18_spill] sm:$0xff] %v3591_v32  ;;  %v283_v12 = vpop.xlane.xlu1 %282  ;;  %v430_v23 = vmul.f32 0.0051020407, %v279_v46  ;;  %v652_v37 = vmul.f32 %v3588_v44, %v3588_v44  ;;  %v653_v47 = vmul.f32 %v3591_v32, %v3591_v32  ;;  %v841_v59 = vadd.f32 %v840_v56, %v650_v36  ;;  %v5627_v44 = vld [vmem:[#allocation25_spill] sm:$0xff] }
  0xd8   :  { %5620 = vst [vmem:[#allocation21_spill] sm:$0xff] %v3595_v43  ;;  %5622 = vst [vmem:[#allocation19_spill] sm:$0xff] %v3598_v24  ;;  %834 = vadd.xlane.f32.xlu1 %v833_v17  ;;  %v431_v52 = vmul.f32 0.0051020407, %v283_v12  ;;  %v654_v49 = vmul.f32 %v3595_v43, %v3595_v43  ;;  %v655_v55 = vmul.f32 %v3598_v24, %v3598_v24  ;;  %838 = vadd.xlane.f32.xlu0 %v837_v62  ;;  %v5629_v12 = vld [vmem:[#allocation23_spill] sm:$0xff] }
  0xd9   :  { %v3610_v48 = vsub.f32 %v5623_v60, %v430_v23  ;;  %v3613_v33 = vsub.f32 %v5625_v54, %v430_v23  ;;  %v844_v46 = vsel %vm139_vm0, %v653_v47, 0.0 }
  0xda   :  { %v3617_v32 = vsub.f32 %v5627_v44, %v431_v52  ;;  %v3620_v17 = vsub.f32 %v5629_v12, %v431_v52  ;;  %v848_v36 = vsel %vm139_vm0, %v655_v55, 0.0  ;;  %v287_v56 = vpop.xlane.xlu0 %286  ;;  %v845_v43 = vadd.f32 %v844_v46, %v652_v37  ;;  %v5631_v55 = vld [vmem:[#allocation28_spill] sm:$0xff]  ;;  %v5633_v46 = vld [vmem:[#allocation26_spill] sm:$0xff] }
  0xdb   :  { %5624 = vst [vmem:[#allocation24_spill] sm:$0xff] %v3610_v48  ;;  %5626 = vst [vmem:[#allocation22_spill] sm:$0xff] %v3613_v33  ;;  %v291_v24 = vpop.xlane.xlu1 %290  ;;  %v656_v62 = vmul.f32 %v3610_v48, %v3610_v48  ;;  %v657_v23 = vmul.f32 %v3613_v33, %v3613_v33  ;;  %v432_v60 = vmul.f32 0.0051020407, %v287_v56  ;;  %v849_v54 = vadd.f32 %v848_v36, %v654_v49  ;;  %v5635_v33 = vld [vmem:[#allocation29_spill] sm:$0xff] }
  0xdc   :  { %5628 = vst [vmem:[#allocation25_spill] sm:$0xff] %v3617_v32  ;;  %5630 = vst [vmem:[#allocation23_spill] sm:$0xff] %v3620_v17  ;;  %v658_v47 = vmul.f32 %v3617_v32, %v3617_v32  ;;  %v659_v44 = vmul.f32 %v3620_v17, %v3620_v17  ;;  %842 = vadd.xlane.f32.xlu1 %v841_v59  ;;  %v433_v52 = vmul.f32 0.0051020407, %v291_v24  ;;  %846 = vadd.xlane.f32.xlu0 %v845_v43 }
  0xdd   :  { %v3632_v37 = vsub.f32 %v5631_v55, %v432_v60  ;;  %v3635_v12 = vsub.f32 %v5633_v46, %v432_v60  ;;  %v852_v48 = vsel %vm139_vm0, %v657_v23, 0.0 }
  0xde   :  { %v3639_v56 = vsub.f32 %v5635_v33, %v433_v52  ;;  %v3642_v32 = vsub.f32 %v5637_v38, %v433_v52  ;;  %v856_v17 = vsel %vm139_vm0, %v659_v44, 0.0  ;;  %v295_v59 = vpop.xlane.xlu0 %294  ;;  %v853_v24 = vadd.f32 %v852_v48, %v656_v62  ;;  %v5639_v44 = vld [vmem:[#allocation32_spill] sm:$0xff]  ;;  %v5641_v62 = vld [vmem:[#allocation30_spill] sm:$0xff] }
  0xdf   :  { %5632 = vst [vmem:[#allocation28_spill] sm:$0xff] %v3632_v37  ;;  %5634 = vst [vmem:[#allocation26_spill] sm:$0xff] %v3635_v12  ;;  %v299_v49 = vpop.xlane.xlu1 %298  ;;  %v660_v43 = vmul.f32 %v3632_v37, %v3632_v37  ;;  %v661_v36 = vmul.f32 %v3635_v12, %v3635_v12  ;;  %v434_v60 = vmul.f32 0.0051020407, %v295_v59  ;;  %v857_v52 = vadd.f32 %v856_v17, %v658_v47  ;;  %v5643_v12 = vld [vmem:[#allocation33_spill] sm:$0xff]  ;;  %v5645_v37 = vld [vmem:[#allocation31_spill] sm:$0xff] }
  0xe0   :  { %5636 = vst [vmem:[#allocation29_spill] sm:$0xff] %v3639_v56  ;;  %5638 = vst [vmem:[#allocation27_spill] sm:$0xff] %v3642_v32  ;;  %v662_v23 = vmul.f32 %v3639_v56, %v3639_v56  ;;  %v663_v33 = vmul.f32 %v3642_v32, %v3642_v32  ;;  %850 = vadd.xlane.f32.xlu1 %v849_v54  ;;  %v435_v38 = vmul.f32 0.0051020407, %v299_v49  ;;  %854 = vadd.xlane.f32.xlu0 %v853_v24 }
  0xe1   :  { %v3654_v48 = vsub.f32 %v5639_v44, %v434_v60  ;;  %v3657_v55 = vsub.f32 %v5641_v62, %v434_v60  ;;  %v860_v46 = vsel %vm139_vm0, %v661_v36, 0.0  ;;  %v5649_v44 = vld [vmem:[#allocation34_spill] sm:$0xff] }
  0xe2   :  { %v3661_v59 = vsub.f32 %v5643_v12, %v435_v38  ;;  %v3664_v56 = vsub.f32 %v5645_v37, %v435_v38  ;;  %v864_v32 = vsel %vm139_vm0, %v663_v33, 0.0  ;;  %v303_v54 = vpop.xlane.xlu0 %302  ;;  %v861_v49 = vadd.f32 %v860_v46, %v660_v43  ;;  %v5647_v33 = vld [vmem:[#allocation36_spill] sm:$0xff] }
  0xe3   :  { %5640 = vst [vmem:[#allocation32_spill] sm:$0xff] %v3654_v48  ;;  %5642 = vst [vmem:[#allocation30_spill] sm:$0xff] %v3657_v55  ;;  %v307_v17 = vpop.xlane.xlu1 %306  ;;  %v664_v47 = vmul.f32 %v3654_v48, %v3654_v48  ;;  %v665_v24 = vmul.f32 %v3657_v55, %v3657_v55  ;;  %v436_v60 = vmul.f32 0.0051020407, %v303_v54  ;;  %v865_v38 = vadd.f32 %v864_v32, %v662_v23  ;;  %v5651_v55 = vld [vmem:[#allocation37_spill] sm:$0xff]  ;;  %v5653_v48 = vld [vmem:[#allocation35_spill] sm:$0xff] }
  0xe4   :  { %5644 = vst [vmem:[#allocation33_spill] sm:$0xff] %v3661_v59  ;;  %5646 = vst [vmem:[#allocation31_spill] sm:$0xff] %v3664_v56  ;;  %v666_v36 = vmul.f32 %v3661_v59, %v3661_v59  ;;  %v667_v12 = vmul.f32 %v3664_v56, %v3664_v56  ;;  %858 = vadd.xlane.f32.xlu1 %v857_v52  ;;  %v437_v37 = vmul.f32 0.0051020407, %v307_v17  ;;  %862 = vadd.xlane.f32.xlu0 %v861_v49 }
  0xe5   :  { %v3676_v43 = vsub.f32 %v5647_v33, %v436_v60  ;;  %v3679_v62 = vsub.f32 %v5649_v44, %v436_v60  ;;  %v868_v46 = vsel %vm139_vm0, %v665_v24, 0.0  ;;  %v5657_v33 = vld [vmem:[#allocation38_spill] sm:$0xff] }
  0xe6   :  { %v3683_v54 = vsub.f32 %v5651_v55, %v437_v37  ;;  %v3686_v59 = vsub.f32 %v5653_v48, %v437_v37  ;;  %v872_v56 = vsel %vm139_vm0, %v667_v12, 0.0  ;;  %v311_v52 = vpop.xlane.xlu0 %310  ;;  %v869_v17 = vadd.f32 %v868_v46, %v664_v47  ;;  %v5655_v12 = vld [vmem:[#allocation40_spill] sm:$0xff] }
  0xe7   :  { %5648 = vst [vmem:[#allocation36_spill] sm:$0xff] %v3676_v43  ;;  %5650 = vst [vmem:[#allocation34_spill] sm:$0xff] %v3679_v62  ;;  %v315_v32 = vpop.xlane.xlu1 %314  ;;  %v668_v23 = vmul.f32 %v3676_v43, %v3676_v43  ;;  %v669_v49 = vmul.f32 %v3679_v62, %v3679_v62  ;;  %v438_v60 = vmul.f32 0.0051020407, %v311_v52  ;;  %v873_v37 = vadd.f32 %v872_v56, %v666_v36  ;;  %v5659_v62 = vld [vmem:[#allocation41_spill] sm:$0xff]  ;;  %v5661_v43 = vld [vmem:[#allocation39_spill] sm:$0xff] }
  0xe8   :  { %5652 = vst [vmem:[#allocation37_spill] sm:$0xff] %v3683_v54  ;;  %5654 = vst [vmem:[#allocation35_spill] sm:$0xff] %v3686_v59  ;;  %v670_v24 = vmul.f32 %v3683_v54, %v3683_v54  ;;  %v671_v55 = vmul.f32 %v3686_v59, %v3686_v59  ;;  %866 = vadd.xlane.f32.xlu1 %v865_v38  ;;  %v439_v48 = vmul.f32 0.0051020407, %v315_v32  ;;  %870 = vadd.xlane.f32.xlu0 %v869_v17 }
  0xe9   :  { %v3698_v47 = vsub.f32 %v5655_v12, %v438_v60  ;;  %v3701_v44 = vsub.f32 %v5657_v33, %v438_v60  ;;  %v876_v46 = vsel %vm139_vm0, %v669_v49, 0.0  ;;  %v5665_v12 = vld [vmem:[#allocation42_spill] sm:$0xff] }
  0xea   :  { %v3705_v52 = vsub.f32 %v5659_v62, %v439_v48  ;;  %v3708_v54 = vsub.f32 %v5661_v43, %v439_v48  ;;  %v880_v59 = vsel %vm139_vm0, %v671_v55, 0.0  ;;  %v319_v38 = vpop.xlane.xlu0 %318  ;;  %v877_v32 = vadd.f32 %v876_v46, %v668_v23  ;;  %v5663_v55 = vld [vmem:[#allocation44_spill] sm:$0xff] }
  0xeb   :  { %5656 = vst [vmem:[#allocation40_spill] sm:$0xff] %v3698_v47  ;;  %5658 = vst [vmem:[#allocation38_spill] sm:$0xff] %v3701_v44  ;;  %v323_v56 = vpop.xlane.xlu1 %322  ;;  %v672_v36 = vmul.f32 %v3698_v47, %v3698_v47  ;;  %v673_v17 = vmul.f32 %v3701_v44, %v3701_v44  ;;  %v440_v60 = vmul.f32 0.0051020407, %v319_v38  ;;  %v881_v48 = vadd.f32 %v880_v59, %v670_v24  ;;  %v5667_v44 = vld [vmem:[#allocation45_spill] sm:$0xff]  ;;  %v5669_v47 = vld [vmem:[#allocation43_spill] sm:$0xff] }
  0xec   :  { %5660 = vst [vmem:[#allocation41_spill] sm:$0xff] %v3705_v52  ;;  %5662 = vst [vmem:[#allocation39_spill] sm:$0xff] %v3708_v54  ;;  %v674_v49 = vmul.f32 %v3705_v52, %v3705_v52  ;;  %v675_v62 = vmul.f32 %v3708_v54, %v3708_v54  ;;  %874 = vadd.xlane.f32.xlu1 %v873_v37  ;;  %v441_v43 = vmul.f32 0.0051020407, %v323_v56  ;;  %878 = vadd.xlane.f32.xlu0 %v877_v32 }
  0xed   :  { %v3720_v23 = vsub.f32 %v5663_v55, %v440_v60  ;;  %v3723_v33 = vsub.f32 %v5665_v12, %v440_v60  ;;  %v884_v46 = vsel %vm139_vm0, %v673_v17, 0.0  ;;  %v5673_v55 = vld [vmem:[#allocation46_spill] sm:$0xff] }
  0xee   :  { %v3727_v38 = vsub.f32 %v5667_v44, %v441_v43  ;;  %v3730_v52 = vsub.f32 %v5669_v47, %v441_v43  ;;  %v888_v54 = vsel %vm139_vm0, %v675_v62, 0.0  ;;  %v327_v37 = vpop.xlane.xlu0 %326  ;;  %v885_v56 = vadd.f32 %v884_v46, %v672_v36  ;;  %v5671_v62 = vld [vmem:[#allocation47_spill] sm:$0xff] }
  0xef   :  { %5664 = vst [vmem:[#allocation44_spill] sm:$0xff] %v3720_v23  ;;  %5666 = vst [vmem:[#allocation42_spill] sm:$0xff] %v3723_v33  ;;  %v331_v59 = vpop.xlane.xlu1 %330  ;;  %v676_v24 = vmul.f32 %v3720_v23, %v3720_v23  ;;  %v677_v32 = vmul.f32 %v3723_v33, %v3723_v33  ;;  %v442_v60 = vmul.f32 0.0051020407, %v327_v37  ;;  %v889_v43 = vadd.f32 %v888_v54, %v674_v49  ;;  %v5675_v33 = vld [vmem:[#allocation48_spill] sm:$0xff] }
  0xf0   :  { %5668 = vst [vmem:[#allocation45_spill] sm:$0xff] %v3727_v38  ;;  %5670 = vst [vmem:[#allocation43_spill] sm:$0xff] %v3730_v52  ;;  %v678_v17 = vmul.f32 %v3727_v38, %v3727_v38  ;;  %v679_v44 = vmul.f32 %v3730_v52, %v3730_v52  ;;  %882 = vadd.xlane.f32.xlu1 %v881_v48  ;;  %v443_v47 = vmul.f32 0.0051020407, %v331_v59  ;;  %886 = vadd.xlane.f32.xlu0 %v885_v56  ;;  %v2454_v38 = vld [vmem:[%s5287_s0 + $0x2f8] sm:$0xff] }
  0xf1   :  { %v3742_v36 = vsub.f32 %v5671_v62, %v442_v60  ;;  %v3745_v12 = vsub.f32 %v5673_v55, %v442_v60  ;;  %v892_v46 = vsel %vm139_vm0, %v677_v32, 0.0  ;;  %v2456_v55 = vld [vmem:[%s5287_s0 + $0x308] sm:$0xff] }
  0xf2   :  { %v3749_v37 = vsub.f32 %v5675_v33, %v443_v47  ;;  %v3754_v52 = vsub.f32 %v2454_v38, %v443_v47  ;;  %v896_v54 = vsel %vm139_vm0, %v679_v44, 0.0  ;;  %v335_v49 = vpop.xlane.xlu0 %334  ;;  %v893_v48 = vadd.f32 %v892_v46, %v676_v24  ;;  %v2455_v24 = vld [vmem:[%s5287_s0 + $0x300] sm:$0xff] }
  0xf3   :  { %5672 = vst [vmem:[#allocation47_spill] sm:$0xff] %v3742_v36  ;;  %5674 = vst [vmem:[#allocation46_spill] sm:$0xff] %v3745_v12  ;;  %v339_v56 = vpop.xlane.xlu1 %338  ;;  %v680_v59 = vmul.f32 %v3742_v36, %v3742_v36  ;;  %v681_v32 = vmul.f32 %v3745_v12, %v3745_v12  ;;  %v444_v60 = vmul.f32 0.0051020407, %v335_v49  ;;  %v897_v47 = vadd.f32 %v896_v54, %v678_v17  ;;  %v2458_v54 = vld [vmem:[%s5287_s0 + $0x318] sm:$0xff] }
  0xf4   :  { %5676 = vst [vmem:[#allocation48_spill] sm:$0xff] %v3749_v37  ;;  %5677 = vst [vmem:[#allocation97_spill] sm:$0xff] %v3754_v52  ;;  %v682_v33 = vmul.f32 %v3749_v37, %v3749_v37  ;;  %v683_v62 = vmul.f32 %v3754_v52, %v3754_v52  ;;  %890 = vadd.xlane.f32.xlu1 %v889_v43  ;;  %v445_v38 = vmul.f32 0.0051020407, %v339_v56  ;;  %894 = vadd.xlane.f32.xlu0 %v893_v48  ;;  %v2457_v43 = vld [vmem:[%s5287_s0 + $0x310] sm:$0xff] }
  0xf5   :  { %v3768_v44 = vsub.f32 %v2455_v24, %v444_v60  ;;  %v3773_v46 = vsub.f32 %v2456_v55, %v444_v60  ;;  %v900_v49 = vsel %vm139_vm0, %v681_v32, 0.0 }
  0xf6   :  { %v3779_v17 = vsub.f32 %v2457_v43, %v445_v38  ;;  %v3784_v48 = vsub.f32 %v2458_v54, %v445_v38  ;;  %v904_v56 = vsel %vm139_vm0, %v683_v62, 0.0  ;;  %v343_v24 = vpop.xlane.xlu0 %342  ;;  %v901_v52 = vadd.f32 %v900_v49, %v680_v59  ;;  %v2459_v59 = vld [vmem:[%s5287_s0 + $0x320] sm:$0xff]  ;;  %v2460_v49 = vld [vmem:[%s5287_s0 + $0x328] sm:$0xff] }
  0xf7   :  { %5678 = vst [vmem:[#allocation98_spill] sm:$0xff] %v3768_v44  ;;  %5679 = vst [vmem:[#allocation99_spill] sm:$0xff] %v3773_v46  ;;  %v347_v60 = vpop.xlane.xlu1 %346  ;;  %v684_v32 = vmul.f32 %v3768_v44, %v3768_v44  ;;  %v685_v55 = vmul.f32 %v3773_v46, %v3773_v46  ;;  %v446_v37 = vmul.f32 0.0051020407, %v343_v24  ;;  %v905_v54 = vadd.f32 %v904_v56, %v682_v33 }
  0xf8   :  { %5680 = vst [vmem:[#allocation100_spill] sm:$0xff] %v3779_v17  ;;  %5681 = vst [vmem:[#allocation101_spill] sm:$0xff] %v3784_v48  ;;  %v686_v43 = vmul.f32 %v3779_v17, %v3779_v17  ;;  %v687_v12 = vmul.f32 %v3784_v48, %v3784_v48  ;;  %898 = vadd.xlane.f32.xlu1 %v897_v47  ;;  %v447_v38 = vmul.f32 0.0051020407, %v347_v60  ;;  %902 = vadd.xlane.f32.xlu0 %v901_v52  ;;  %v2461_v47 = vld [vmem:[%s5287_s0 + $0x330] sm:$0xff]  ;;  %v2462_v52 = vld [vmem:[%s5287_s0 + $0x338] sm:$0xff] }
  0xf9   :  { %v3798_v62 = vsub.f32 %v2459_v59, %v446_v37  ;;  %v3803_v24 = vsub.f32 %v2460_v49, %v446_v37  ;;  %v908_v17 = vsel %vm139_vm0, %v685_v55, 0.0 }
  0xfa   :  { %v3809_v33 = vsub.f32 %v2461_v47, %v447_v38  ;;  %v3814_v56 = vsub.f32 %v2462_v52, %v447_v38  ;;  %v912_v60 = vsel %vm139_vm0, %v687_v12, 0.0  ;;  %v351_v59 = vpop.xlane.xlu0 %350  ;;  %v909_v48 = vadd.f32 %v908_v17, %v684_v32  ;;  %v2463_v12 = vld [vmem:[%s5287_s0 + $0x340] sm:$0xff]  ;;  %v2464_v32 = vld [vmem:[%s5287_s0 + $0x348] sm:$0xff] }
  0xfb   :  { %5682 = vst [vmem:[#allocation102_spill] sm:$0xff] %v3798_v62  ;;  %5683 = vst [vmem:[#allocation103_spill] sm:$0xff] %v3803_v24  ;;  %v355_v37 = vpop.xlane.xlu1 %354  ;;  %v688_v55 = vmul.f32 %v3798_v62, %v3798_v62  ;;  %v689_v49 = vmul.f32 %v3803_v24, %v3803_v24  ;;  %v448_v46 = vmul.f32 0.0051020407, %v351_v59  ;;  %v913_v52 = vadd.f32 %v912_v60, %v686_v43 }
  0xfc   :  { %5684 = vst [vmem:[#allocation104_spill] sm:$0xff] %v3809_v33  ;;  %5685 = vst [vmem:[#allocation105_spill] sm:$0xff] %v3814_v56  ;;  %v690_v47 = vmul.f32 %v3809_v33, %v3809_v33  ;;  %v691_v44 = vmul.f32 %v3814_v56, %v3814_v56  ;;  %906 = vadd.xlane.f32.xlu1 %v905_v54  ;;  %v449_v38 = vmul.f32 0.0051020407, %v355_v37  ;;  %910 = vadd.xlane.f32.xlu0 %v909_v48  ;;  %v2465_v54 = vld [vmem:[%s5287_s0 + $0x350] sm:$0xff]  ;;  %v2466_v48 = vld [vmem:[%s5287_s0 + $0x358] sm:$0xff] }
  0xfd   :  { %v3828_v17 = vsub.f32 %v2463_v12, %v448_v46  ;;  %v3833_v59 = vsub.f32 %v2464_v32, %v448_v46  ;;  %v916_v33 = vsel %vm139_vm0, %v689_v49, 0.0 }
  0xfe   :  { %v3839_v43 = vsub.f32 %v2465_v54, %v449_v38  ;;  %v3844_v60 = vsub.f32 %v2466_v48, %v449_v38  ;;  %v920_v37 = vsel %vm139_vm0, %v691_v44, 0.0  ;;  %v359_v12 = vpop.xlane.xlu0 %358  ;;  %v917_v56 = vadd.f32 %v916_v33, %v688_v55  ;;  %v2467_v44 = vld [vmem:[%s5287_s0 + $0x360] sm:$0xff]  ;;  %v2468_v55 = vld [vmem:[%s5287_s0 + $0x368] sm:$0xff] }
  0xff   :  { %5686 = vst [vmem:[#allocation106_spill] sm:$0xff] %v3828_v17  ;;  %5687 = vst [vmem:[#allocation107_spill] sm:$0xff] %v3833_v59  ;;  %v363_v46 = vpop.xlane.xlu1 %362  ;;  %v692_v49 = vmul.f32 %v3828_v17, %v3828_v17  ;;  %v693_v32 = vmul.f32 %v3833_v59, %v3833_v59  ;;  %v450_v24 = vmul.f32 0.0051020407, %v359_v12  ;;  %v921_v48 = vadd.f32 %v920_v37, %v690_v47 }
 0x100   :  { %5688 = vst [vmem:[#allocation108_spill] sm:$0xff] %v3839_v43  ;;  %5689 = vst [vmem:[#allocation109_spill] sm:$0xff] %v3844_v60  ;;  %v694_v54 = vmul.f32 %v3839_v43, %v3839_v43  ;;  %v695_v62 = vmul.f32 %v3844_v60, %v3844_v60  ;;  %914 = vadd.xlane.f32.xlu1 %v913_v52  ;;  %v451_v38 = vmul.f32 0.0051020407, %v363_v46  ;;  %918 = vadd.xlane.f32.xlu0 %v917_v56  ;;  %v2469_v52 = vld [vmem:[%s5287_s0 + $0x370] sm:$0xff]  ;;  %v2470_v56 = vld [vmem:[%s5287_s0 + $0x378] sm:$0xff] }
 0x101   :  { %v3858_v33 = vsub.f32 %v2467_v44, %v450_v24  ;;  %v3863_v12 = vsub.f32 %v2468_v55, %v450_v24  ;;  %v924_v43 = vsel %vm139_vm0, %v693_v32, 0.0 }
 0x102   :  { %v3869_v47 = vsub.f32 %v2469_v52, %v451_v38  ;;  %v3874_v37 = vsub.f32 %v2470_v56, %v451_v38  ;;  %v928_v46 = vsel %vm139_vm0, %v695_v62, 0.0  ;;  %v367_v44 = vpop.xlane.xlu0 %366  ;;  %v925_v60 = vadd.f32 %v924_v43, %v692_v49  ;;  %v2471_v62 = vld [vmem:[%s5287_s0 + $0x380] sm:$0xff]  ;;  %v2472_v49 = vld [vmem:[%s5287_s0 + $0x388] sm:$0xff] }
 0x103   :  { %5690 = vst [vmem:[#allocation110_spill] sm:$0xff] %v3858_v33  ;;  %5691 = vst [vmem:[#allocation111_spill] sm:$0xff] %v3863_v12  ;;  %v371_v24 = vpop.xlane.xlu1 %370  ;;  %v696_v32 = vmul.f32 %v3858_v33, %v3858_v33  ;;  %v697_v55 = vmul.f32 %v3863_v12, %v3863_v12  ;;  %v452_v59 = vmul.f32 0.0051020407, %v367_v44  ;;  %v929_v56 = vadd.f32 %v928_v46, %v694_v54 }
 0x104   :  { %5692 = vst [vmem:[#allocation112_spill] sm:$0xff] %v3869_v47  ;;  %5693 = vst [vmem:[#allocation113_spill] sm:$0xff] %v3874_v37  ;;  %v698_v52 = vmul.f32 %v3869_v47, %v3869_v47  ;;  %v699_v17 = vmul.f32 %v3874_v37, %v3874_v37  ;;  %922 = vadd.xlane.f32.xlu1 %v921_v48  ;;  %v453_v38 = vmul.f32 0.0051020407, %v371_v24  ;;  %926 = vadd.xlane.f32.xlu0 %v925_v60  ;;  %v2473_v48 = vld [vmem:[%s5287_s0 + $0x390] sm:$0xff]  ;;  %v2474_v60 = vld [vmem:[%s5287_s0 + $0x398] sm:$0xff] }
 0x105   :  { %v3888_v43 = vsub.f32 %v2471_v62, %v452_v59  ;;  %v3893_v44 = vsub.f32 %v2472_v49, %v452_v59  ;;  %v932_v47 = vsel %vm139_vm0, %v697_v55, 0.0 }
 0x106   :  { %v3899_v54 = vsub.f32 %v2473_v48, %v453_v38  ;;  %v3904_v46 = vsub.f32 %v2474_v60, %v453_v38  ;;  %v936_v24 = vsel %vm139_vm0, %v699_v17, 0.0  ;;  %v375_v62 = vpop.xlane.xlu0 %374  ;;  %v933_v37 = vadd.f32 %v932_v47, %v696_v32  ;;  %v2475_v17 = vld [vmem:[%s5287_s0 + $0x3a0] sm:$0xff]  ;;  %v2476_v32 = vld [vmem:[%s5287_s0 + $0x3a8] sm:$0xff] }
 0x107   :  { %5694 = vst [vmem:[#allocation114_spill] sm:$0xff] %v3888_v43  ;;  %5695 = vst [vmem:[#allocation115_spill] sm:$0xff] %v3893_v44  ;;  %v379_v59 = vpop.xlane.xlu1 %378  ;;  %v700_v55 = vmul.f32 %v3888_v43, %v3888_v43  ;;  %v701_v49 = vmul.f32 %v3893_v44, %v3893_v44  ;;  %v454_v12 = vmul.f32 0.0051020407, %v375_v62  ;;  %v937_v60 = vadd.f32 %v936_v24, %v698_v52 }
 0x108   :  { %5696 = vst [vmem:[#allocation116_spill] sm:$0xff] %v3899_v54  ;;  %5697 = vst [vmem:[#allocation117_spill] sm:$0xff] %v3904_v46  ;;  %v702_v48 = vmul.f32 %v3899_v54, %v3899_v54  ;;  %v703_v33 = vmul.f32 %v3904_v46, %v3904_v46  ;;  %930 = vadd.xlane.f32.xlu1 %v929_v56  ;;  %v455_v38 = vmul.f32 0.0051020407, %v379_v59  ;;  %934 = vadd.xlane.f32.xlu0 %v933_v37  ;;  %v2477_v56 = vld [vmem:[%s5287_s0 + $0x3b0] sm:$0xff]  ;;  %v2478_v37 = vld [vmem:[%s5287_s0 + $0x3b8] sm:$0xff] }
 0x109   :  { %v3918_v47 = vsub.f32 %v2475_v17, %v454_v12  ;;  %v3923_v62 = vsub.f32 %v2476_v32, %v454_v12  ;;  %v940_v54 = vsel %vm139_vm0, %v701_v49, 0.0 }
 0x10a   :  { %v3929_v52 = vsub.f32 %v2477_v56, %v455_v38  ;;  %v3934_v24 = vsub.f32 %v2478_v37, %v455_v38  ;;  %v944_v59 = vsel %vm139_vm0, %v703_v33, 0.0  ;;  %v383_v17 = vpop.xlane.xlu0 %382  ;;  %v941_v46 = vadd.f32 %v940_v54, %v700_v55  ;;  %v2479_v33 = vld [vmem:[%s5287_s0 + $0x3c0] sm:$0xff]  ;;  %v2480_v55 = vld [vmem:[%s5287_s0 + $0x3c8] sm:$0xff] }
 0x10b   :  { %5698 = vst [vmem:[#allocation118_spill] sm:$0xff] %v3918_v47  ;;  %5699 = vst [vmem:[#allocation119_spill] sm:$0xff] %v3923_v62  ;;  %v387_v12 = vpop.xlane.xlu1 %386  ;;  %v704_v49 = vmul.f32 %v3918_v47, %v3918_v47  ;;  %v705_v32 = vmul.f32 %v3923_v62, %v3923_v62  ;;  %v456_v44 = vmul.f32 0.0051020407, %v383_v17  ;;  %v945_v37 = vadd.f32 %v944_v59, %v702_v48 }
 0x10c   :  { %5700 = vst [vmem:[#allocation120_spill] sm:$0xff] %v3929_v52  ;;  %5701 = vst [vmem:[#allocation121_spill] sm:$0xff] %v3934_v24  ;;  %v706_v56 = vmul.f32 %v3929_v52, %v3929_v52  ;;  %v707_v43 = vmul.f32 %v3934_v24, %v3934_v24  ;;  %938 = vadd.xlane.f32.xlu1 %v937_v60  ;;  %v457_v38 = vmul.f32 0.0051020407, %v387_v12  ;;  %942 = vadd.xlane.f32.xlu0 %v941_v46  ;;  %v2481_v60 = vld [vmem:[%s5287_s0 + $0x3d0] sm:$0xff]  ;;  %v2482_v46 = vld [vmem:[%s5287_s0 + $0x3d8] sm:$0xff] }
 0x10d   :  { %v3948_v54 = vsub.f32 %v2479_v33, %v456_v44  ;;  %v3953_v17 = vsub.f32 %v2480_v55, %v456_v44  ;;  %v948_v52 = vsel %vm139_vm0, %v705_v32, 0.0 }
 0x10e   :  { %v3959_v48 = vsub.f32 %v2481_v60, %v457_v38  ;;  %v3964_v59 = vsub.f32 %v2482_v46, %v457_v38  ;;  %v952_v12 = vsel %vm139_vm0, %v707_v43, 0.0  ;;  %v391_v33 = vpop.xlane.xlu0 %390  ;;  %v949_v24 = vadd.f32 %v948_v52, %v704_v49  ;;  %v2483_v43 = vld [vmem:[%s5287_s0 + $0x3e0] sm:$0xff]  ;;  %v2484_v49 = vld [vmem:[%s5287_s0 + $0x3e8] sm:$0xff] }
 0x10f   :  { %5702 = vst [vmem:[#allocation122_spill] sm:$0xff] %v3948_v54  ;;  %5703 = vst [vmem:[#allocation123_spill] sm:$0xff] %v3953_v17  ;;  %v395_v44 = vpop.xlane.xlu1 %394  ;;  %v708_v32 = vmul.f32 %v3948_v54, %v3948_v54  ;;  %v709_v55 = vmul.f32 %v3953_v17, %v3953_v17  ;;  %v458_v62 = vmul.f32 0.0051020407, %v391_v33  ;;  %v953_v46 = vadd.f32 %v952_v12, %v706_v56 }
 0x110   :  { %5704 = vst [vmem:[#allocation124_spill] sm:$0xff] %v3959_v48  ;;  %5705 = vst [vmem:[#allocation125_spill] sm:$0xff] %v3964_v59  ;;  %v710_v60 = vmul.f32 %v3959_v48, %v3959_v48  ;;  %v711_v47 = vmul.f32 %v3964_v59, %v3964_v59  ;;  %946 = vadd.xlane.f32.xlu1 %v945_v37  ;;  %v459_v38 = vmul.f32 0.0051020407, %v395_v44  ;;  %950 = vadd.xlane.f32.xlu0 %v949_v24  ;;  %v2485_v37 = vld [vmem:[%s5287_s0 + $0x3f0] sm:$0xff]  ;;  %v2486_v24 = vld [vmem:[%s5287_s0 + $0x3f8] sm:$0xff] }
 0x111   :  { %v3978_v52 = vsub.f32 %v2483_v43, %v458_v62  ;;  %v3983_v33 = vsub.f32 %v2484_v49, %v458_v62  ;;  %v956_v48 = vsel %vm139_vm0, %v709_v55, 0.0 }
 0x112   :  { %v3989_v56 = vsub.f32 %v2485_v37, %v459_v38  ;;  %v3994_v12 = vsub.f32 %v2486_v24, %v459_v38  ;;  %v960_v44 = vsel %vm139_vm0, %v711_v47, 0.0  ;;  %v957_v43 = vadd.f32 %v956_v48, %v708_v32 }
 0x113   :  { %5706 = vst [vmem:[#allocation126_spill] sm:$0xff] %v3978_v52  ;;  %5707 = vst [vmem:[#allocation127_spill] sm:$0xff] %v3983_v33  ;;  %v712_v62 = vmul.f32 %v3978_v52, %v3978_v52  ;;  %v713_v55 = vmul.f32 %v3983_v33, %v3983_v33  ;;  %v961_v59 = vadd.f32 %v960_v44, %v710_v60 }
 0x114   :  { %5708 = vst [vmem:[#allocation128_spill] sm:$0xff] %v3989_v56  ;;  %5709 = vst [vmem:[#allocation129_spill] sm:$0xff] %v3994_v12  ;;  %v714_v49 = vmul.f32 %v3989_v56, %v3989_v56  ;;  %v715_v37 = vmul.f32 %v3994_v12, %v3994_v12  ;;  %954 = vadd.xlane.f32.xlu1 %v953_v46  ;;  %958 = vadd.xlane.f32.xlu0 %v957_v43 }
 0x115   :  { %v964_v38 = vsel %vm139_vm0, %v713_v55, 0.0 }
 0x116   :  { %v968_v47 = vsel %vm139_vm0, %v715_v37, 0.0  ;;  %v965_v48 = vadd.f32 %v964_v38, %v712_v62 }
 0x117   :  { %v969_v32 = vadd.f32 %v968_v47, %v714_v49 }
 0x118   :  { %962 = vadd.xlane.f32.xlu1 %v961_v59  ;;  %966 = vadd.xlane.f32.xlu0 %v965_v48 }
 0x11c   :  { %970 = vadd.xlane.f32.xlu1 %v969_v32  ;;  %v4016_v32 = vld [vmem:[%s5288_s1 + $0x8] sm:$0xff] }
 0x129   :  { %v719_v24 = vpop.xlane.xlu0 %718 }
 0x12a   :  { %v972_v33 = vmul.f32 0.0051020407, %v719_v24 }
 0x12c   :  { %v1100_v52 = vadd.f32 1e-05, %v972_v33 }
 0x12d   :  { %v723_v17 = vpop.xlane.xlu1 %722  ;;  %v727_v56 = vpop.xlane.xlu0 %726 }
 0x12e   :  { %2326 = vrsqrt.f32 %v1100_v52  ;;  %v973_v54 = vmul.f32 0.0051020407, %v723_v17  ;;  %v974_v12 = vmul.f32 0.0051020407, %v727_v56  ;;  %v4010_v52 = vld [vmem:[%s5288_s1] sm:$0xff] }
 0x130   :  { %v1101_v46 = vadd.f32 1e-05, %v973_v54  ;;  %v1102_v60 = vadd.f32 1e-05, %v974_v12 }
 0x131   :  { %v731_v44 = vpop.xlane.xlu1 %730  ;;  %v735_v43 = vpop.xlane.xlu0 %734 }
 0x132   :  { %2328 = vrsqrt.f32 %v1101_v46  ;;  %v975_v55 = vmul.f32 0.0051020407, %v731_v44  ;;  %v976_v37 = vmul.f32 0.0051020407, %v735_v43  ;;  %v4021_v46 = vld [vmem:[%s5288_s1 + $0x10] sm:$0xff] }
 0x133   :  { %2330 = vrsqrt.f32 %v1102_v60 }
 0x134   :  { %v1103_v59 = vadd.f32 1e-05, %v975_v55  ;;  %v1104_v47 = vadd.f32 1e-05, %v976_v37 }
 0x135   :  { %v739_v62 = vpop.xlane.xlu1 %738  ;;  %v743_v49 = vpop.xlane.xlu0 %742 }
 0x136   :  { %2332 = vrsqrt.f32 %v1103_v59  ;;  %v977_v38 = vmul.f32 0.0051020407, %v739_v62  ;;  %v978_v56 = vmul.f32 0.0051020407, %v743_v49 }
 0x137   :  { %2334 = vrsqrt.f32 %v1104_v47 }
 0x138   :  { %v2327_v17 = vpop.eup %2326  ;;  %v1105_v48 = vadd.f32 1e-05, %v977_v38  ;;  %v1106_v37 = vadd.f32 1e-05, %v978_v56 }
 0x139   :  { %v747_v54 = vpop.xlane.xlu1 %746  ;;  %v1228_v33 = vmul.f32 %v2327_v17, %v4010_v52  ;;  %v751_v12 = vpop.xlane.xlu0 %750  ;;  %v4028_v17 = vld [vmem:[%s5288_s1 + $0x18] sm:$0xff] }
 0x13a   :  { %v979_v44 = vmul.f32 0.0051020407, %v747_v54  ;;  %2336 = vrsqrt.f32 %v1105_v48  ;;  %v980_v36 = vmul.f32 0.0051020407, %v751_v12 }
 0x13b   :  { %1294 = vperm.xlu0 %2322, %v1228_v33   ;;  %2338 = vrsqrt.f32 %v1106_v37 }
 0x13c   :  { %v2329_v24 = vpop.eup %2328  ;;  %v1107_v33 = vadd.f32 1e-05, %v979_v44 }
 0x13d   :  { %v2331_v60 = vpop.eup %2330  ;;  %v755_v43 = vpop.xlane.xlu1 %754  ;;  %v1229_v55 = vmul.f32 %v2329_v24, %v4016_v32 }
 0x13e   :  { %v759_v59 = vpop.xlane.xlu0 %758  ;;  %v981_v62 = vmul.f32 0.0051020407, %v755_v43  ;;  %v1230_v49 = vmul.f32 %v2331_v60, %v4021_v46  ;;  %v4034_v60 = vld [vmem:[%s5288_s1 + $0x20] sm:$0xff] }
 0x13f   :  { %1299 = vperm.xlu1 %2323, %v1229_v55   ;;  %v982_v44 = vmul.f32 0.0051020407, %v759_v59  ;;  %v4045_v59 = vld [vmem:[%s5288_s1 + $0x48] sm:$0xff] }
 0x140   :  { %v2333_v38 = vpop.eup %2332  ;;  %v1109_v47 = vadd.f32 1e-05, %v981_v62  ;;  %v1108_v62 = vadd.f32 1e-05, %v980_v36 }
 0x141   :  { %v763_v54 = vpop.xlane.xlu1 %762  ;;  %v1231_v48 = vmul.f32 %v2333_v38, %v4028_v17  ;;  %v2335_v24 = vpop.eup %2334  ;;  %v4040_v38 = vld [vmem:[%s5288_s1 + $0x28] sm:$0xff]  ;;  %v1110_v39 = vadd.f32 1e-05, %v982_v44 }
 0x142   :  { %v767_v23 = vpop.xlane.xlu0 %766  ;;  %2340 = vrsqrt.f32 %v1109_v47  ;;  %v983_v56 = vmul.f32 0.0051020407, %v763_v54  ;;  %v1232_v47 = vmul.f32 %v2335_v24, %v4034_v60 }
 0x143   :  { %1304 = vperm.xlu1 %2323, %v1230_v49   ;;  %2342 = vrsqrt.f32 %v1107_v33  ;;  %v984_v33 = vmul.f32 0.0051020407, %v767_v23 }
 0x144   :  { %v1111_v43 = vadd.f32 1e-05, %v983_v56  ;;  %v2337_v49 = vpop.eup %2336 }
 0x145   :  { %v771_v55 = vpop.xlane.xlu1 %770  ;;  %v1233_v24 = vmul.f32 %v2337_v49, %v4040_v38 }
 0x146   :  { %v775_v37 = vpop.xlane.xlu0 %774  ;;  %2344 = vrsqrt.f32 %v1111_v43  ;;  %v985_v12 = vmul.f32 0.0051020407, %v771_v55 }
 0x147   :  { %1309 = vperm.xlu1 %2323, %v1231_v48   ;;  %2346 = vrsqrt.f32 %v1108_v62  ;;  %v2339_v48 = vpop.eup %2338  ;;  %v4051_v62 = vld [vmem:[%s5288_s1 + $0x30] sm:$0xff] }
 0x148   :  { %v1113_v54 = vadd.f32 1e-05, %v985_v12  ;;  %v1112_v12 = vadd.f32 1e-05, %v984_v33  ;;  %v4063_v33 = vld [vmem:[%s5288_s1 + $0x38] sm:$0xff] }
 0x149   :  { %v779_v56 = vpop.xlane.xlu1 %778 }
 0x14a   :  { %v783_v8 = vpop.xlane.xlu0 %782  ;;  %2348 = vrsqrt.f32 %v1113_v54  ;;  %v987_v36 = vmul.f32 0.0051020407, %v779_v56  ;;  %v986_v54 = vmul.f32 0.0051020407, %v775_v37 }
 0x14b   :  { %1314 = vperm.xlu1 %2323, %v1232_v47   ;;  %2350 = vrsqrt.f32 %v1110_v39  ;;  %v4057_v47 = vld [vmem:[%s5288_s1 + $0x58] sm:$0xff] }
 0x14c   :  { %v2341_v43 = vpop.eup %2340  ;;  %v1115_v55 = vadd.f32 1e-05, %v987_v36  ;;  %v1234_v36 = vmul.f32 %v2339_v48, %v4051_v62  ;;  %v4069_v48 = vld [vmem:[%s5288_s1 + $0x68] sm:$0xff] }
 0x14d   :  { %v787_v23 = vpop.xlane.xlu1 %786  ;;  %v1237_v44 = vmul.f32 %v2341_v43, %v4045_v59  ;;  %v2343_v49 = vpop.eup %2342 }
 0x14e   :  { %v791_v56 = vpop.xlane.xlu0 %790  ;;  %2352 = vrsqrt.f32 %v1115_v55  ;;  %v989_v40 = vmul.f32 0.0051020407, %v787_v23  ;;  %v1114_v55 = vadd.f32 1e-05, %v986_v54  ;;  %v988_v23 = vmul.f32 0.0051020407, %v783_v8 }
 0x14f   :  { %1339 = vperm.xlu0 %2322, %v1237_v44   ;;  %1319 = vperm.xlu1 %2323, %v1233_v24   ;;  %2354 = vrsqrt.f32 %v1112_v12  ;;  %v1235_v24 = vmul.f32 %v2343_v49, %v4063_v33  ;;  %v4081_v49 = vld [vmem:[%s5288_s1 + $0x78] sm:$0xff] }
 0x150   :  { %v2345_v30 = vpop.eup %2344  ;;  %v1117_v39 = vadd.f32 1e-05, %v989_v40 }
 0x151   :  { %v795_v37 = vpop.xlane.xlu1 %794  ;;  %v1239_v43 = vmul.f32 %v2345_v30, %v4057_v47  ;;  %v2347_v40 = vpop.eup %2346  ;;  %v4075_v30 = vld [vmem:[%s5288_s1 + $0x40] sm:$0xff] }
 0x152   :  { %v799_v31 = vpop.xlane.xlu0 %798  ;;  %2356 = vrsqrt.f32 %v1117_v39  ;;  %v991_v27 = vmul.f32 0.0051020407, %v795_v37  ;;  %v1116_v39 = vadd.f32 1e-05, %v988_v23  ;;  %v990_v37 = vmul.f32 0.0051020407, %v791_v56 }
 0x153   :  { %1349 = vperm.xlu0 %2322, %v1239_v43   ;;  %1324 = vperm.xlu1 %2323, %v1234_v36   ;;  %2358 = vrsqrt.f32 %v1114_v55  ;;  %v1236_v36 = vmul.f32 %v2347_v40, %v4075_v30  ;;  %v4087_v23 = vld [vmem:[%s5288_s1 + $0x50] sm:$0xff]  ;;  %v4093_v40 = vld [vmem:[%s5288_s1 + $0x88] sm:$0xff] }
 0x154   :  { %v2349_v44 = vpop.eup %2348  ;;  %v1119_v12 = vadd.f32 1e-05, %v991_v27 }
 0x155   :  { %v803_v8 = vpop.xlane.xlu1 %802  ;;  %v1241_v54 = vmul.f32 %v2349_v44, %v4069_v48  ;;  %v2351_v27 = vpop.eup %2350 }
 0x156   :  { %v807_v16 = vpop.xlane.xlu0 %806  ;;  %2360 = vrsqrt.f32 %v1119_v12  ;;  %v993_v22 = vmul.f32 0.0051020407, %v803_v8  ;;  %v1118_v12 = vadd.f32 1e-05, %v990_v37  ;;  %v992_v8 = vmul.f32 0.0051020407, %v799_v31 }
 0x157   :  { %1359 = vperm.xlu0 %2322, %v1241_v54   ;;  %1329 = vperm.xlu1 %2323, %v1235_v24   ;;  %2362 = vrsqrt.f32 %v1116_v39  ;;  %v1238_v24 = vmul.f32 %v2351_v27, %v4087_v23  ;;  %v4099_v37 = vld [vmem:[%s5288_s1 + $0x60] sm:$0xff]  ;;  %v4105_v27 = vld [vmem:[%s5288_s1 + $0x98] sm:$0xff] }
 0x158   :  { %v2353_v43 = vpop.eup %2352  ;;  %v1121_v55 = vadd.f32 1e-05, %v993_v22 }
 0x159   :  { %v811_v56 = vpop.xlane.xlu1 %810  ;;  %v1243_v44 = vmul.f32 %v2353_v43, %v4081_v49  ;;  %v2355_v22 = vpop.eup %2354 }
 0x15a   :  { %v815_v28 = vpop.xlane.xlu0 %814  ;;  %2364 = vrsqrt.f32 %v1121_v55  ;;  %v995_v63 = vmul.f32 0.0051020407, %v811_v56  ;;  %v1120_v55 = vadd.f32 1e-05, %v992_v8  ;;  %v994_v56 = vmul.f32 0.0051020407, %v807_v16 }
 0x15b   :  { %1369 = vperm.xlu0 %2322, %v1243_v44   ;;  %1334 = vperm.xlu1 %2323, %v1236_v36   ;;  %2366 = vrsqrt.f32 %v1118_v12  ;;  %v1240_v36 = vmul.f32 %v2355_v22, %v4099_v37  ;;  %v4111_v8 = vld [vmem:[%s5288_s1 + $0x70] sm:$0xff]  ;;  %v4117_v22 = vld [vmem:[%s5288_s1 + $0xa8] sm:$0xff] }
 0x15c   :  { %v2357_v54 = vpop.eup %2356  ;;  %v1123_v39 = vadd.f32 1e-05, %v995_v63 }
 0x15d   :  { %v819_v31 = vpop.xlane.xlu1 %818  ;;  %v1245_v43 = vmul.f32 %v2357_v54, %v4093_v40  ;;  %v2359_v63 = vpop.eup %2358 }
 0x15e   :  { %v823_v14 = vpop.xlane.xlu0 %822  ;;  %2368 = vrsqrt.f32 %v1123_v39  ;;  %v997_v18 = vmul.f32 0.0051020407, %v819_v31  ;;  %v1122_v39 = vadd.f32 1e-05, %v994_v56  ;;  %v996_v31 = vmul.f32 0.0051020407, %v815_v28 }
 0x15f   :  { %1379 = vperm.xlu0 %2322, %v1245_v43   ;;  %1344 = vperm.xlu1 %2323, %v1238_v24   ;;  %2370 = vrsqrt.f32 %v1120_v55  ;;  %v1242_v24 = vmul.f32 %v2359_v63, %v4111_v8  ;;  %v4123_v56 = vld [vmem:[%s5288_s1 + $0x80] sm:$0xff]  ;;  %v4129_v63 = vld [vmem:[%s5288_s1 + $0xb8] sm:$0xff] }
 0x160   :  { %v2361_v44 = vpop.eup %2360  ;;  %v1125_v12 = vadd.f32 1e-05, %v997_v18 }
 0x161   :  { %v827_v16 = vpop.xlane.xlu1 %826  ;;  %v1247_v54 = vmul.f32 %v2361_v44, %v4105_v27  ;;  %v2363_v18 = vpop.eup %2362 }
 0x162   :  { %v831_v5 = vpop.xlane.xlu0 %830  ;;  %2372 = vrsqrt.f32 %v1125_v12  ;;  %v999_v1 = vmul.f32 0.0051020407, %v827_v16  ;;  %v1124_v12 = vadd.f32 1e-05, %v996_v31  ;;  %v998_v16 = vmul.f32 0.0051020407, %v823_v14 }
 0x163   :  { %1389 = vperm.xlu0 %2322, %v1247_v54   ;;  %1354 = vperm.xlu1 %2323, %v1240_v36   ;;  %2374 = vrsqrt.f32 %v1122_v39  ;;  %v1244_v36 = vmul.f32 %v2363_v18, %v4123_v56  ;;  %v4135_v31 = vld [vmem:[%s5288_s1 + $0x90] sm:$0xff]  ;;  %v4141_v18 = vld [vmem:[%s5288_s1 + $0xc8] sm:$0xff] }
 0x164   :  { %v2365_v43 = vpop.eup %2364  ;;  %v1127_v55 = vadd.f32 1e-05, %v999_v1 }
 0x165   :  { %v835_v28 = vpop.xlane.xlu1 %834  ;;  %v1249_v44 = vmul.f32 %v2365_v43, %v4117_v22  ;;  %v2367_v1 = vpop.eup %2366 }
 0x166   :  { %v839_v58 = vpop.xlane.xlu0 %838  ;;  %2376 = vrsqrt.f32 %v1127_v55  ;;  %v1001_v20 = vmul.f32 0.0051020407, %v835_v28  ;;  %v1126_v55 = vadd.f32 1e-05, %v998_v16  ;;  %v1000_v28 = vmul.f32 0.0051020407, %v831_v5 }
 0x167   :  { %1399 = vperm.xlu0 %2322, %v1249_v44   ;;  %1364 = vperm.xlu1 %2323, %v1242_v24   ;;  %2378 = vrsqrt.f32 %v1124_v12  ;;  %v1246_v24 = vmul.f32 %v2367_v1, %v4135_v31  ;;  %v4147_v16 = vld [vmem:[%s5288_s1 + $0xa0] sm:$0xff]  ;;  %v4153_v1 = vld [vmem:[%s5288_s1 + $0xd8] sm:$0xff] }
 0x168   :  { %v2369_v54 = vpop.eup %2368  ;;  %v1129_v39 = vadd.f32 1e-05, %v1001_v20 }
 0x169   :  { %v843_v14 = vpop.xlane.xlu1 %842  ;;  %v1251_v43 = vmul.f32 %v2369_v54, %v4129_v63  ;;  %v2371_v20 = vpop.eup %2370 }
 0x16a   :  { %v847_v11 = vpop.xlane.xlu0 %846  ;;  %2380 = vrsqrt.f32 %v1129_v39  ;;  %v1003_v10 = vmul.f32 0.0051020407, %v843_v14  ;;  %v1128_v39 = vadd.f32 1e-05, %v1000_v28  ;;  %v1002_v14 = vmul.f32 0.0051020407, %v839_v58 }
 0x16b   :  { %1409 = vperm.xlu0 %2322, %v1251_v43   ;;  %1374 = vperm.xlu1 %2323, %v1244_v36   ;;  %2382 = vrsqrt.f32 %v1126_v55  ;;  %v1248_v36 = vmul.f32 %v2371_v20, %v4147_v16  ;;  %v4159_v28 = vld [vmem:[%s5288_s1 + $0xb0] sm:$0xff]  ;;  %v4165_v20 = vld [vmem:[%s5288_s1 + $0xe8] sm:$0xff] }
 0x16c   :  { %v2373_v44 = vpop.eup %2372  ;;  %v1131_v12 = vadd.f32 1e-05, %v1003_v10 }
 0x16d   :  { %v851_v5 = vpop.xlane.xlu1 %850  ;;  %v1253_v54 = vmul.f32 %v2373_v44, %v4141_v18  ;;  %v2375_v10 = vpop.eup %2374 }
 0x16e   :  { %v855_v50 = vpop.xlane.xlu0 %854  ;;  %2384 = vrsqrt.f32 %v1131_v12  ;;  %v1005_v13 = vmul.f32 0.0051020407, %v851_v5  ;;  %v1130_v12 = vadd.f32 1e-05, %v1002_v14  ;;  %v1004_v5 = vmul.f32 0.0051020407, %v847_v11 }
 0x16f   :  { %1419 = vperm.xlu0 %2322, %v1253_v54   ;;  %1384 = vperm.xlu1 %2323, %v1246_v24   ;;  %2386 = vrsqrt.f32 %v1128_v39  ;;  %v1250_v24 = vmul.f32 %v2375_v10, %v4159_v28  ;;  %v4171_v14 = vld [vmem:[%s5288_s1 + $0xc0] sm:$0xff]  ;;  %v4177_v10 = vld [vmem:[%s5288_s1 + $0xf8] sm:$0xff] }
 0x170   :  { %v2377_v43 = vpop.eup %2376  ;;  %v1133_v55 = vadd.f32 1e-05, %v1005_v13 }
 0x171   :  { %v859_v58 = vpop.xlane.xlu1 %858  ;;  %v1255_v44 = vmul.f32 %v2377_v43, %v4153_v1  ;;  %v2379_v13 = vpop.eup %2378 }
 0x172   :  { %v863_v19 = vpop.xlane.xlu0 %862  ;;  %2388 = vrsqrt.f32 %v1133_v55  ;;  %v1007_v21 = vmul.f32 0.0051020407, %v859_v58  ;;  %v1132_v55 = vadd.f32 1e-05, %v1004_v5  ;;  %v1006_v58 = vmul.f32 0.0051020407, %v855_v50 }
 0x173   :  { %1429 = vperm.xlu0 %2322, %v1255_v44   ;;  %1394 = vperm.xlu1 %2323, %v1248_v36   ;;  %2390 = vrsqrt.f32 %v1130_v12  ;;  %v1252_v36 = vmul.f32 %v2379_v13, %v4171_v14  ;;  %v4183_v5 = vld [vmem:[%s5288_s1 + $0xd0] sm:$0xff]  ;;  %v4189_v13 = vld [vmem:[%s5288_s1 + $0x108] sm:$0xff] }
 0x174   :  { %v2381_v54 = vpop.eup %2380  ;;  %v1135_v39 = vadd.f32 1e-05, %v1007_v21 }
 0x175   :  { %v867_v11 = vpop.xlane.xlu1 %866  ;;  %v1257_v43 = vmul.f32 %v2381_v54, %v4165_v20  ;;  %v2383_v21 = vpop.eup %2382 }
 0x176   :  { %v871_v42 = vpop.xlane.xlu0 %870  ;;  %2392 = vrsqrt.f32 %v1135_v39  ;;  %v1009_v61 = vmul.f32 0.0051020407, %v867_v11  ;;  %v1134_v39 = vadd.f32 1e-05, %v1006_v58  ;;  %v1008_v11 = vmul.f32 0.0051020407, %v863_v19 }
 0x177   :  { %1439 = vperm.xlu0 %2322, %v1257_v43   ;;  %1404 = vperm.xlu1 %2323, %v1250_v24   ;;  %2394 = vrsqrt.f32 %v1132_v55  ;;  %v1254_v24 = vmul.f32 %v2383_v21, %v4183_v5  ;;  %v4195_v58 = vld [vmem:[%s5288_s1 + $0xe0] sm:$0xff]  ;;  %v4201_v21 = vld [vmem:[%s5288_s1 + $0x118] sm:$0xff] }
 0x178   :  { %v2385_v44 = vpop.eup %2384  ;;  %v1137_v12 = vadd.f32 1e-05, %v1009_v61 }
 0x179   :  { %v875_v50 = vpop.xlane.xlu1 %874  ;;  %v1259_v54 = vmul.f32 %v2385_v44, %v4177_v10  ;;  %v2387_v61 = vpop.eup %2386 }
 0x17a   :  { %v879_v35 = vpop.xlane.xlu0 %878  ;;  %2396 = vrsqrt.f32 %v1137_v12  ;;  %v1011_v3 = vmul.f32 0.0051020407, %v875_v50  ;;  %v1136_v12 = vadd.f32 1e-05, %v1008_v11  ;;  %v1010_v50 = vmul.f32 0.0051020407, %v871_v42 }
 0x17b   :  { %1449 = vperm.xlu0 %2322, %v1259_v54   ;;  %1414 = vperm.xlu1 %2323, %v1252_v36   ;;  %2398 = vrsqrt.f32 %v1134_v39  ;;  %v1256_v36 = vmul.f32 %v2387_v61, %v4195_v58  ;;  %v4207_v11 = vld [vmem:[%s5288_s1 + $0xf0] sm:$0xff]  ;;  %v4213_v61 = vld [vmem:[%s5288_s1 + $0x128] sm:$0xff] }
 0x17c   :  { %v2389_v43 = vpop.eup %2388  ;;  %v1139_v55 = vadd.f32 1e-05, %v1011_v3 }
 0x17d   :  { %v883_v19 = vpop.xlane.xlu1 %882  ;;  %v1261_v44 = vmul.f32 %v2389_v43, %v4189_v13  ;;  %v2391_v3 = vpop.eup %2390 }
 0x17e   :  { %v887_v34 = vpop.xlane.xlu0 %886  ;;  %2400 = vrsqrt.f32 %v1139_v55  ;;  %v1013_v7 = vmul.f32 0.0051020407, %v883_v19  ;;  %v1138_v55 = vadd.f32 1e-05, %v1010_v50  ;;  %v1012_v19 = vmul.f32 0.0051020407, %v879_v35 }
 0x17f   :  { %1459 = vperm.xlu0 %2322, %v1261_v44   ;;  %1424 = vperm.xlu1 %2323, %v1254_v24   ;;  %2402 = vrsqrt.f32 %v1136_v12  ;;  %v1258_v24 = vmul.f32 %v2391_v3, %v4207_v11  ;;  %v4219_v50 = vld [vmem:[%s5288_s1 + $0x100] sm:$0xff]  ;;  %v4225_v3 = vld [vmem:[%s5288_s1 + $0x138] sm:$0xff] }
 0x180   :  { %v2393_v54 = vpop.eup %2392  ;;  %v1141_v39 = vadd.f32 1e-05, %v1013_v7 }
 0x181   :  { %v891_v42 = vpop.xlane.xlu1 %890  ;;  %v1263_v43 = vmul.f32 %v2393_v54, %v4201_v21  ;;  %v2395_v7 = vpop.eup %2394 }
 0x182   :  { %v895_v29 = vpop.xlane.xlu0 %894  ;;  %2404 = vrsqrt.f32 %v1141_v39  ;;  %v1015_v26 = vmul.f32 0.0051020407, %v891_v42  ;;  %v1140_v39 = vadd.f32 1e-05, %v1012_v19  ;;  %v1014_v42 = vmul.f32 0.0051020407, %v887_v34 }
 0x183   :  { %1469 = vperm.xlu0 %2322, %v1263_v43   ;;  %1434 = vperm.xlu1 %2323, %v1256_v36   ;;  %2406 = vrsqrt.f32 %v1138_v55  ;;  %v1260_v36 = vmul.f32 %v2395_v7, %v4219_v50  ;;  %v4231_v19 = vld [vmem:[%s5288_s1 + $0x110] sm:$0xff]  ;;  %v4237_v7 = vld [vmem:[%s5288_s1 + $0x148] sm:$0xff] }
 0x184   :  { %v2397_v44 = vpop.eup %2396  ;;  %v1143_v12 = vadd.f32 1e-05, %v1015_v26  ;;  %5710 = vst [vmem:[#allocation130_spill] sm:$0xff] %v4237_v7 }
 0x185   :  { %v899_v35 = vpop.xlane.xlu1 %898  ;;  %v1265_v54 = vmul.f32 %v2397_v44, %v4213_v61  ;;  %v2399_v26 = vpop.eup %2398 }
 0x186   :  { %v903_v51 = vpop.xlane.xlu0 %902  ;;  %2408 = vrsqrt.f32 %v1143_v12  ;;  %v1017_v57 = vmul.f32 0.0051020407, %v899_v35  ;;  %v1142_v12 = vadd.f32 1e-05, %v1014_v42  ;;  %v1016_v35 = vmul.f32 0.0051020407, %v895_v29 }
 0x187   :  { %1479 = vperm.xlu0 %2322, %v1265_v54   ;;  %1444 = vperm.xlu1 %2323, %v1258_v24   ;;  %2410 = vrsqrt.f32 %v1140_v39  ;;  %v1262_v24 = vmul.f32 %v2399_v26, %v4231_v19  ;;  %v4243_v42 = vld [vmem:[%s5288_s1 + $0x120] sm:$0xff]  ;;  %v4249_v26 = vld [vmem:[%s5288_s1 + $0x158] sm:$0xff] }
 0x188   :  { %v2401_v43 = vpop.eup %2400  ;;  %v1145_v55 = vadd.f32 1e-05, %v1017_v57  ;;  %5711 = vst [vmem:[#allocation131_spill] sm:$0xff] %v4249_v26 }
 0x189   :  { %v907_v34 = vpop.xlane.xlu1 %906  ;;  %v1267_v44 = vmul.f32 %v2401_v43, %v4225_v3  ;;  %v2403_v57 = vpop.eup %2402 }
 0x18a   :  { %v911_v15 = vpop.xlane.xlu0 %910  ;;  %2412 = vrsqrt.f32 %v1145_v55  ;;  %v1019_v6 = vmul.f32 0.0051020407, %v907_v34  ;;  %v1144_v55 = vadd.f32 1e-05, %v1016_v35  ;;  %v1018_v34 = vmul.f32 0.0051020407, %v903_v51 }
 0x18b   :  { %1489 = vperm.xlu0 %2322, %v1267_v44   ;;  %1454 = vperm.xlu1 %2323, %v1260_v36   ;;  %2414 = vrsqrt.f32 %v1142_v12  ;;  %v1264_v36 = vmul.f32 %v2403_v57, %v4243_v42  ;;  %v4255_v35 = vld [vmem:[%s5288_s1 + $0x130] sm:$0xff]  ;;  %v4261_v57 = vld [vmem:[%s5288_s1 + $0x168] sm:$0xff] }
 0x18c   :  { %v2405_v54 = vpop.eup %2404  ;;  %v1147_v39 = vadd.f32 1e-05, %v1019_v6  ;;  %5712 = vst [vmem:[#allocation132_spill] sm:$0xff] %v4261_v57 }
 0x18d   :  { %v915_v29 = vpop.xlane.xlu1 %914  ;;  %v1269_v43 = vmul.f32 %v2405_v54, %v4237_v7  ;;  %v2407_v6 = vpop.eup %2406 }
 0x18e   :  { %v919_v45 = vpop.xlane.xlu0 %918  ;;  %2416 = vrsqrt.f32 %v1147_v39  ;;  %v1021_v53 = vmul.f32 0.0051020407, %v915_v29  ;;  %v1146_v39 = vadd.f32 1e-05, %v1018_v34  ;;  %v1020_v29 = vmul.f32 0.0051020407, %v911_v15 }
 0x18f   :  { %1499 = vperm.xlu0 %2322, %v1269_v43   ;;  %1464 = vperm.xlu1 %2323, %v1262_v24   ;;  %2418 = vrsqrt.f32 %v1144_v55  ;;  %v1266_v24 = vmul.f32 %v2407_v6, %v4255_v35  ;;  %v4267_v34 = vld [vmem:[%s5288_s1 + $0x140] sm:$0xff]  ;;  %v4273_v6 = vld [vmem:[%s5288_s1 + $0x178] sm:$0xff] }
 0x190   :  { %v2409_v44 = vpop.eup %2408  ;;  %v1149_v12 = vadd.f32 1e-05, %v1021_v53  ;;  %5713 = vst [vmem:[#allocation133_spill] sm:$0xff] %v4273_v6 }
 0x191   :  { %v923_v51 = vpop.xlane.xlu1 %922  ;;  %v1271_v54 = vmul.f32 %v2409_v44, %v4249_v26  ;;  %v2411_v53 = vpop.eup %2410 }
 0x192   :  { %v927_v9 = vpop.xlane.xlu0 %926  ;;  %2420 = vrsqrt.f32 %v1149_v12  ;;  %v1023_v41 = vmul.f32 0.0051020407, %v923_v51  ;;  %v1148_v12 = vadd.f32 1e-05, %v1020_v29  ;;  %v1022_v51 = vmul.f32 0.0051020407, %v919_v45 }
 0x193   :  { %1509 = vperm.xlu0 %2322, %v1271_v54   ;;  %1474 = vperm.xlu1 %2323, %v1264_v36   ;;  %2422 = vrsqrt.f32 %v1146_v39  ;;  %v1268_v36 = vmul.f32 %v2411_v53, %v4267_v34  ;;  %v4279_v29 = vld [vmem:[%s5288_s1 + $0x150] sm:$0xff]  ;;  %v4285_v53 = vld [vmem:[%s5288_s1 + $0x188] sm:$0xff] }
 0x194   :  { %v2413_v43 = vpop.eup %2412  ;;  %v1151_v55 = vadd.f32 1e-05, %v1023_v41  ;;  %5714 = vst [vmem:[#allocation134_spill] sm:$0xff] %v4285_v53 }
 0x195   :  { %v931_v15 = vpop.xlane.xlu1 %930  ;;  %v1273_v44 = vmul.f32 %v2413_v43, %v4261_v57  ;;  %v2415_v41 = vpop.eup %2414 }
 0x196   :  { %v935_v2 = vpop.xlane.xlu0 %934  ;;  %2424 = vrsqrt.f32 %v1151_v55  ;;  %v1025_v0 = vmul.f32 0.0051020407, %v931_v15  ;;  %v1150_v55 = vadd.f32 1e-05, %v1022_v51  ;;  %v1024_v15 = vmul.f32 0.0051020407, %v927_v9 }
 0x197   :  { %1519 = vperm.xlu0 %2322, %v1273_v44   ;;  %1484 = vperm.xlu1 %2323, %v1266_v24   ;;  %2426 = vrsqrt.f32 %v1148_v12  ;;  %v1270_v24 = vmul.f32 %v2415_v41, %v4279_v29  ;;  %v4291_v51 = vld [vmem:[%s5288_s1 + $0x160] sm:$0xff] }
 0x198   :  { %v2417_v54 = vpop.eup %2416  ;;  %v1153_v39 = vadd.f32 1e-05, %v1025_v0 }
 0x199   :  { %v939_v45 = vpop.xlane.xlu1 %938  ;;  %v1275_v43 = vmul.f32 %v2417_v54, %v4273_v6  ;;  %v2419_v0 = vpop.eup %2418 }
 0x19a   :  { %v943_v4 = vpop.xlane.xlu0 %942  ;;  %2428 = vrsqrt.f32 %v1153_v39  ;;  %v1027_v25 = vmul.f32 0.0051020407, %v939_v45  ;;  %v1152_v39 = vadd.f32 1e-05, %v1024_v15  ;;  %v1026_v45 = vmul.f32 0.0051020407, %v935_v2 }
 0x19b   :  { %1529 = vperm.xlu0 %2322, %v1275_v43   ;;  %1494 = vperm.xlu1 %2323, %v1268_v36   ;;  %2430 = vrsqrt.f32 %v1150_v55  ;;  %v4297_v36 = vld [vmem:[%s5288_s1 + $0x198] sm:$0xff]  ;;  %v4303_v15 = vld [vmem:[%s5288_s1 + $0x170] sm:$0xff] }
 0x19c   :  { %v2421_v44 = vpop.eup %2420  ;;  %v1155_v12 = vadd.f32 1e-05, %v1027_v25  ;;  %5715 = vst [vmem:[#allocation135_spill] sm:$0xff] %v4297_v36  ;;  %v1272_v25 = vmul.f32 %v2419_v0, %v4291_v51  ;;  %v4309_v0 = vld [vmem:[%s5288_s1 + $0x1a8] sm:$0xff] }
 0x19d   :  { %v947_v9 = vpop.xlane.xlu1 %946  ;;  %v1277_v54 = vmul.f32 %v2421_v44, %v4285_v53  ;;  %v2423_v41 = vpop.eup %2422  ;;  %5716 = vst [vmem:[#allocation136_spill] sm:$0xff] %v4309_v0 }
 0x19e   :  { %2432 = vrsqrt.f32 %v1155_v12  ;;  %v1029_v6 = vmul.f32 0.0051020407, %v947_v9  ;;  %v951_v43 = vpop.xlane.xlu0 %950  ;;  %v1154_v12 = vadd.f32 1e-05, %v1026_v45  ;;  %v1028_v9 = vmul.f32 0.0051020407, %v943_v4 }
 0x19f   :  { %1539 = vperm.xlu0 %2322, %v1277_v54   ;;  %1504 = vperm.xlu1 %2323, %v1270_v24   ;;  %2434 = vrsqrt.f32 %v1152_v39 }
 0x1a0   :  { %v2425_v57 = vpop.eup %2424  ;;  %v1157_v55 = vadd.f32 1e-05, %v1029_v6  ;;  %v1274_v6 = vmul.f32 %v2423_v41, %v4303_v15  ;;  %v1156_v45 = vadd.f32 1e-05, %v1028_v9  ;;  %v4321_v41 = vld [vmem:[%s5288_s1 + $0x1b8] sm:$0xff]  ;;  %v4327_v9 = vld [vmem:[%s5288_s1 + $0x190] sm:$0xff] }
 0x1a1   :  { %v955_v2 = vpop.xlane.xlu1 %954  ;;  %v1279_v44 = vmul.f32 %v2425_v57, %v4297_v36  ;;  %v2427_v24 = vpop.eup %2426  ;;  %v4315_v57 = vld [vmem:[%s5288_s1 + $0x180] sm:$0xff] }
 0x1a2   :  { %2436 = vrsqrt.f32 %v1157_v55  ;;  %v1031_v53 = vmul.f32 0.0051020407, %v955_v2  ;;  %v1030_v55 = vmul.f32 0.0051020407, %v951_v43  ;;  %v959_v2 = vpop.xlane.xlu0 %958 }
 0x1a3   :  { %1549 = vperm.xlu0 %2322, %v1279_v44   ;;  %1514 = vperm.xlu1 %2323, %v1272_v25   ;;  %2438 = vrsqrt.f32 %v1154_v12  ;;  %v1276_v25 = vmul.f32 %v2427_v24, %v4315_v57  ;;  %v1032_v24 = vmul.f32 0.0051020407, %v959_v2  ;;  %v4345_v2 = vld [vmem:[%s5288_s1 + $0x1d8] sm:$0xff] }
 0x1a4   :  { %v2429_v54 = vpop.eup %2428  ;;  %v1159_v26 = vadd.f32 1e-05, %v1031_v53  ;;  %5717 = vst [vmem:[#allocation137_spill] sm:$0xff] %v4345_v2 }
 0x1a5   :  { %v963_v4 = vpop.xlane.xlu1 %962  ;;  %v1281_v39 = vmul.f32 %v2429_v54, %v4309_v0  ;;  %v2431_v53 = vpop.eup %2430  ;;  %v1158_v54 = vadd.f32 1e-05, %v1030_v55  ;;  %v4339_v55 = vld [vmem:[%s5288_s1 + $0x1a0] sm:$0xff] }
 0x1a6   :  { %2440 = vrsqrt.f32 %v1159_v26  ;;  %v1033_v36 = vmul.f32 0.0051020407, %v963_v4  ;;  %v967_v0 = vpop.xlane.xlu0 %966 }
 0x1a7   :  { %1559 = vperm.xlu0 %2322, %v1281_v39   ;;  %1524 = vperm.xlu1 %2323, %v1274_v6   ;;  %2442 = vrsqrt.f32 %v1156_v45  ;;  %v4333_v6 = vld [vmem:[%s5288_s1 + $0x1c8] sm:$0xff] }
 0x1a8   :  { %v2433_v44 = vpop.eup %2432  ;;  %v1161_v12 = vadd.f32 1e-05, %v1033_v36  ;;  %v1278_v36 = vmul.f32 %v2431_v53, %v4327_v9 }
 0x1a9   :  { %v971_v26 = vpop.xlane.xlu1 %970  ;;  %v1283_v43 = vmul.f32 %v2433_v44, %v4321_v41  ;;  %v2435_v39 = vpop.eup %2434 }
 0x1aa   :  { %2444 = vrsqrt.f32 %v1161_v12  ;;  %v1035_v4 = vmul.f32 0.0051020407, %v971_v26  ;;  %v1160_v12 = vadd.f32 1e-05, %v1032_v24  ;;  %v1280_v26 = vmul.f32 %v2435_v39, %v4339_v55  ;;  %v4357_v24 = vld [vmem:[%s5288_s1 + $0x1e8] sm:$0xff] }
 0x1ab   :  { %1569 = vperm.xlu0 %2322, %v1283_v43   ;;  %1534 = vperm.xlu1 %2323, %v1276_v25   ;;  %2446 = vrsqrt.f32 %v1158_v54  ;;  %v1034_v25 = vmul.f32 0.0051020407, %v967_v0  ;;  %v4351_v54 = vld [vmem:[%s5288_s1 + $0x1b0] sm:$0xff]  ;;  %5718 = vst [vmem:[#allocation138_spill] sm:$0xff] %v4357_v24 }
 0x1ac   :  { %v2437_v7 = vpop.eup %2436  ;;  %v1163_v45 = vadd.f32 1e-05, %v1035_v4 }
 0x1ad   :  { %v1285_v44 = vmul.f32 %v2437_v7, %v4333_v6  ;;  %v2439_v53 = vpop.eup %2438  ;;  %v1162_v4 = vadd.f32 1e-05, %v1034_v25 }
 0x1ae   :  { %2448 = vrsqrt.f32 %v1163_v45  ;;  %v1282_v39 = vmul.f32 %v2439_v53, %v4351_v54  ;;  %v4363_v45 = vld [vmem:[%s5288_s1 + $0x1c0] sm:$0xff] }
 0x1af   :  { %1579 = vperm.xlu0 %2322, %v1285_v44   ;;  %1544 = vperm.xlu1 %2323, %v1278_v36   ;;  %2450 = vrsqrt.f32 %v1160_v12  ;;  %v4369_v12 = vld [vmem:[%s5288_s1 + $0x1f8] sm:$0xff] }
 0x1b0   :  { %v2441_v43 = vpop.eup %2440  ;;  %2452 = vrsqrt.f32 %v1162_v4 }
 0x1b1   :  { %v1287_v7 = vmul.f32 %v2441_v43, %v4345_v2  ;;  %v2443_v0 = vpop.eup %2442  ;;  %v4375_v43 = vld [vmem:[%s5288_s1 + $0x1d0] sm:$0xff] }
 0x1b3   :  { %1589 = vperm.xlu0 %2322, %v1287_v7   ;;  %1554 = vperm.xlu1 %2323, %v1280_v26   ;;  %v1284_v26 = vmul.f32 %v2443_v0, %v4363_v45  ;;  %v2488_v0 = vmov 1  }
 0x1b4   :  { %v2445_v36 = vpop.eup %2444 }
 0x1b5   :  { %v1289_v44 = vmul.f32 %v2445_v36, %v4357_v24  ;;  %v2447_v25 = vpop.eup %2446 }
 0x1b6   :  { %v1286_v4 = vmul.f32 %v2447_v25, %v4375_v43  ;;  %v4391_v25 = vld [vmem:[%s5288_s1 + $0x1f0] sm:$0xff] }
 0x1b7   :  { %1599 = vperm.xlu0 %2322, %v1289_v44   ;;  %1564 = vperm.xlu1 %2323, %v1282_v39   ;;  %v4382_v44 = vld [vmem:[%s5288_s1 + $0x1e0] sm:$0xff] }
 0x1b8   :  { %v2449_v53 = vpop.eup %2448 }
 0x1b9   :  { %v1291_v7 = vmul.f32 %v2449_v53, %v4369_v12  ;;  %v2451_v36 = vpop.eup %2450 }
 0x1ba   :  { %v1288_v24 = vmul.f32 %v2451_v36, %v4382_v44  ;;  %v2453_v2 = vpop.eup %2452 }
 0x1bb   :  { %1609 = vperm.xlu0 %2322, %v1291_v7   ;;  %1574 = vperm.xlu1 %2323, %v1284_v26   ;;  %v1290_v53 = vmul.f32 %v2453_v2, %v4391_v25 }
 0x1be   :  { %v4384_v39 = vpop.permute.xlu1 %1299 }
 0x1bf   :  { %2325 = vset.pattern.permute.xlu0 %v2488_v0  ;;  %1584 = vperm.xlu1 %2323, %v1286_v4   ;;  %v4400_v4 = vpop.permute.xlu0 %1294 }
 0x1c0   :  { %1747 = vperm.xlu0 %2325, %v4016_v32  }
 0x1c2   :  { %v4393_v26 = vpop.permute.xlu1 %1304 }
 0x1c3   :  { %1594 = vperm.xlu1 %2323, %v1288_v24  }
 0x1c4   :  { %1762 = vperm.xlu0 %2325, %v4034_v60  }
 0x1c6   :  { %v4397_v7 = vpop.permute.xlu1 %1309 }
 0x1c7   :  { %1604 = vperm.xlu1 %2323, %v1290_v53  }
 0x1c8   :  { %1772 = vperm.xlu0 %2325, %v4051_v62  }
 0x1ca   :  { %v4402_v32 = vpop.permute.xlu1 %1314 }
 0x1cb   :  { %2324 = vset.pattern.permute.xlu1 %v2488_v0 }
 0x1cc   :  { %1782 = vperm.xlu0 %2325, %v4075_v30   ;;  %1742 = vperm.xlu1 %2324, %v4010_v52  }
 0x1ce   :  { %v4406_v36 = vpop.permute.xlu1 %1319  ;;  %v4408_v24 = vpop.permute.xlu0 %1339 }
 0x1d0   :  { %1792 = vperm.xlu0 %2325, %v4087_v23   ;;  %1752 = vperm.xlu1 %2324, %v4021_v46  }
 0x1d2   :  { %v4412_v60 = vpop.permute.xlu1 %1324  ;;  %v4414_v62 = vpop.permute.xlu0 %1349 }
 0x1d4   :  { %1802 = vperm.xlu0 %2325, %v4099_v37   ;;  %1757 = vperm.xlu1 %2324, %v4028_v17  }
 0x1d6   :  { %v4418_v2 = vpop.permute.xlu1 %1329  ;;  %v4420_v30 = vpop.permute.xlu0 %1359 }
 0x1d8   :  { %1812 = vperm.xlu0 %2325, %v4111_v8   ;;  %1767 = vperm.xlu1 %2324, %v4040_v38  }
 0x1da   :  { %v4424_v52 = vpop.permute.xlu1 %1334  ;;  %v4426_v23 = vpop.permute.xlu0 %1369 }
 0x1dc   :  { %1822 = vperm.xlu0 %2325, %v4123_v56   ;;  %1777 = vperm.xlu1 %2324, %v4063_v33  }
 0x1de   :  { %v4430_v46 = vpop.permute.xlu1 %1344  ;;  %v4432_v37 = vpop.permute.xlu0 %1379 }
 0x1e0   :  { %1832 = vperm.xlu0 %2325, %v4135_v31   ;;  %1787 = vperm.xlu1 %2324, %v4045_v59  }
 0x1e2   :  { %v4436_v17 = vpop.permute.xlu1 %1354  ;;  %v4438_v8 = vpop.permute.xlu0 %1389 }
 0x1e4   :  { %1842 = vperm.xlu0 %2325, %v4147_v16   ;;  %1797 = vperm.xlu1 %2324, %v4057_v47  }
 0x1e6   :  { %v4442_v38 = vpop.permute.xlu1 %1364  ;;  %v4444_v56 = vpop.permute.xlu0 %1399 }
 0x1e8   :  { %1852 = vperm.xlu0 %2325, %v4159_v28   ;;  %1807 = vperm.xlu1 %2324, %v4069_v48  }
 0x1ea   :  { %v4448_v33 = vpop.permute.xlu1 %1374  ;;  %v4450_v31 = vpop.permute.xlu0 %1409 }
 0x1ec   :  { %1862 = vperm.xlu0 %2325, %v4171_v14   ;;  %1817 = vperm.xlu1 %2324, %v4081_v49  }
 0x1ee   :  { %v4454_v59 = vpop.permute.xlu1 %1384  ;;  %v4456_v16 = vpop.permute.xlu0 %1419 }
 0x1f0   :  { %1872 = vperm.xlu0 %2325, %v4183_v5   ;;  %1827 = vperm.xlu1 %2324, %v4093_v40  }
 0x1f2   :  { %v4460_v47 = vpop.permute.xlu1 %1394  ;;  %v4462_v28 = vpop.permute.xlu0 %1429 }
 0x1f4   :  { %1882 = vperm.xlu0 %2325, %v4195_v58   ;;  %1837 = vperm.xlu1 %2324, %v4105_v27  }
 0x1f6   :  { %v4466_v48 = vpop.permute.xlu1 %1404  ;;  %v4468_v14 = vpop.permute.xlu0 %1439 }
 0x1f8   :  { %1892 = vperm.xlu0 %2325, %v4207_v11   ;;  %1847 = vperm.xlu1 %2324, %v4117_v22  }
 0x1fa   :  { %v4472_v49 = vpop.permute.xlu1 %1414  ;;  %v4474_v5 = vpop.permute.xlu0 %1449 }
 0x1fc   :  { %1902 = vperm.xlu0 %2325, %v4219_v50   ;;  %1857 = vperm.xlu1 %2324, %v4129_v63  }
 0x1fe   :  { %v4478_v40 = vpop.permute.xlu1 %1424  ;;  %v4480_v58 = vpop.permute.xlu0 %1459 }
 0x200   :  { %1912 = vperm.xlu0 %2325, %v4231_v19   ;;  %1867 = vperm.xlu1 %2324, %v4141_v18  }
 0x202   :  { %v4484_v27 = vpop.permute.xlu1 %1434  ;;  %v4486_v11 = vpop.permute.xlu0 %1469 }
 0x204   :  { %1922 = vperm.xlu0 %2325, %v4243_v42   ;;  %1877 = vperm.xlu1 %2324, %v4153_v1  }
 0x206   :  { %v4490_v22 = vpop.permute.xlu1 %1444  ;;  %v4492_v50 = vpop.permute.xlu0 %1479 }
 0x208   :  { %1932 = vperm.xlu0 %2325, %v4255_v35   ;;  %1887 = vperm.xlu1 %2324, %v4165_v20  }
 0x20a   :  { %v4496_v63 = vpop.permute.xlu1 %1454  ;;  %v4498_v19 = vpop.permute.xlu0 %1489 }
 0x20c   :  { %1897 = vperm.xlu1 %2324, %v4177_v10   ;;  %1942 = vperm.xlu0 %2325, %v4267_v34  }
 0x20e   :  { %v4502_v18 = vpop.permute.xlu1 %1464  ;;  %v4504_v42 = vpop.permute.xlu0 %1499 }
 0x210   :  { %1907 = vperm.xlu1 %2324, %v4189_v13   ;;  %1952 = vperm.xlu0 %2325, %v4279_v29  }
 0x212   :  { %v4508_v1 = vpop.permute.xlu1 %1474  ;;  %v4510_v35 = vpop.permute.xlu0 %1509 }
 0x214   :  { %1917 = vperm.xlu1 %2324, %v4201_v21   ;;  %1962 = vperm.xlu0 %2325, %v4291_v51   ;;  %v5722_v51 = vld [vmem:[#allocation130_spill] sm:$0xff] }
 0x216   :  { %v4514_v20 = vpop.permute.xlu1 %1484  ;;  %v4516_v10 = vpop.permute.xlu0 %1519 }
 0x217   :  { %5719 = vst [vmem:[#allocation139_spill] sm:$0xff] %v4516_v10 }
 0x218   :  { %1927 = vperm.xlu1 %2324, %v4213_v61   ;;  %1972 = vperm.xlu0 %2325, %v4303_v15   ;;  %v5724_v15 = vld [vmem:[#allocation131_spill] sm:$0xff] }
 0x21a   :  { %v4520_v34 = vpop.permute.xlu1 %1494  ;;  %v4522_v13 = vpop.permute.xlu0 %1529 }
 0x21b   :  { %5720 = vst [vmem:[#allocation140_spill] sm:$0xff] %v4522_v13 }
 0x21c   :  { %1937 = vperm.xlu1 %2324, %v4225_v3   ;;  %1982 = vperm.xlu0 %2325, %v4315_v57   ;;  %v5726_v57 = vld [vmem:[#allocation132_spill] sm:$0xff] }
 0x21e   :  { %v4526_v29 = vpop.permute.xlu1 %1504  ;;  %v4528_v21 = vpop.permute.xlu0 %1539 }
 0x21f   :  { %5721 = vst [vmem:[#allocation141_spill] sm:$0xff] %v4528_v21 }
 0x220   :  { %1947 = vperm.xlu1 %2324, %v5722_v51   ;;  %1992 = vperm.xlu0 %2325, %v4327_v9   ;;  %v5728_v9 = vld [vmem:[#allocation133_spill] sm:$0xff] }
 0x222   :  { %v4532_v0 = vpop.permute.xlu1 %1514  ;;  %v4534_v61 = vpop.permute.xlu0 %1549 }
 0x223   :  { %5723 = vst [vmem:[#allocation130_spill] sm:$0xff] %v4534_v61 }
 0x224   :  { %1957 = vperm.xlu1 %2324, %v5724_v15   ;;  %2002 = vperm.xlu0 %2325, %v4339_v55   ;;  %v5730_v55 = vld [vmem:[#allocation134_spill] sm:$0xff] }
 0x226   :  { %v4538_v53 = vpop.permute.xlu1 %1524  ;;  %v4540_v3 = vpop.permute.xlu0 %1559 }
 0x227   :  { %5725 = vst [vmem:[#allocation131_spill] sm:$0xff] %v4540_v3 }
 0x228   :  { %1967 = vperm.xlu1 %2324, %v5726_v57   ;;  %2012 = vperm.xlu0 %2325, %v4351_v54   ;;  %v5732_v54 = vld [vmem:[#allocation135_spill] sm:$0xff] }
 0x22a   :  { %v4544_v21 = vpop.permute.xlu1 %1534  ;;  %v4546_v51 = vpop.permute.xlu0 %1569 }
 0x22b   :  { %5727 = vst [vmem:[#allocation132_spill] sm:$0xff] %v4546_v51 }
 0x22c   :  { %1977 = vperm.xlu1 %2324, %v5728_v9   ;;  %2022 = vperm.xlu0 %2325, %v4363_v45   ;;  %v5735_v45 = vld [vmem:[#allocation136_spill] sm:$0xff] }
 0x22e   :  { %v4550_v61 = vpop.permute.xlu1 %1544  ;;  %v4552_v15 = vpop.permute.xlu0 %1579 }
 0x22f   :  { %5729 = vst [vmem:[#allocation133_spill] sm:$0xff] %v4552_v15 }
 0x230   :  { %1987 = vperm.xlu1 %2324, %v5730_v55   ;;  %2032 = vperm.xlu0 %2325, %v4375_v43   ;;  %v5738_v43 = vld [vmem:[#allocation53_spill] sm:$0xff] }
 0x232   :  { %v4556_v3 = vpop.permute.xlu1 %1554  ;;  %v4558_v57 = vpop.permute.xlu0 %1589 }
 0x233   :  { %5731 = vst [vmem:[#allocation134_spill] sm:$0xff] %v4558_v57  ;;  %v1614_v57 = vmul.f32 %v4384_v39, %v5738_v43  ;;  %v5744_v43 = vld [vmem:[#allocation61_spill] sm:$0xff] }
 0x234   :  { %1997 = vperm.xlu1 %2324, %v5732_v54   ;;  %2042 = vperm.xlu0 %2325, %v4382_v44   ;;  %v5739_v54 = vld [vmem:[#allocation54_spill] sm:$0xff] }
 0x235   :  { %v1615_v44 = vmul.f32 %v4384_v39, %v5739_v54  ;;  %v1624_v54 = vmul.f32 %v4412_v60, %v5744_v43  ;;  %v5750_v43 = vld [vmem:[#allocation65_spill] sm:$0xff] }
 0x236   :  { %v4562_v51 = vpop.permute.xlu1 %1564  ;;  %v4564_v9 = vpop.permute.xlu0 %1599 }
 0x237   :  { %5733 = vst [vmem:[#allocation135_spill] sm:$0xff] %v4562_v51  ;;  %5734 = vst [vmem:[#allocation142_spill] sm:$0xff] %v4564_v9 }
 0x238   :  { %2007 = vperm.xlu1 %2324, %v5735_v45   ;;  %2052 = vperm.xlu0 %2325, %v4391_v25   ;;  %v5740_v25 = vld [vmem:[#allocation57_spill] sm:$0xff] }
 0x239   :  { %v1620_v45 = vmul.f32 %v4402_v32, %v5740_v25  ;;  %v5747_v25 = vld [vmem:[#allocation138_spill] sm:$0xff] }
 0x23a   :  { %v4568_v15 = vpop.permute.xlu1 %1574  ;;  %v4570_v55 = vpop.permute.xlu0 %1609 }
 0x23b   :  { %5736 = vst [vmem:[#allocation136_spill] sm:$0xff] %v4568_v15  ;;  %5737 = vst [vmem:[#allocation143_spill] sm:$0xff] %v4570_v55  ;;  %v5741_v15 = vld [vmem:[#allocation58_spill] sm:$0xff] }
 0x23c   :  { %2017 = vperm.xlu1 %2324, %v4321_v41   ;;  %v1621_v55 = vmul.f32 %v4402_v32, %v5741_v15  ;;  %v5745_v32 = vld [vmem:[#allocation62_spill] sm:$0xff] }
 0x23d   :  { %v1625_v15 = vmul.f32 %v4412_v60, %v5745_v32  ;;  %v5749_v60 = vld [vmem:[#allocation50_spill] sm:$0xff] }
 0x23e   :  { %v4577_v13 = vpop.permute.xlu1 %1584  ;;  %v5751_v32 = vld [vmem:[#allocation66_spill] sm:$0xff] }
 0x23f   :  { %v1748_v51 = vpop.permute.xlu0 %1747 }
 0x240   :  { %v2062_v9 = vadd.f32 %v1748_v51, %v1614_v57  ;;  %v2063_v10 = vadd.f32 %v1748_v51, %v1615_v44  ;;  %2027 = vperm.xlu1 %2324, %v4333_v6   ;;  %v5743_v57 = vld [vmem:[#allocation137_spill] sm:$0xff] }
 0x242   :  { %2190 = vst [vmem:[%s5289_s2 + $0x10] sm:$0xff] %v2062_v9  ;;  %2191 = vst.msk [vmem:[%s5289_s2 + $0x18] sm:$0xff] %vm139_vm0, %v2063_v10  ;;  %v4591_v41 = vpop.permute.xlu1 %1594 }
 0x243   :  { %5742 = vst [vmem:[#allocation53_spill] sm:$0xff] %v4591_v41  ;;  %v1763_v39 = vpop.permute.xlu0 %1762  ;;  %v1629_v41 = vmul.f32 %v4424_v52, %v5751_v32 }
 0x244   :  { %v2068_v51 = vadd.f32 %v1763_v39, %v1620_v45  ;;  %v2069_v6 = vadd.f32 %v1763_v39, %v1621_v55  ;;  %2037 = vperm.xlu1 %2324, %v5743_v57   ;;  %v5748_v45 = vld [vmem:[#allocation49_spill] sm:$0xff]  ;;  %v1613_v57 = vmul.f32 %v4400_v4, %v5749_v60  ;;  %v5753_v60 = vld [vmem:[#allocation52_spill] sm:$0xff] }
 0x245   :  { %v1612_v39 = vmul.f32 %v4400_v4, %v5748_v45  ;;  %v5752_v45 = vld [vmem:[#allocation51_spill] sm:$0xff] }
 0x246   :  { %2196 = vst [vmem:[%s5289_s2 + $0x40] sm:$0xff] %v2068_v51  ;;  %2197 = vst.msk [vmem:[%s5289_s2 + $0x48] sm:$0xff] %vm139_vm0, %v2069_v6  ;;  %v4605_v10 = vpop.permute.xlu1 %1604  ;;  %v1628_v51 = vmul.f32 %v4424_v52, %v5750_v43  ;;  %v1616_v52 = vmul.f32 %v4393_v26, %v5752_v45  ;;  %v1617_v43 = vmul.f32 %v4393_v26, %v5753_v60 }
 0x247   :  { %5746 = vst [vmem:[#allocation54_spill] sm:$0xff] %v4605_v10  ;;  %v1773_v9 = vpop.permute.xlu0 %1772  ;;  %v5755_v10 = vld [vmem:[#allocation70_spill] sm:$0xff] }
 0x248   :  { %v2072_v55 = vadd.f32 %v1773_v9, %v1624_v54  ;;  %v2073_v44 = vadd.f32 %v1773_v9, %v1625_v15  ;;  %2047 = vperm.xlu1 %2324, %v5747_v25  }
 0x24a   :  { %2200 = vst [vmem:[%s5289_s2 + $0x60] sm:$0xff] %v2072_v55  ;;  %2201 = vst.msk [vmem:[%s5289_s2 + $0x68] sm:$0xff] %vm139_vm0, %v2073_v44  ;;  %v5754_v55 = vld [vmem:[#allocation69_spill] sm:$0xff]  ;;  %v1633_v44 = vmul.f32 %v4430_v46, %v5755_v10 }
 0x24b   :  { %v1743_v6 = vpop.permute.xlu1 %1742  ;;  %v1783_v54 = vpop.permute.xlu0 %1782  ;;  %v1632_v32 = vmul.f32 %v4430_v46, %v5754_v55  ;;  %v5760_v55 = vld [vmem:[#allocation59_spill] sm:$0xff] }
 0x24c   :  { %v2060_v15 = vadd.f32 %v1743_v6, %v1612_v39  ;;  %v2061_v9 = vadd.f32 %v1743_v6, %v1613_v57  ;;  %v2076_v4 = vadd.f32 %v1783_v54, %v1628_v51  ;;  %v2077_v25 = vadd.f32 %v1783_v54, %v1629_v41  ;;  %2057 = vperm.xlu1 %2324, %v4369_v12   ;;  %v5756_v57 = vld [vmem:[#allocation55_spill] sm:$0xff]  ;;  %v5757_v6 = vld [vmem:[#allocation56_spill] sm:$0xff] }
 0x24d   :  { %v1618_v51 = vmul.f32 %v4397_v7, %v5756_v57  ;;  %v1619_v54 = vmul.f32 %v4397_v7, %v5757_v6 }
 0x24e   :  { %2188 = vst [vmem:[%s5289_s2] sm:$0xff] %v2060_v15  ;;  %2189 = vst.msk [vmem:[%s5289_s2 + $0x8] sm:$0xff] %vm139_vm0, %v2061_v9  ;;  %v5758_v15 = vld [vmem:[#allocation73_spill] sm:$0xff] }
 0x24f   :  { %2204 = vst [vmem:[%s5289_s2 + $0x80] sm:$0xff] %v2076_v4  ;;  %2205 = vst.msk [vmem:[%s5289_s2 + $0x88] sm:$0xff] %vm139_vm0, %v2077_v25  ;;  %v1753_v12 = vpop.permute.xlu1 %1752  ;;  %v1793_v26 = vpop.permute.xlu0 %1792  ;;  %v1636_v9 = vmul.f32 %v4436_v17, %v5758_v15  ;;  %v5759_v4 = vld [vmem:[#allocation74_spill] sm:$0xff] }
 0x250   :  { %v2064_v46 = vadd.f32 %v1753_v12, %v1616_v52  ;;  %v2065_v41 = vadd.f32 %v1753_v12, %v1617_v43  ;;  %v2080_v10 = vadd.f32 %v1793_v26, %v1632_v32  ;;  %v2081_v39 = vadd.f32 %v1793_v26, %v1633_v44  ;;  %v5761_v44 = vld [vmem:[#allocation60_spill] sm:$0xff]  ;;  %v5762_v26 = vld [vmem:[#allocation77_spill] sm:$0xff] }
 0x251   :  { %v1637_v45 = vmul.f32 %v4436_v17, %v5759_v4  ;;  %v1622_v32 = vmul.f32 %v4406_v36, %v5760_v55  ;;  %v1623_v12 = vmul.f32 %v4406_v36, %v5761_v44 }
 0x252   :  { %2192 = vst [vmem:[%s5289_s2 + $0x20] sm:$0xff] %v2064_v46  ;;  %2193 = vst.msk [vmem:[%s5289_s2 + $0x28] sm:$0xff] %vm139_vm0, %v2065_v41  ;;  %v1640_v46 = vmul.f32 %v4442_v38, %v5762_v26  ;;  %v5763_v41 = vld [vmem:[#allocation78_spill] sm:$0xff] }
 0x253   :  { %2208 = vst [vmem:[%s5289_s2 + $0xa0] sm:$0xff] %v2080_v10  ;;  %2209 = vst.msk [vmem:[%s5289_s2 + $0xa8] sm:$0xff] %vm139_vm0, %v2081_v39  ;;  %v1758_v7 = vpop.permute.xlu1 %1757  ;;  %v1803_v17 = vpop.permute.xlu0 %1802  ;;  %v1641_v10 = vmul.f32 %v4442_v38, %v5763_v41 }
 0x254   :  { %v2066_v25 = vadd.f32 %v1758_v7, %v1618_v51  ;;  %v2067_v52 = vadd.f32 %v1758_v7, %v1619_v54  ;;  %v2084_v60 = vadd.f32 %v1803_v17, %v1636_v9  ;;  %v2085_v43 = vadd.f32 %v1803_v17, %v1637_v45  ;;  %v5764_v54 = vld [vmem:[#allocation63_spill] sm:$0xff]  ;;  %v5765_v9 = vld [vmem:[#allocation64_spill] sm:$0xff]  ;;  %v5766_v45 = vld [vmem:[#allocation81_spill] sm:$0xff] }
 0x255   :  { %v1626_v15 = vmul.f32 %v4418_v2, %v5764_v54  ;;  %v1627_v4 = vmul.f32 %v4418_v2, %v5765_v9  ;;  %v1644_v7 = vmul.f32 %v4448_v33, %v5766_v45  ;;  %v5767_v17 = vld [vmem:[#allocation82_spill] sm:$0xff] }
 0x256   :  { %2194 = vst [vmem:[%s5289_s2 + $0x30] sm:$0xff] %v2066_v25  ;;  %2195 = vst.msk [vmem:[%s5289_s2 + $0x38] sm:$0xff] %vm139_vm0, %v2067_v52  ;;  %v1645_v25 = vmul.f32 %v4448_v33, %v5767_v17 }
 0x257   :  { %2212 = vst [vmem:[%s5289_s2 + $0xc0] sm:$0xff] %v2084_v60  ;;  %2213 = vst.msk [vmem:[%s5289_s2 + $0xc8] sm:$0xff] %vm139_vm0, %v2085_v43  ;;  %v1768_v36 = vpop.permute.xlu1 %1767  ;;  %v1813_v38 = vpop.permute.xlu0 %1812 }
 0x258   :  { %v2070_v39 = vadd.f32 %v1768_v36, %v1622_v32  ;;  %v2071_v57 = vadd.f32 %v1768_v36, %v1623_v12  ;;  %v2088_v51 = vadd.f32 %v1813_v38, %v1640_v46  ;;  %v2089_v6 = vadd.f32 %v1813_v38, %v1641_v10  ;;  %v5768_v32 = vld [vmem:[#allocation67_spill] sm:$0xff]  ;;  %v5769_v12 = vld [vmem:[#allocation68_spill] sm:$0xff]  ;;  %v5770_v46 = vld [vmem:[#allocation85_spill] sm:$0xff] }
 0x259   :  { %v1630_v44 = vmul.f32 %v4408_v24, %v5768_v32  ;;  %v1631_v26 = vmul.f32 %v4408_v24, %v5769_v12  ;;  %v1648_v41 = vmul.f32 %v4454_v59, %v5770_v46  ;;  %v5771_v10 = vld [vmem:[#allocation86_spill] sm:$0xff] }
 0x25a   :  { %2198 = vst [vmem:[%s5289_s2 + $0x50] sm:$0xff] %v2070_v39  ;;  %2199 = vst.msk [vmem:[%s5289_s2 + $0x58] sm:$0xff] %vm139_vm0, %v2071_v57  ;;  %v1649_v36 = vmul.f32 %v4454_v59, %v5771_v10 }
 0x25b   :  { %2216 = vst [vmem:[%s5289_s2 + $0xe0] sm:$0xff] %v2088_v51  ;;  %2217 = vst.msk [vmem:[%s5289_s2 + $0xe8] sm:$0xff] %vm139_vm0, %v2089_v6  ;;  %v1778_v2 = vpop.permute.xlu1 %1777  ;;  %v1823_v33 = vpop.permute.xlu0 %1822  ;;  %v5772_v6 = vld [vmem:[#allocation71_spill] sm:$0xff] }
 0x25c   :  { %v2074_v52 = vadd.f32 %v1778_v2, %v1626_v15  ;;  %v2075_v60 = vadd.f32 %v1778_v2, %v1627_v4  ;;  %v2092_v43 = vadd.f32 %v1823_v33, %v1644_v7  ;;  %v2093_v55 = vadd.f32 %v1823_v33, %v1645_v25  ;;  %v5773_v15 = vld [vmem:[#allocation72_spill] sm:$0xff]  ;;  %v5774_v4 = vld [vmem:[#allocation89_spill] sm:$0xff]  ;;  %v5775_v7 = vld [vmem:[#allocation90_spill] sm:$0xff] }
 0x25d   :  { %v1634_v54 = vmul.f32 %v4414_v62, %v5772_v6  ;;  %v1635_v9 = vmul.f32 %v4414_v62, %v5773_v15  ;;  %v1652_v45 = vmul.f32 %v4460_v47, %v5774_v4  ;;  %v1653_v17 = vmul.f32 %v4460_v47, %v5775_v7 }
 0x25e   :  { %2202 = vst [vmem:[%s5289_s2 + $0x70] sm:$0xff] %v2074_v52  ;;  %2203 = vst.msk [vmem:[%s5289_s2 + $0x78] sm:$0xff] %vm139_vm0, %v2075_v60  ;;  %v5776_v60 = vld [vmem:[#allocation75_spill] sm:$0xff] }
 0x25f   :  { %2220 = vst [vmem:[%s5289_s2 + $0x100] sm:$0xff] %v2092_v43  ;;  %2221 = vst.msk [vmem:[%s5289_s2 + $0x108] sm:$0xff] %vm139_vm0, %v2093_v55  ;;  %v1788_v24 = vpop.permute.xlu1 %1787  ;;  %v1833_v59 = vpop.permute.xlu0 %1832  ;;  %v1638_v43 = vmul.f32 %v4420_v30, %v5776_v60  ;;  %v5777_v55 = vld [vmem:[#allocation76_spill] sm:$0xff] }
 0x260   :  { %v2078_v38 = vadd.f32 %v1788_v24, %v1630_v44  ;;  %v2079_v39 = vadd.f32 %v1788_v24, %v1631_v26  ;;  %v2096_v57 = vadd.f32 %v1833_v59, %v1648_v41  ;;  %v2097_v51 = vadd.f32 %v1833_v59, %v1649_v36  ;;  %v5778_v44 = vld [vmem:[#allocation93_spill] sm:$0xff]  ;;  %v5779_v26 = vld [vmem:[#allocation94_spill] sm:$0xff]  ;;  %v5780_v59 = vld [vmem:[#allocation79_spill] sm:$0xff] }
 0x261   :  { %v1639_v32 = vmul.f32 %v4420_v30, %v5777_v55  ;;  %v1656_v12 = vmul.f32 %v4466_v48, %v5778_v44  ;;  %v1657_v46 = vmul.f32 %v4466_v48, %v5779_v26 }
 0x262   :  { %2206 = vst [vmem:[%s5289_s2 + $0x90] sm:$0xff] %v2078_v38  ;;  %2207 = vst.msk [vmem:[%s5289_s2 + $0x98] sm:$0xff] %vm139_vm0, %v2079_v39  ;;  %v1642_v38 = vmul.f32 %v4426_v23, %v5780_v59  ;;  %v5781_v39 = vld [vmem:[#allocation80_spill] sm:$0xff] }
 0x263   :  { %2224 = vst [vmem:[%s5289_s2 + $0x120] sm:$0xff] %v2096_v57  ;;  %2225 = vst.msk [vmem:[%s5289_s2 + $0x128] sm:$0xff] %vm139_vm0, %v2097_v51  ;;  %v1798_v62 = vpop.permute.xlu1 %1797  ;;  %v1843_v47 = vpop.permute.xlu0 %1842  ;;  %v1643_v57 = vmul.f32 %v4426_v23, %v5781_v39  ;;  %v5782_v51 = vld [vmem:[#allocation4_spill] sm:$0xff] }
 0x264   :  { %v2082_v25 = vadd.f32 %v1798_v62, %v1634_v54  ;;  %v2083_v2 = vadd.f32 %v1798_v62, %v1635_v9  ;;  %v2100_v33 = vadd.f32 %v1843_v47, %v1652_v45  ;;  %v2101_v52 = vadd.f32 %v1843_v47, %v1653_v17  ;;  %v5783_v54 = vld [vmem:[#allocation2_spill] sm:$0xff]  ;;  %v5784_v17 = vld [vmem:[#allocation83_spill] sm:$0xff]  ;;  %v5785_v47 = vld [vmem:[#allocation84_spill] sm:$0xff] }
 0x265   :  { %v1660_v6 = vmul.f32 %v4472_v49, %v5782_v51  ;;  %v1661_v15 = vmul.f32 %v4472_v49, %v5783_v54  ;;  %v1646_v62 = vmul.f32 %v4432_v37, %v5784_v17 }
 0x266   :  { %2210 = vst [vmem:[%s5289_s2 + $0xb0] sm:$0xff] %v2082_v25  ;;  %2211 = vst.msk [vmem:[%s5289_s2 + $0xb8] sm:$0xff] %vm139_vm0, %v2083_v2  ;;  %v1647_v25 = vmul.f32 %v4432_v37, %v5785_v47  ;;  %v5786_v2 = vld [vmem:[#allocation8_spill] sm:$0xff] }
 0x267   :  { %2228 = vst [vmem:[%s5289_s2 + $0x140] sm:$0xff] %v2100_v33  ;;  %2229 = vst.msk [vmem:[%s5289_s2 + $0x148] sm:$0xff] %vm139_vm0, %v2101_v52  ;;  %v1808_v30 = vpop.permute.xlu1 %1807  ;;  %v1853_v48 = vpop.permute.xlu0 %1852  ;;  %v1664_v33 = vmul.f32 %v4478_v40, %v5786_v2  ;;  %v5787_v52 = vld [vmem:[#allocation6_spill] sm:$0xff] }
 0x268   :  { %v2086_v41 = vadd.f32 %v1808_v30, %v1638_v43  ;;  %v2087_v10 = vadd.f32 %v1808_v30, %v1639_v32  ;;  %v2104_v36 = vadd.f32 %v1853_v48, %v1656_v12  ;;  %v2105_v24 = vadd.f32 %v1853_v48, %v1657_v46  ;;  %v5788_v12 = vld [vmem:[#allocation87_spill] sm:$0xff]  ;;  %v5789_v46 = vld [vmem:[#allocation88_spill] sm:$0xff] }
 0x269   :  { %v1665_v60 = vmul.f32 %v4478_v40, %v5787_v52  ;;  %v1650_v26 = vmul.f32 %v4438_v8, %v5788_v12  ;;  %v1651_v30 = vmul.f32 %v4438_v8, %v5789_v46  ;;  %v5790_v48 = vld [vmem:[#allocation12_spill] sm:$0xff] }
 0x26a   :  { %2214 = vst [vmem:[%s5289_s2 + $0xd0] sm:$0xff] %v2086_v41  ;;  %2215 = vst.msk [vmem:[%s5289_s2 + $0xd8] sm:$0xff] %vm139_vm0, %v2087_v10  ;;  %v1668_v41 = vmul.f32 %v4484_v27, %v5790_v48  ;;  %v5791_v10 = vld [vmem:[#allocation10_spill] sm:$0xff] }
 0x26b   :  { %2232 = vst [vmem:[%s5289_s2 + $0x160] sm:$0xff] %v2104_v36  ;;  %2233 = vst.msk [vmem:[%s5289_s2 + $0x168] sm:$0xff] %vm139_vm0, %v2105_v24  ;;  %v1818_v23 = vpop.permute.xlu1 %1817  ;;  %v1863_v49 = vpop.permute.xlu0 %1862  ;;  %v1669_v36 = vmul.f32 %v4484_v27, %v5791_v10 }
 0x26c   :  { %v2090_v9 = vadd.f32 %v1818_v23, %v1642_v38  ;;  %v2091_v4 = vadd.f32 %v1818_v23, %v1643_v57  ;;  %v2108_v45 = vadd.f32 %v1863_v49, %v1660_v6  ;;  %v2109_v7 = vadd.f32 %v1863_v49, %v1661_v15  ;;  %v5792_v57 = vld [vmem:[#allocation91_spill] sm:$0xff]  ;;  %v5793_v6 = vld [vmem:[#allocation92_spill] sm:$0xff]  ;;  %v5795_v49 = vld [vmem:[#allocation14_spill] sm:$0xff] }
 0x26d   :  { %v1654_v51 = vmul.f32 %v4444_v56, %v5792_v57  ;;  %v1655_v54 = vmul.f32 %v4444_v56, %v5793_v6  ;;  %v5794_v15 = vld [vmem:[#allocation16_spill] sm:$0xff] }
 0x26e   :  { %2218 = vst [vmem:[%s5289_s2 + $0xf0] sm:$0xff] %v2090_v9  ;;  %2219 = vst.msk [vmem:[%s5289_s2 + $0xf8] sm:$0xff] %vm139_vm0, %v2091_v4  ;;  %v1672_v23 = vmul.f32 %v4490_v22, %v5794_v15  ;;  %v1673_v9 = vmul.f32 %v4490_v22, %v5795_v49 }
 0x26f   :  { %2236 = vst [vmem:[%s5289_s2 + $0x180] sm:$0xff] %v2108_v45  ;;  %2237 = vst.msk [vmem:[%s5289_s2 + $0x188] sm:$0xff] %vm139_vm0, %v2109_v7  ;;  %v1828_v37 = vpop.permute.xlu1 %1827  ;;  %v1873_v40 = vpop.permute.xlu0 %1872 }
 0x270   :  { %v2094_v43 = vadd.f32 %v1828_v37, %v1646_v62  ;;  %v2095_v55 = vadd.f32 %v1828_v37, %v1647_v25  ;;  %v2112_v32 = vadd.f32 %v1873_v40, %v1664_v33  ;;  %v2113_v44 = vadd.f32 %v1873_v40, %v1665_v60  ;;  %v5796_v62 = vld [vmem:[#allocation95_spill] sm:$0xff]  ;;  %v5797_v25 = vld [vmem:[#allocation96_spill] sm:$0xff]  ;;  %v5799_v60 = vld [vmem:[#allocation18_spill] sm:$0xff] }
 0x271   :  { %v1658_v47 = vmul.f32 %v4450_v31, %v5796_v62  ;;  %v1659_v2 = vmul.f32 %v4450_v31, %v5797_v25  ;;  %v5798_v33 = vld [vmem:[#allocation20_spill] sm:$0xff]  ;;  %v1677_v37 = vmul.f32 %v4496_v63, %v5799_v60 }
 0x272   :  { %2222 = vst [vmem:[%s5289_s2 + $0x110] sm:$0xff] %v2094_v43  ;;  %2223 = vst.msk [vmem:[%s5289_s2 + $0x118] sm:$0xff] %vm139_vm0, %v2095_v55  ;;  %v1676_v52 = vmul.f32 %v4496_v63, %v5798_v33 }
 0x273   :  { %2240 = vst [vmem:[%s5289_s2 + $0x1a0] sm:$0xff] %v2112_v32  ;;  %2241 = vst.msk [vmem:[%s5289_s2 + $0x1a8] sm:$0xff] %vm139_vm0, %v2113_v44  ;;  %v1838_v8 = vpop.permute.xlu1 %1837  ;;  %v1883_v27 = vpop.permute.xlu0 %1882  ;;  %v5800_v44 = vld [vmem:[#allocation5_spill] sm:$0xff] }
 0x274   :  { %v2098_v24 = vadd.f32 %v1838_v8, %v1650_v26  ;;  %v2099_v59 = vadd.f32 %v1838_v8, %v1651_v30  ;;  %v2116_v38 = vadd.f32 %v1883_v27, %v1668_v41  ;;  %v2117_v39 = vadd.f32 %v1883_v27, %v1669_v36  ;;  %v5801_v26 = vld [vmem:[#allocation3_spill] sm:$0xff]  ;;  %v5802_v30 = vld [vmem:[#allocation24_spill] sm:$0xff]  ;;  %v5803_v41 = vld [vmem:[#allocation22_spill] sm:$0xff] }
 0x275   :  { %v1662_v12 = vmul.f32 %v4456_v16, %v5800_v44  ;;  %v1663_v46 = vmul.f32 %v4456_v16, %v5801_v26  ;;  %v1680_v48 = vmul.f32 %v4502_v18, %v5802_v30  ;;  %v1681_v10 = vmul.f32 %v4502_v18, %v5803_v41 }
 0x276   :  { %2226 = vst [vmem:[%s5289_s2 + $0x130] sm:$0xff] %v2098_v24  ;;  %2227 = vst.msk [vmem:[%s5289_s2 + $0x138] sm:$0xff] %vm139_vm0, %v2099_v59  ;;  %v5804_v59 = vld [vmem:[#allocation9_spill] sm:$0xff] }
 0x277   :  { %2244 = vst [vmem:[%s5289_s2 + $0x1c0] sm:$0xff] %v2116_v38  ;;  %2245 = vst.msk [vmem:[%s5289_s2 + $0x1c8] sm:$0xff] %vm139_vm0, %v2117_v39  ;;  %v1848_v56 = vpop.permute.xlu1 %1847  ;;  %v1893_v22 = vpop.permute.xlu0 %1892  ;;  %v1666_v38 = vmul.f32 %v4462_v28, %v5804_v59  ;;  %v5805_v39 = vld [vmem:[#allocation7_spill] sm:$0xff] }
 0x278   :  { %v2102_v4 = vadd.f32 %v1848_v56, %v1654_v51  ;;  %v2103_v45 = vadd.f32 %v1848_v56, %v1655_v54  ;;  %v2120_v7 = vadd.f32 %v1893_v22, %v1672_v23  ;;  %v2121_v17 = vadd.f32 %v1893_v22, %v1673_v9  ;;  %v5806_v51 = vld [vmem:[#allocation28_spill] sm:$0xff]  ;;  %v5807_v54 = vld [vmem:[#allocation26_spill] sm:$0xff]  ;;  %v5808_v22 = vld [vmem:[#allocation13_spill] sm:$0xff] }
 0x279   :  { %v1667_v57 = vmul.f32 %v4462_v28, %v5805_v39  ;;  %v1684_v6 = vmul.f32 %v4508_v1, %v5806_v51  ;;  %v1685_v15 = vmul.f32 %v4508_v1, %v5807_v54 }
 0x27a   :  { %2230 = vst [vmem:[%s5289_s2 + $0x150] sm:$0xff] %v2102_v4  ;;  %2231 = vst.msk [vmem:[%s5289_s2 + $0x158] sm:$0xff] %vm139_vm0, %v2103_v45  ;;  %v1670_v4 = vmul.f32 %v4468_v14, %v5808_v22  ;;  %v5809_v45 = vld [vmem:[#allocation11_spill] sm:$0xff] }
 0x27b   :  { %2248 = vst [vmem:[%s5289_s2 + $0x1e0] sm:$0xff] %v2120_v7  ;;  %2249 = vst.msk [vmem:[%s5289_s2 + $0x1e8] sm:$0xff] %vm139_vm0, %v2121_v17  ;;  %v1858_v31 = vpop.permute.xlu1 %1857  ;;  %v1903_v63 = vpop.permute.xlu0 %1902  ;;  %v1671_v7 = vmul.f32 %v4468_v14, %v5809_v45  ;;  %v5810_v17 = vld [vmem:[#allocation32_spill] sm:$0xff] }
 0x27c   :  { %v2106_v40 = vadd.f32 %v1858_v31, %v1658_v47  ;;  %v2107_v43 = vadd.f32 %v1858_v31, %v1659_v2  ;;  %v2124_v55 = vadd.f32 %v1903_v63, %v1676_v52  ;;  %v2125_v32 = vadd.f32 %v1903_v63, %v1677_v37  ;;  %v5811_v47 = vld [vmem:[#allocation30_spill] sm:$0xff]  ;;  %v5812_v37 = vld [vmem:[#allocation17_spill] sm:$0xff]  ;;  %v5813_v63 = vld [vmem:[#allocation15_spill] sm:$0xff] }
 0x27d   :  { %v1688_v62 = vmul.f32 %v4514_v20, %v5810_v17  ;;  %v1689_v25 = vmul.f32 %v4514_v20, %v5811_v47  ;;  %v1674_v31 = vmul.f32 %v4474_v5, %v5812_v37 }
 0x27e   :  { %2234 = vst [vmem:[%s5289_s2 + $0x170] sm:$0xff] %v2106_v40  ;;  %2235 = vst.msk [vmem:[%s5289_s2 + $0x178] sm:$0xff] %vm139_vm0, %v2107_v43  ;;  %v1675_v40 = vmul.f32 %v4474_v5, %v5813_v63  ;;  %v5814_v43 = vld [vmem:[#allocation36_spill] sm:$0xff] }
 0x27f   :  { %2252 = vst [vmem:[%s5289_s2 + $0x200] sm:$0xff] %v2124_v55  ;;  %2253 = vst.msk [vmem:[%s5289_s2 + $0x208] sm:$0xff] %vm139_vm0, %v2125_v32  ;;  %v1868_v16 = vpop.permute.xlu1 %1867  ;;  %v1913_v18 = vpop.permute.xlu0 %1912  ;;  %v1692_v55 = vmul.f32 %v4520_v34, %v5814_v43  ;;  %v5815_v32 = vld [vmem:[#allocation34_spill] sm:$0xff] }
 0x280   :  { %v2110_v36 = vadd.f32 %v1868_v16, %v1662_v12  ;;  %v2111_v8 = vadd.f32 %v1868_v16, %v1663_v46  ;;  %v2128_v27 = vadd.f32 %v1913_v18, %v1680_v48  ;;  %v2129_v24 = vadd.f32 %v1913_v18, %v1681_v10  ;;  %v5816_v48 = vld [vmem:[#allocation21_spill] sm:$0xff]  ;;  %v5817_v10 = vld [vmem:[#allocation19_spill] sm:$0xff]  ;;  %v5818_v18 = vld [vmem:[#allocation40_spill] sm:$0xff] }
 0x281   :  { %v1693_v44 = vmul.f32 %v4520_v34, %v5815_v32  ;;  %v1678_v41 = vmul.f32 %v4480_v58, %v5816_v48  ;;  %v1679_v16 = vmul.f32 %v4480_v58, %v5817_v10 }
 0x282   :  { %2238 = vst [vmem:[%s5289_s2 + $0x190] sm:$0xff] %v2110_v36  ;;  %2239 = vst.msk [vmem:[%s5289_s2 + $0x198] sm:$0xff] %vm139_vm0, %v2111_v8  ;;  %v1696_v36 = vmul.f32 %v4526_v29, %v5818_v18  ;;  %v5819_v8 = vld [vmem:[#allocation38_spill] sm:$0xff] }
 0x283   :  { %2256 = vst [vmem:[%s5289_s2 + $0x220] sm:$0xff] %v2128_v27  ;;  %2257 = vst.msk [vmem:[%s5289_s2 + $0x228] sm:$0xff] %vm139_vm0, %v2129_v24  ;;  %v1878_v28 = vpop.permute.xlu1 %1877  ;;  %v1923_v1 = vpop.permute.xlu0 %1922  ;;  %v1697_v27 = vmul.f32 %v4526_v29, %v5819_v8 }
 0x284   :  { %v2114_v23 = vadd.f32 %v1878_v28, %v1666_v38  ;;  %v2115_v49 = vadd.f32 %v1878_v28, %v1667_v57  ;;  %v2132_v9 = vadd.f32 %v1923_v1, %v1684_v6  ;;  %v2133_v56 = vadd.f32 %v1923_v1, %v1685_v15  ;;  %v5820_v57 = vld [vmem:[#allocation25_spill] sm:$0xff]  ;;  %v5821_v6 = vld [vmem:[#allocation23_spill] sm:$0xff]  ;;  %v5822_v15 = vld [vmem:[#allocation44_spill] sm:$0xff] }
 0x285   :  { %v1682_v51 = vmul.f32 %v4486_v11, %v5820_v57  ;;  %v1683_v54 = vmul.f32 %v4486_v11, %v5821_v6  ;;  %v1700_v28 = vmul.f32 %v4532_v0, %v5822_v15  ;;  %v5823_v1 = vld [vmem:[#allocation42_spill] sm:$0xff] }
 0x286   :  { %2242 = vst [vmem:[%s5289_s2 + $0x1b0] sm:$0xff] %v2114_v23  ;;  %2243 = vst.msk [vmem:[%s5289_s2 + $0x1b8] sm:$0xff] %vm139_vm0, %v2115_v49  ;;  %v1701_v23 = vmul.f32 %v4532_v0, %v5823_v1 }
 0x287   :  { %2260 = vst [vmem:[%s5289_s2 + $0x240] sm:$0xff] %v2132_v9  ;;  %2261 = vst.msk [vmem:[%s5289_s2 + $0x248] sm:$0xff] %vm139_vm0, %v2133_v56  ;;  %v1888_v14 = vpop.permute.xlu1 %1887  ;;  %v1933_v20 = vpop.permute.xlu0 %1932 }
 0x288   :  { %v2118_v2 = vadd.f32 %v1888_v14, %v1670_v4  ;;  %v2119_v33 = vadd.f32 %v1888_v14, %v1671_v7  ;;  %v2136_v52 = vadd.f32 %v1933_v20, %v1688_v62  ;;  %v2137_v60 = vadd.f32 %v1933_v20, %v1689_v25  ;;  %v5824_v4 = vld [vmem:[#allocation29_spill] sm:$0xff]  ;;  %v5825_v7 = vld [vmem:[#allocation27_spill] sm:$0xff]  ;;  %v5827_v25 = vld [vmem:[#allocation46_spill] sm:$0xff] }
 0x289   :  { %v1686_v45 = vmul.f32 %v4492_v50, %v5824_v4  ;;  %v1687_v17 = vmul.f32 %v4492_v50, %v5825_v7  ;;  %v5826_v62 = vld [vmem:[#allocation47_spill] sm:$0xff]  ;;  %v1705_v14 = vmul.f32 %v4538_v53, %v5827_v25 }
 0x28a   :  { %2246 = vst [vmem:[%s5289_s2 + $0x1d0] sm:$0xff] %v2118_v2  ;;  %2247 = vst.msk [vmem:[%s5289_s2 + $0x1d8] sm:$0xff] %vm139_vm0, %v2119_v33  ;;  %v1704_v47 = vmul.f32 %v4538_v53, %v5826_v62 }
 0x28b   :  { %2264 = vst [vmem:[%s5289_s2 + $0x260] sm:$0xff] %v2136_v52  ;;  %2265 = vst.msk [vmem:[%s5289_s2 + $0x268] sm:$0xff] %vm139_vm0, %v2137_v60  ;;  %v1898_v5 = vpop.permute.xlu1 %1897  ;;  %v1943_v34 = vpop.permute.xlu0 %1942  ;;  %v5828_v60 = vld [vmem:[#allocation33_spill] sm:$0xff] }
 0x28c   :  { %v2122_v12 = vadd.f32 %v1898_v5, %v1674_v31  ;;  %v2123_v26 = vadd.f32 %v1898_v5, %v1675_v40  ;;  %v2140_v46 = vadd.f32 %v1943_v34, %v1692_v55  ;;  %v2141_v30 = vadd.f32 %v1943_v34, %v1693_v44  ;;  %v5829_v31 = vld [vmem:[#allocation31_spill] sm:$0xff]  ;;  %v5830_v40 = vld [vmem:[#allocation98_spill] sm:$0xff] }
 0x28d   :  { %v1690_v37 = vmul.f32 %v4498_v19, %v5828_v60  ;;  %v1691_v63 = vmul.f32 %v4498_v19, %v5829_v31  ;;  %v1708_v43 = vmul.f32 %v4544_v21, %v5830_v40  ;;  %v5831_v55 = vld [vmem:[#allocation99_spill] sm:$0xff]  ;;  %v5849_v60 = vld [vmem:[#allocation114_spill] sm:$0xff] }
 0x28e   :  { %2250 = vst [vmem:[%s5289_s2 + $0x1f0] sm:$0xff] %v2122_v12  ;;  %2251 = vst.msk [vmem:[%s5289_s2 + $0x1f8] sm:$0xff] %vm139_vm0, %v2123_v26  ;;  %v1709_v32 = vmul.f32 %v4544_v21, %v5831_v55  ;;  %v5832_v26 = vld [vmem:[#allocation37_spill] sm:$0xff] }
 0x28f   :  { %2268 = vst [vmem:[%s5289_s2 + $0x280] sm:$0xff] %v2140_v46  ;;  %2269 = vst.msk [vmem:[%s5289_s2 + $0x288] sm:$0xff] %vm139_vm0, %v2141_v30  ;;  %v1908_v58 = vpop.permute.xlu1 %1907  ;;  %v1953_v29 = vpop.permute.xlu0 %1952  ;;  %v1694_v46 = vmul.f32 %v4504_v42, %v5832_v26  ;;  %v5833_v30 = vld [vmem:[#allocation35_spill] sm:$0xff]  ;;  %v5854_v26 = vld [vmem:[#allocation101_spill] sm:$0xff] }
 0x290   :  { %v2126_v24 = vadd.f32 %v1908_v58, %v1678_v41  ;;  %v2127_v59 = vadd.f32 %v1908_v58, %v1679_v16  ;;  %v2144_v38 = vadd.f32 %v1953_v29, %v1696_v36  ;;  %v2145_v39 = vadd.f32 %v1953_v29, %v1697_v27  ;;  %v5834_v41 = vld [vmem:[#allocation102_spill] sm:$0xff]  ;;  %v5835_v16 = vld [vmem:[#allocation103_spill] sm:$0xff]  ;;  %v5836_v29 = vld [vmem:[#allocation41_spill] sm:$0xff] }
 0x291   :  { %v1695_v48 = vmul.f32 %v4504_v42, %v5833_v30  ;;  %v1712_v10 = vmul.f32 %v4550_v61, %v5834_v41  ;;  %v1713_v18 = vmul.f32 %v4550_v61, %v5835_v16  ;;  %v5855_v30 = vld [vmem:[#allocation118_spill] sm:$0xff]  ;;  %v5856_v41 = vld [vmem:[#allocation119_spill] sm:$0xff] }
 0x292   :  { %2254 = vst [vmem:[%s5289_s2 + $0x210] sm:$0xff] %v2126_v24  ;;  %2255 = vst.msk [vmem:[%s5289_s2 + $0x218] sm:$0xff] %vm139_vm0, %v2127_v59  ;;  %v1698_v24 = vmul.f32 %v4510_v35, %v5836_v29  ;;  %v5837_v59 = vld [vmem:[#allocation39_spill] sm:$0xff]  ;;  %v5859_v29 = vld [vmem:[#allocation105_spill] sm:$0xff] }
 0x293   :  { %2272 = vst [vmem:[%s5289_s2 + $0x2a0] sm:$0xff] %v2144_v38  ;;  %2273 = vst.msk [vmem:[%s5289_s2 + $0x2a8] sm:$0xff] %vm139_vm0, %v2145_v39  ;;  %v1918_v11 = vpop.permute.xlu1 %1917  ;;  %v1963_v0 = vpop.permute.xlu0 %1962  ;;  %v1699_v38 = vmul.f32 %v4510_v35, %v5837_v59  ;;  %v5838_v39 = vld [vmem:[#allocation106_spill] sm:$0xff] }
 0x294   :  { %v2130_v49 = vadd.f32 %v1918_v11, %v1682_v51  ;;  %v2131_v9 = vadd.f32 %v1918_v11, %v1683_v54  ;;  %v2148_v56 = vadd.f32 %v1963_v0, %v1700_v28  ;;  %v2149_v22 = vadd.f32 %v1963_v0, %v1701_v23  ;;  %v5839_v51 = vld [vmem:[#allocation107_spill] sm:$0xff]  ;;  %v5840_v23 = vld [vmem:[#allocation45_spill] sm:$0xff]  ;;  %v5860_v59 = vld [vmem:[#allocation122_spill] sm:$0xff] }
 0x295   :  { %v1716_v57 = vmul.f32 %v4556_v3, %v5838_v39  ;;  %v1717_v6 = vmul.f32 %v4556_v3, %v5839_v51  ;;  %v5841_v11 = vld [vmem:[#allocation139_spill] sm:$0xff] }
 0x296   :  { %2258 = vst [vmem:[%s5289_s2 + $0x230] sm:$0xff] %v2130_v49  ;;  %2259 = vst.msk [vmem:[%s5289_s2 + $0x238] sm:$0xff] %vm139_vm0, %v2131_v9  ;;  %v1702_v0 = vmul.f32 %v5841_v11, %v5840_v23  ;;  %v5842_v49 = vld [vmem:[#allocation43_spill] sm:$0xff] }
 0x297   :  { %2276 = vst [vmem:[%s5289_s2 + $0x2c0] sm:$0xff] %v2148_v56  ;;  %2277 = vst.msk [vmem:[%s5289_s2 + $0x2c8] sm:$0xff] %vm139_vm0, %v2149_v22  ;;  %v1928_v50 = vpop.permute.xlu1 %1927  ;;  %v1973_v53 = vpop.permute.xlu0 %1972  ;;  %v1703_v9 = vmul.f32 %v5841_v11, %v5842_v49  ;;  %v5843_v56 = vld [vmem:[#allocation110_spill] sm:$0xff]  ;;  %v5844_v22 = vld [vmem:[#allocation135_spill] sm:$0xff] }
 0x298   :  { %v2134_v20 = vadd.f32 %v1928_v50, %v1686_v45  ;;  %v2135_v2 = vadd.f32 %v1928_v50, %v1687_v17  ;;  %v2152_v33 = vadd.f32 %v1973_v53, %v1704_v47  ;;  %v2153_v52 = vadd.f32 %v1973_v53, %v1705_v14  ;;  %v5845_v45 = vld [vmem:[#allocation111_spill] sm:$0xff]  ;;  %v5846_v53 = vld [vmem:[#allocation48_spill] sm:$0xff] }
 0x299   :  { %v1720_v4 = vmul.f32 %v5844_v22, %v5843_v56  ;;  %v1721_v7 = vmul.f32 %v5844_v22, %v5845_v45  ;;  %v5864_v23 = vld [vmem:[#allocation131_spill] sm:$0xff]  ;;  %v5867_v56 = vld [vmem:[#allocation54_spill] sm:$0xff] }
 0x29a   :  { %2262 = vst [vmem:[%s5289_s2 + $0x250] sm:$0xff] %v2134_v20  ;;  %2263 = vst.msk [vmem:[%s5289_s2 + $0x258] sm:$0xff] %vm139_vm0, %v2135_v2  ;;  %v5847_v20 = vld [vmem:[#allocation140_spill] sm:$0xff] }
 0x29b   :  { %2280 = vst [vmem:[%s5289_s2 + $0x2e0] sm:$0xff] %v2152_v33  ;;  %2281 = vst.msk [vmem:[%s5289_s2 + $0x2e8] sm:$0xff] %vm139_vm0, %v2153_v52  ;;  %v1938_v19 = vpop.permute.xlu1 %1937  ;;  %v1983_v21 = vpop.permute.xlu0 %1982  ;;  %v1706_v2 = vmul.f32 %v5847_v20, %v5846_v53  ;;  %v5848_v33 = vld [vmem:[#allocation97_spill] sm:$0xff]  ;;  %v5870_v53 = vld [vmem:[#allocation132_spill] sm:$0xff] }
 0x29c   :  { %v2138_v44 = vadd.f32 %v1938_v19, %v1690_v37  ;;  %v2139_v5 = vadd.f32 %v1938_v19, %v1691_v63  ;;  %v2156_v34 = vadd.f32 %v1983_v21, %v1708_v43  ;;  %v2157_v12 = vadd.f32 %v1983_v21, %v1709_v32  ;;  %v5850_v37 = vld [vmem:[#allocation136_spill] sm:$0xff]  ;;  %v5851_v63 = vld [vmem:[#allocation115_spill] sm:$0xff] }
 0x29d   :  { %v1707_v52 = vmul.f32 %v5847_v20, %v5848_v33  ;;  %v1724_v31 = vmul.f32 %v5850_v37, %v5849_v60  ;;  %v1725_v40 = vmul.f32 %v5850_v37, %v5851_v63  ;;  %v5873_v63 = vld [vmem:[#allocation133_spill] sm:$0xff] }
 0x29e   :  { %2266 = vst [vmem:[%s5289_s2 + $0x270] sm:$0xff] %v2138_v44  ;;  %2267 = vst.msk [vmem:[%s5289_s2 + $0x278] sm:$0xff] %vm139_vm0, %v2139_v5  ;;  %v5852_v5 = vld [vmem:[#allocation100_spill] sm:$0xff] }
 0x29f   :  { %2284 = vst [vmem:[%s5289_s2 + $0x300] sm:$0xff] %v2156_v34  ;;  %2285 = vst.msk [vmem:[%s5289_s2 + $0x308] sm:$0xff] %vm139_vm0, %v2157_v12  ;;  %v1948_v42 = vpop.permute.xlu1 %1947  ;;  %v1993_v61 = vpop.permute.xlu0 %1992  ;;  %v5853_v34 = vld [vmem:[#allocation141_spill] sm:$0xff] }
 0x2a0   :  { %v2142_v36 = vadd.f32 %v1948_v42, %v1694_v46  ;;  %v2143_v8 = vadd.f32 %v1948_v42, %v1695_v48  ;;  %v2160_v27 = vadd.f32 %v1993_v61, %v1712_v10  ;;  %v2161_v58 = vadd.f32 %v1993_v61, %v1713_v18 }
 0x2a1   :  { %v1710_v12 = vmul.f32 %v5853_v34, %v5852_v5  ;;  %v1711_v46 = vmul.f32 %v5853_v34, %v5854_v26  ;;  %v1728_v48 = vmul.f32 %v4577_v13, %v5855_v30  ;;  %v1729_v10 = vmul.f32 %v4577_v13, %v5856_v41  ;;  %v5876_v5 = vld [vmem:[#allocation134_spill] sm:$0xff]  ;;  %v5878_v41 = vld [vmem:[#allocation124_spill] sm:$0xff] }
 0x2a2   :  { %2270 = vst [vmem:[%s5289_s2 + $0x290] sm:$0xff] %v2142_v36  ;;  %2271 = vst.msk [vmem:[%s5289_s2 + $0x298] sm:$0xff] %vm139_vm0, %v2143_v8  ;;  %v5857_v8 = vld [vmem:[#allocation104_spill] sm:$0xff] }
 0x2a3   :  { %2288 = vst [vmem:[%s5289_s2 + $0x320] sm:$0xff] %v2160_v27  ;;  %2289 = vst.msk [vmem:[%s5289_s2 + $0x328] sm:$0xff] %vm139_vm0, %v2161_v58  ;;  %v1958_v35 = vpop.permute.xlu1 %1957  ;;  %v2003_v3 = vpop.permute.xlu0 %2002  ;;  %v5858_v27 = vld [vmem:[#allocation130_spill] sm:$0xff] }
 0x2a4   :  { %v2146_v54 = vadd.f32 %v1958_v35, %v1698_v24  ;;  %v2147_v15 = vadd.f32 %v1958_v35, %v1699_v38  ;;  %v2164_v28 = vadd.f32 %v2003_v3, %v1716_v57  ;;  %v2165_v1 = vadd.f32 %v2003_v3, %v1717_v6  ;;  %v5861_v38 = vld [vmem:[#allocation53_spill] sm:$0xff]  ;;  %v5862_v57 = vld [vmem:[#allocation123_spill] sm:$0xff] }
 0x2a5   :  { %v1714_v58 = vmul.f32 %v5858_v27, %v5857_v8  ;;  %v1715_v24 = vmul.f32 %v5858_v27, %v5859_v29  ;;  %v1732_v39 = vmul.f32 %v5861_v38, %v5860_v59  ;;  %v1733_v51 = vmul.f32 %v5861_v38, %v5862_v57  ;;  %v5881_v8 = vld [vmem:[#allocation128_spill] sm:$0xff]  ;;  %v5882_v27 = vld [vmem:[#allocation143_spill] sm:$0xff]  ;;  %v5883_v29 = vld [vmem:[#allocation129_spill] sm:$0xff] }
 0x2a6   :  { %2274 = vst [vmem:[%s5289_s2 + $0x2b0] sm:$0xff] %v2146_v54  ;;  %2275 = vst.msk [vmem:[%s5289_s2 + $0x2b8] sm:$0xff] %vm139_vm0, %v2147_v15 }
 0x2a7   :  { %2292 = vst [vmem:[%s5289_s2 + $0x340] sm:$0xff] %v2164_v28  ;;  %2293 = vst.msk [vmem:[%s5289_s2 + $0x348] sm:$0xff] %vm139_vm0, %v2165_v1  ;;  %v1968_v17 = vpop.permute.xlu1 %1967  ;;  %v2013_v62 = vpop.permute.xlu0 %2012  ;;  %v5863_v1 = vld [vmem:[#allocation108_spill] sm:$0xff] }
 0x2a8   :  { %v2150_v47 = vadd.f32 %v1968_v17, %v1702_v0  ;;  %v2151_v25 = vadd.f32 %v1968_v17, %v1703_v9  ;;  %v2168_v14 = vadd.f32 %v2013_v62, %v1720_v4  ;;  %v2169_v50 = vadd.f32 %v2013_v62, %v1721_v7  ;;  %v5865_v0 = vld [vmem:[#allocation109_spill] sm:$0xff]  ;;  %v5866_v9 = vld [vmem:[#allocation126_spill] sm:$0xff]  ;;  %v5868_v4 = vld [vmem:[#allocation127_spill] sm:$0xff] }
 0x2a9   :  { %v1718_v11 = vmul.f32 %v5864_v23, %v5863_v1  ;;  %v1719_v49 = vmul.f32 %v5864_v23, %v5865_v0  ;;  %v1736_v22 = vmul.f32 %v5867_v56, %v5866_v9  ;;  %v1737_v45 = vmul.f32 %v5867_v56, %v5868_v4 }
 0x2aa   :  { %2278 = vst [vmem:[%s5289_s2 + $0x2d0] sm:$0xff] %v2150_v47  ;;  %2279 = vst.msk [vmem:[%s5289_s2 + $0x2d8] sm:$0xff] %vm139_vm0, %v2151_v25 }
 0x2ab   :  { %2296 = vst [vmem:[%s5289_s2 + $0x360] sm:$0xff] %v2168_v14  ;;  %2297 = vst.msk [vmem:[%s5289_s2 + $0x368] sm:$0xff] %vm139_vm0, %v2169_v50  ;;  %v1978_v43 = vpop.permute.xlu1 %1977  ;;  %v2023_v55 = vpop.permute.xlu0 %2022  ;;  %v5869_v50 = vld [vmem:[#allocation112_spill] sm:$0xff] }
 0x2ac   :  { %v2154_v32 = vadd.f32 %v1978_v43, %v1706_v2  ;;  %v2155_v19 = vadd.f32 %v1978_v43, %v1707_v52  ;;  %v2172_v21 = vadd.f32 %v2023_v55, %v1724_v31  ;;  %v2173_v44 = vadd.f32 %v2023_v55, %v1725_v40  ;;  %v5871_v2 = vld [vmem:[#allocation113_spill] sm:$0xff]  ;;  %v5872_v31 = vld [vmem:[#allocation116_spill] sm:$0xff] }
 0x2ad   :  { %v1722_v20 = vmul.f32 %v5870_v53, %v5869_v50  ;;  %v1723_v33 = vmul.f32 %v5870_v53, %v5871_v2  ;;  %v1726_v40 = vmul.f32 %v5873_v63, %v5872_v31  ;;  %v5874_v43 = vld [vmem:[#allocation117_spill] sm:$0xff] }
 0x2ae   :  { %2282 = vst [vmem:[%s5289_s2 + $0x2f0] sm:$0xff] %v2154_v32  ;;  %2283 = vst.msk [vmem:[%s5289_s2 + $0x2f8] sm:$0xff] %vm139_vm0, %v2155_v19  ;;  %v1727_v55 = vmul.f32 %v5873_v63, %v5874_v43 }
 0x2af   :  { %2300 = vst [vmem:[%s5289_s2 + $0x380] sm:$0xff] %v2172_v21  ;;  %2301 = vst.msk [vmem:[%s5289_s2 + $0x388] sm:$0xff] %vm139_vm0, %v2173_v44  ;;  %v1988_v16 = vpop.permute.xlu1 %1987  ;;  %v2033_v13 = vpop.permute.xlu0 %2032  ;;  %v5875_v44 = vld [vmem:[#allocation120_spill] sm:$0xff] }
 0x2b0   :  { %v2158_v18 = vadd.f32 %v1988_v16, %v1710_v12  ;;  %v2159_v42 = vadd.f32 %v1988_v16, %v1711_v46  ;;  %v2176_v61 = vadd.f32 %v2033_v13, %v1728_v48  ;;  %v2177_v36 = vadd.f32 %v2033_v13, %v1729_v10  ;;  %v5877_v12 = vld [vmem:[#allocation121_spill] sm:$0xff]  ;;  %v5879_v10 = vld [vmem:[#allocation142_spill] sm:$0xff] }
 0x2b1   :  { %v1730_v34 = vmul.f32 %v5876_v5, %v5875_v44  ;;  %v1731_v26 = vmul.f32 %v5876_v5, %v5877_v12  ;;  %v1734_v16 = vmul.f32 %v5879_v10, %v5878_v41  ;;  %v5880_v13 = vld [vmem:[#allocation125_spill] sm:$0xff] }
 0x2b2   :  { %2286 = vst [vmem:[%s5289_s2 + $0x310] sm:$0xff] %v2158_v18  ;;  %2287 = vst.msk [vmem:[%s5289_s2 + $0x318] sm:$0xff] %vm139_vm0, %v2159_v42  ;;  %v1735_v18 = vmul.f32 %v5879_v10, %v5880_v13 }
 0x2b3   :  { %2304 = vst [vmem:[%s5289_s2 + $0x3a0] sm:$0xff] %v2176_v61  ;;  %2305 = vst.msk [vmem:[%s5289_s2 + $0x3a8] sm:$0xff] %vm139_vm0, %v2177_v36  ;;  %v1998_v6 = vpop.permute.xlu1 %1997  ;;  %v2043_v35 = vpop.permute.xlu0 %2042 }
 0x2b4   :  { %v2162_v3 = vadd.f32 %v1998_v6, %v1714_v58  ;;  %v2163_v54 = vadd.f32 %v1998_v6, %v1715_v24  ;;  %v2180_v15 = vadd.f32 %v2043_v35, %v1732_v39  ;;  %v2181_v28 = vadd.f32 %v2043_v35, %v1733_v51 }
 0x2b5   :  { %v1738_v58 = vmul.f32 %v5882_v27, %v5881_v8  ;;  %v1739_v24 = vmul.f32 %v5882_v27, %v5883_v29 }
 0x2b6   :  { %2290 = vst [vmem:[%s5289_s2 + $0x330] sm:$0xff] %v2162_v3  ;;  %2291 = vst.msk [vmem:[%s5289_s2 + $0x338] sm:$0xff] %vm139_vm0, %v2163_v54 }
 0x2b7   :  { %2308 = vst [vmem:[%s5289_s2 + $0x3c0] sm:$0xff] %v2180_v15  ;;  %2309 = vst.msk [vmem:[%s5289_s2 + $0x3c8] sm:$0xff] %vm139_vm0, %v2181_v28  ;;  %v2008_v7 = vpop.permute.xlu1 %2007  ;;  %v2053_v17 = vpop.permute.xlu0 %2052 }
 0x2b8   :  { %v2166_v62 = vadd.f32 %v2008_v7, %v1718_v11  ;;  %v2167_v47 = vadd.f32 %v2008_v7, %v1719_v49  ;;  %v2184_v25 = vadd.f32 %v2053_v17, %v1736_v22  ;;  %v2185_v14 = vadd.f32 %v2053_v17, %v1737_v45 }
 0x2ba   :  { %2294 = vst [vmem:[%s5289_s2 + $0x350] sm:$0xff] %v2166_v62  ;;  %2295 = vst.msk [vmem:[%s5289_s2 + $0x358] sm:$0xff] %vm139_vm0, %v2167_v47 }
 0x2bb   :  { %2312 = vst [vmem:[%s5289_s2 + $0x3e0] sm:$0xff] %v2184_v25  ;;  %2313 = vst.msk [vmem:[%s5289_s2 + $0x3e8] sm:$0xff] %vm139_vm0, %v2185_v14  ;;  %v2018_v52 = vpop.permute.xlu1 %2017 }
 0x2bc   :  { %v2170_v60 = vadd.f32 %v2018_v52, %v1722_v20  ;;  %v2171_v37 = vadd.f32 %v2018_v52, %v1723_v33 }
 0x2be   :  { %2298 = vst [vmem:[%s5289_s2 + $0x370] sm:$0xff] %v2170_v60  ;;  %2299 = vst.msk [vmem:[%s5289_s2 + $0x378] sm:$0xff] %vm139_vm0, %v2171_v37 }
 0x2bf   :  { %v2028_v32 = vpop.permute.xlu1 %2027 }
 0x2c0   :  { %v2174_v19 = vadd.f32 %v2028_v32, %v1726_v40  ;;  %v2175_v21 = vadd.f32 %v2028_v32, %v1727_v55 }
 0x2c2   :  { %2302 = vst [vmem:[%s5289_s2 + $0x390] sm:$0xff] %v2174_v19  ;;  %2303 = vst.msk [vmem:[%s5289_s2 + $0x398] sm:$0xff] %vm139_vm0, %v2175_v21 }
 0x2c3   :  { %v2038_v46 = vpop.permute.xlu1 %2037 }
 0x2c4   :  { %v2178_v30 = vadd.f32 %v2038_v46, %v1730_v34  ;;  %v2179_v48 = vadd.f32 %v2038_v46, %v1731_v26 }
 0x2c6   :  { %2306 = vst [vmem:[%s5289_s2 + $0x3b0] sm:$0xff] %v2178_v30  ;;  %2307 = vst.msk [vmem:[%s5289_s2 + $0x3b8] sm:$0xff] %vm139_vm0, %v2179_v48 }
 0x2c7   :  { %v2048_v42 = vpop.permute.xlu1 %2047 }
 0x2c8   :  { %v2182_v61 = vadd.f32 %v2048_v42, %v1734_v16  ;;  %v2183_v36 = vadd.f32 %v2048_v42, %v1735_v18 }
 0x2ca   :  { %2310 = vst [vmem:[%s5289_s2 + $0x3d0] sm:$0xff] %v2182_v61  ;;  %2311 = vst.msk [vmem:[%s5289_s2 + $0x3d8] sm:$0xff] %vm139_vm0, %v2183_v36 }
 0x2cb   :  { %v2058_v59 = vpop.permute.xlu1 %2057 }
 0x2cc   :  { %v2186_v38 = vadd.f32 %v2058_v59, %v1738_v58  ;;  %v2187_v39 = vadd.f32 %v2058_v59, %v1739_v24 }
 0x2ce   :  { %2314 = vst [vmem:[%s5289_s2 + $0x3f0] sm:$0xff] %v2186_v38  ;;  %2315 = vst.msk [vmem:[%s5289_s2 + $0x3f8] sm:$0xff] %vm139_vm0, %v2187_v39 }

</bundles_post_ra>
